<compile_context>
chip_gen: v7x
topology: tpu7x:2x2x1
jax: 0.10.0
libtpu: 0.0.40
codegen_flags: <defaults>
</compile_context>

<pallas_src>
import math
import functools

import jax
import jax.numpy as jnp
from jax.experimental import pallas as pl
from jax.experimental.pallas import tpu as pltpu


def _gmm_prior_kernel(xT_ref, lhs_ref, mu_cols_ref, sel_ref, bias_ref, o_ref, *, KD):
    # xT_ref:      (D, TB)       activation, batch on lanes
    # lhs_ref:     (2*KD, D)     [ P_flat^T ; tile_sel ]
    # mu_cols_ref: (2*KD, 1)     [ (mu^T P)_flat ; mu_flat ] as a column
    # sel_ref:     (K, KD)       -0.5 * block-diagonal ones (group-sum matrix)
    # bias_ref:    (K, 1)        -0.5*(D*log(2pi) - logdet_k) + logw_k
    # o_ref:       (1, TB)       lane-dense output row

    # One fused MXU matmul produces both x @ P_k (top half) and x replicated
    # per component (bottom half), all with batch along lanes.
    t = jnp.dot(lhs_ref[...], xT_ref[...],
                preferred_element_type=jnp.float32,
                precision=jax.lax.Precision.HIGHEST)          # (2*KD, TB)

    # Subtract the frozen per-component columns (lane broadcast, one VPU op):
    #   top   : (x P_k)[b,e] - (mu_k^T P_k)[e]  = sum_d (x-mu_k)[b,d] P_k[d,e]
    #   bottom: x[b,e]       - mu_k[e]
    diff = t - mu_cols_ref[...]                               # (2*KD, TB)
    prod = diff[:KD, :] * diff[KD:, :]                        # (KD, TB)

    # Group-sum over each component's D lanes on the MXU; -0.5 folded into sel.
    lp = jnp.dot(sel_ref[...], prod,
                 preferred_element_type=jnp.float32,
                 precision=jax.lax.Precision.HIGHEST)         # (K, TB) = -0.5*q
    lp = lp + bias_ref[...]                                   # (K, TB)

    # Single sublane max over the K components -> lane-dense output row.
    o_ref[...] = -jnp.max(lp, axis=0, keepdims=True)          # (1, TB)


def prepare_body_pose_gmm_prior(model_mu, model_precision, model_logdet,
                                model_logweights):
    """One-time precompute of the frozen GMM parameters (run at module init)."""
    prec = jnp.asarray(model_precision, jnp.float32)
    D = prec.shape[-1]
    prec = prec.reshape(-1, D, D)                             # (K, D, D)
    K = prec.shape[0]
    mu = jnp.asarray(model_mu, jnp.float32).reshape(K, D)
    logdet = jnp.asarray(model_logdet, jnp.float32).reshape(K)
    logw = jnp.asarray(model_logweights, jnp.float32).reshape(K)
    log_2pi = D * math.log(2.0 * math.pi)

    # lhs[k*D+e, d]          = P[k, d, e]        (top half:   t = x @ P_k)
    # lhs[KD + k*D+e, d]     = 1 iff d == e      (bottom half: x replicated per k)
    prec_T = jnp.transpose(prec, (0, 2, 1)).reshape(K * D, D)
    tile_sel = jnp.tile(jnp.eye(D, dtype=jnp.float32), (K, 1))
    lhs = jnp.concatenate([prec_T, tile_sel], axis=0)         # (2*K*D, D)

    # mu_cols: columns subtracted from the matmul output.
    mu_prec = jnp.einsum('kd,kde->ke', mu, prec,
                         precision=jax.lax.Precision.HIGHEST) # (K, D)
    mu_cols = jnp.concatenate(
        [mu_prec.reshape(K * D), mu.reshape(K * D)]).reshape(2 * K * D, 1)

    # Group-sum selection matrix with the -0.5 folded in.
    sel = -0.5 * jnp.repeat(jnp.eye(K, dtype=jnp.float32), D, axis=1)  # (K, K*D)

    # Per-component affine bias folded into a single column.
    bias = (-0.5 * (log_2pi - logdet) + logw).reshape(K, 1)   # (K, 1)

    return (lhs, mu_cols, sel, bias)


def _pick_batch_tile(B):
    """Lane-dense (multiple of 128) batch tile; >=2 grid steps for large B."""
    rup = lambda a, m: ((a + m - 1) // m) * m
    if B <= 128:
        return 128
    return min(512, max(128, rup(-(-B // 2), 128)))


@jax.jit
def body_pose_gmm_prior(pose_params, params):
    """pose_params: [B, D].  Returns [B] = -max_k GMM component log-prob."""
    lhs, mu_cols, sel, bias = params
    KD2, D = lhs.shape
    KD = KD2 // 2
    K = sel.shape[0]

    x = jnp.asarray(pose_params, jnp.float32)
    B = x.shape[0]
    TB = _pick_batch_tile(B)
    B_pad = ((B + TB - 1) // TB) * TB
    # Only per-call data work: pad the batch and put it on the lane axis.
    xT = jnp.pad(x, ((0, B_pad - B), (0, 0))).T               # (D, B_pad)

    out = pl.pallas_call(
        functools.partial(_gmm_prior_kernel, KD=KD),
        out_shape=jax.ShapeDtypeStruct((1, B_pad), jnp.float32),
        grid=(B_pad // TB,),
        in_specs=[
            pl.BlockSpec((D, TB), lambda i: (0, i)),          # activation tile
            pl.BlockSpec((2 * KD, D), lambda i: (0, 0)),      # fused precision/tiling
            pl.BlockSpec((2 * KD, 1), lambda i: (0, 0)),      # mu columns
            pl.BlockSpec((K, KD), lambda i: (0, 0)),          # group-sum matrix
            pl.BlockSpec((K, 1), lambda i: (0, 0)),           # bias column
        ],
        out_specs=pl.BlockSpec((1, TB), lambda i: (0, i)),    # lane-dense output
        compiler_params=pltpu.CompilerParams(
            dimension_semantics=("parallel",)),
    )(xT, lhs, mu_cols, sel, bias)
    return out[0, :B]


def _reference(x, mu, prec, logdet, logw):
    """Plain-JAX transcription of the torch forward for verification."""
    D = x.shape[-1]
    log_2pi = D * math.log(2.0 * math.pi)
    sub = x[:, None, :] - mu[None, :, :]                      # (B, K, D)
    tmp = jnp.einsum('bkd,kde->bke', sub, prec,
                     precision=jax.lax.Precision.HIGHEST)     # (B, K, D)
    q = jnp.sum(tmp * sub, axis=-1)                           # (B, K)
    lp = -0.5 * (q + log_2pi - logdet[None, :]) + logw[None, :]
    return -jnp.max(lp, axis=1)                               # (B,)


if __name__ == "__main__":
    # Small synthetic GMM (gmm_comps=8 is a valid choice in the module).
    B, K, D = 4, 8, 32
    key = jax.random.PRNGKey(0)
    k_x, k_mu, k_a, k_w = jax.random.split(key, 4)

    pose_params = 0.1 * jax.random.normal(k_x, (B, D), dtype=jnp.float32)

    # Deterministic synthetic GMM parameters.
    # TODO(synk): real module loads these from full_body_gmm_prior.pkl; synthesized here.
    model_mu = jax.random.normal(k_mu, (K, D), dtype=jnp.float32)
    a = jax.random.normal(k_a, (K, D, D), dtype=jnp.float32)
    model_precision = (jnp.einsum('kij,klj->kil', a, a) / D
                       + jnp.eye(D, dtype=jnp.float32)[None])          # SPD
    model_pi = jax.nn.softmax(jax.random.normal(k_w, (K,)))            # mixture weights
    model_logdet = jnp.linalg.slogdet(model_precision)[1]              # (K,)
    model_logweights = jnp.log(model_pi)                               # (K,)

    # Frozen-parameter precompute: once, outside the per-call path.
    params = prepare_body_pose_gmm_prior(model_mu, model_precision,
                                         model_logdet, model_logweights)
    params = jax.block_until_ready(params)

    out = body_pose_gmm_prior(pose_params, params)
    out = jax.block_until_ready(out)

    ref = _reference(pose_params, model_mu, model_precision,
                     model_logdet, model_logweights)

    assert out.shape == (B,)
    assert jnp.allclose(out, ref, rtol=1e-3, atol=1e-3), (out, ref)
    print("KERNEL_OK")
</pallas_src>

<mosaic_0001>
module attributes {stable_mosaic.version = 11 : i64} {
  func.func @_gmm_prior_kernel(%arg0: i32, %arg1: memref<32x128xf32, #tpu.memory_space<vmem>>, %arg2: memref<512x32xf32, #tpu.memory_space<vmem>>, %arg3: memref<512x1xf32, #tpu.memory_space<vmem>>, %arg4: memref<8x256xf32, #tpu.memory_space<vmem>>, %arg5: memref<8x1xf32, #tpu.memory_space<vmem>>, %arg6: memref<1x128xf32, #tpu.memory_space<vmem>>) attributes {dimension_semantics = [#tpu.dimension_semantics<parallel>], iteration_bounds = array<i64: 1>, scalar_prefetch = 0 : i64, scratch_operands = 0 : i64, tpu.core_type = #tpu.core_type<tc>, window_params = [{transform_indices = @transform_0, window_bounds = array<i64: 32, 128>}, {pipeline_mode = #tpu.pipeline_mode<synchronous>, transform_indices = @transform_1, window_bounds = array<i64: 512, 32>}, {pipeline_mode = #tpu.pipeline_mode<synchronous>, transform_indices = @transform_2, window_bounds = array<i64: 512, 1>}, {pipeline_mode = #tpu.pipeline_mode<synchronous>, transform_indices = @transform_3, window_bounds = array<i64: 8, 256>}, {pipeline_mode = #tpu.pipeline_mode<synchronous>, transform_indices = @transform_4, window_bounds = array<i64: 8, 1>}, {transform_indices = @transform_5, window_bounds = array<i64: 1, 128>}]} {
    %c0 = arith.constant 0 : index
    %c0_0 = arith.constant 0 : index
    %0 = vector.load %arg2[%c0, %c0_0] : memref<512x32xf32, #tpu.memory_space<vmem>>, vector<512x32xf32>
    %c0_1 = arith.constant 0 : index
    %c0_2 = arith.constant 0 : index
    %1 = vector.load %arg1[%c0_1, %c0_2] : memref<32x128xf32, #tpu.memory_space<vmem>>, vector<32x128xf32>
    %cst = arith.constant dense<0.000000e+00> : vector<512x128xf32>
    %2 = tpu.matmul %0, %1, %cst {dimension_numbers = #tpu.dot_dimension_numbers<[1], [0], [0], [1], [0, 0, 1, 1], [], []>, precision = #tpu.contract_precision<fp32>} : vector<512x32xf32>, vector<32x128xf32>, vector<512x128xf32> -> vector<512x128xf32>
    %c0_3 = arith.constant 0 : index
    %c0_4 = arith.constant 0 : index
    %3 = vector.load %arg3[%c0_3, %c0_4] : memref<512x1xf32, #tpu.memory_space<vmem>>, vector<512x1xf32>
    %4 = vector.broadcast %3 : vector<512x1xf32> to vector<512x128xf32>
    %5 = arith.subf %2, %4 : vector<512x128xf32>
    %6 = vector.extract_strided_slice %5 {offsets = [0, 0], sizes = [256, 128], strides = [1, 1]} : vector<512x128xf32> to vector<256x128xf32>
    %7 = vector.extract_strided_slice %5 {offsets = [256, 0], sizes = [256, 128], strides = [1, 1]} : vector<512x128xf32> to vector<256x128xf32>
    %8 = arith.mulf %6, %7 : vector<256x128xf32>
    %c0_5 = arith.constant 0 : index
    %c0_6 = arith.constant 0 : index
    %9 = vector.load %arg4[%c0_5, %c0_6] : memref<8x256xf32, #tpu.memory_space<vmem>>, vector<8x256xf32>
    %cst_7 = arith.constant dense<0.000000e+00> : vector<8x128xf32>
    %10 = tpu.matmul %9, %8, %cst_7 {dimension_numbers = #tpu.dot_dimension_numbers<[1], [0], [0], [1], [0, 0, 1, 1], [], []>, precision = #tpu.contract_precision<fp32>} : vector<8x256xf32>, vector<256x128xf32>, vector<8x128xf32> -> vector<8x128xf32>
    %c0_8 = arith.constant 0 : index
    %c0_9 = arith.constant 0 : index
    %11 = vector.load %arg5[%c0_8, %c0_9] : memref<8x1xf32, #tpu.memory_space<vmem>>, vector<8x1xf32>
    %12 = vector.broadcast %11 : vector<8x1xf32> to vector<8x128xf32>
    %13 = arith.addf %10, %12 : vector<8x128xf32>
    %cst_10 = arith.constant dense<0xFF800000> : vector<128xf32>
    %14 = vector.multi_reduction <maximumf>, %13, %cst_10 [0] : vector<8x128xf32> to vector<128xf32>
    %15 = vector.shape_cast %14 : vector<128xf32> to vector<1x128xf32>
    %cst_11 = arith.constant 0.000000e+00 : f32
    %16 = vector.broadcast %cst_11 : f32 to vector<1x128xf32>
    %17 = arith.subf %16, %15 : vector<1x128xf32>
    %c0_12 = arith.constant 0 : index
    %c0_13 = arith.constant 0 : index
    %18 = vector.load %arg6[%c0_12, %c0_13] : memref<1x128xf32, #tpu.memory_space<vmem>>, vector<1x128xf32>
    tpu.vector_store %arg6[%c0_12, %c0_13], %17 {strides = array<i32>} : memref<1x128xf32, #tpu.memory_space<vmem>>, vector<1x128xf32>,
    return
  }
  func.func @transform_0(%arg0: i32) -> (i32, i32) {
    %c0_i32 = arith.constant 0 : i32
    %c0_i32_0 = arith.constant 0 : i32
    return %c0_i32, %arg0 : i32, i32
  }
  func.func @transform_1(%arg0: i32) -> (i32, i32) {
    %c0_i32 = arith.constant 0 : i32
    %c0_i32_0 = arith.constant 0 : i32
    %c0_i32_1 = arith.constant 0 : i32
    return %c0_i32, %c0_i32_0 : i32, i32
  }
  func.func @transform_2(%arg0: i32) -> (i32, i32) {
    %c0_i32 = arith.constant 0 : i32
    %c0_i32_0 = arith.constant 0 : i32
    %c0_i32_1 = arith.constant 0 : i32
    return %c0_i32, %c0_i32_0 : i32, i32
  }
  func.func @transform_3(%arg0: i32) -> (i32, i32) {
    %c0_i32 = arith.constant 0 : i32
    %c0_i32_0 = arith.constant 0 : i32
    %c0_i32_1 = arith.constant 0 : i32
    return %c0_i32, %c0_i32_0 : i32, i32
  }
  func.func @transform_4(%arg0: i32) -> (i32, i32) {
    %c0_i32 = arith.constant 0 : i32
    %c0_i32_0 = arith.constant 0 : i32
    %c0_i32_1 = arith.constant 0 : i32
    return %c0_i32, %c0_i32_0 : i32, i32
  }
  func.func @transform_5(%arg0: i32) -> (i32, i32) {
    %c0_i32 = arith.constant 0 : i32
    %c0_i32_0 = arith.constant 0 : i32
    return %c0_i32, %arg0 : i32, i32
  }
}

</mosaic_0001>

<bundles_post_ra>
// kernel: body_pose_gmm_prior.1
= control target key start
LH: loop header
LB: loop body
LE: loop exit
PB: predicated region body
PF: predicated region fallthrough
CT: control target
= control target key end

     0   :  { %vm88_vm0 = vcmask 261120   ;;  %s9208_s0 = inlined_call_operand.vmem [shape: f32[32,128], index: 0, kind: input, shape index: {}]   ;;  %s9209_s1 = inlined_call_operand.vmem [shape: f32[512,32], index: 1, kind: input, shape index: {}]   ;;  %s9210_s2 = inlined_call_operand.vmem [shape: f32[512,1], index: 2, kind: input, shape index: {}]   ;;  %s9211_s4 = inlined_call_operand.vmem [shape: f32[8,1], index: 4, kind: input, shape index: {}]   ;;  %s9212_s3 = inlined_call_operand.vmem [shape: f32[8,256], index: 3, kind: input, shape index: {}]   ;;  %s9213_s5 = inlined_call_operand.vmem [shape: f32[1,128], index: 5, kind: output, shape index: {}]  }
   0x1   :  { %v84_v0 = vld [vmem:[%s9208_s0] sm:$0xff]  ;;  %v85_v1 = vld [vmem:[%s9208_s0 + $0x8] sm:$0xff]  ;;  %v86_v2 = vld [vmem:[%s9208_s0 + $0x10] sm:$0xff] }
   0x2   :  { %v282_v3 = vand.u32 4294901760, %v84_v0  ;;  %v285_v4 = vand.u32 4294901760, %v85_v1  ;;  %v87_v5 = vld [vmem:[%s9208_s0 + $0x18] sm:$0xff]  ;;  %v288_v6 = vand.u32 4294901760, %v86_v2  ;;  %v20_v7 = vld [vmem:[%s9209_s1] sm:$0xff]  ;;  %v21_v8 = vld [vmem:[%s9209_s1 + $0x8] sm:$0xff] }
   0x3   :  { %v291_v9 = vand.u32 4294901760, %v87_v5  ;;  %v90_v10 = vsel %vm88_vm0, %v20_v7, 0  ;;  %v93_v11 = vsel %vm88_vm0, %v21_v8, 0  ;;  %v22_v12 = vld [vmem:[%s9209_s1 + $0x10] sm:$0xff]  ;;  %v23_v13 = vld [vmem:[%s9209_s1 + $0x18] sm:$0xff]  ;;  %v24_v14 = vld [vmem:[%s9209_s1 + $0x20] sm:$0xff] }
   0x4   :  { %v6706_v15 = vpack.c.bf16 %v285_v4, %v282_v3  ;;  %v6708_v16 = vsub.f32 %v84_v0, %v282_v3  ;;  %v6710_v17 = vsub.f32 %v85_v1, %v285_v4  ;;  %v6712_v18 = vsub.f32 %v86_v2, %v288_v6  ;;  %v25_v23 = vld [vmem:[%s9209_s1 + $0x28] sm:$0xff]  ;;  %v26_v24 = vld [vmem:[%s9209_s1 + $0x30] sm:$0xff]  ;;  %v27_v33 = vld [vmem:[%s9209_s1 + $0x38] sm:$0xff] }
   0x5   :  { %v6714_v19 = vpack.c.bf16 %v291_v9, %v288_v6  ;;  %v6716_v20 = vsub.f32 %v87_v5, %v291_v9  ;;  %v6718_v21 = vand.u32 4294901760, %v90_v10  ;;  %v6720_v22 = vand.u32 4294901760, %v93_v11  ;;  %v28_v54 = vld [vmem:[%s9209_s1 + $0x40] sm:$0xff]  ;;  %v29_v55 = vld [vmem:[%s9209_s1 + $0x48] sm:$0xff]  ;;  %v30_v0 = vld [vmem:[%s9209_s1 + $0x50] sm:$0xff] }
   0x6   :  { %6080 = vmatprep.subr.bf16.mxu1 %v6706_v15  ;;  %v6731_v25 = vpack.c.bf16 %v6710_v17, %v6708_v16  ;;  %v96_v26 = vsel %vm88_vm0, %v22_v12, 0  ;;  %v99_v27 = vsel %vm88_vm0, %v23_v13, 0  ;;  %v102_v28 = vsel %vm88_vm0, %v24_v14, 0  ;;  %v31_v5 = vld [vmem:[%s9209_s1 + $0x58] sm:$0xff] }
   0x7   :  { %9484 = vst [vmem:[#allocation2_spill] sm:$0xff] %v6714_v19  ;;  %9485 = vst [vmem:[#allocation3_spill] sm:$0xff] %v6718_v21  ;;  %6082 = vmatpush3.bf16.msra.mxu1 %v6706_v15  ;;  %v6739_v29 = vpack.c.bf16 %v6716_v20, %v6712_v18  ;;  %v6742_v30 = vsub.f32 %v90_v10, %v6718_v21  ;;  %v6745_v31 = vsub.f32 %v93_v11, %v6720_v22  ;;  %v32_v10 = vld [vmem:[%s9209_s1 + $0x60] sm:$0xff] }
   0x8   :  { %9486 = vst [vmem:[#allocation4_spill] sm:$0xff] %v6720_v22  ;;  %v6747_v32 = vand.u32 4294901760, %v96_v26  ;;  %6096 = vmatprep.subr.bf16.mxu0 %v6731_v25  ;;  %6084 = vmatprep.subr.bf16.mxu1 %v6714_v19  ;;  %v6754_v34 = vand.u32 4294901760, %v99_v27  ;;  %v6756_v35 = vand.u32 4294901760, %v102_v28  ;;  %v105_v36 = vsel %vm88_vm0, %v25_v23, 0  ;;  %v33_v23 = vld [vmem:[%s9209_s1 + $0x68] sm:$0xff] }
   0x9   :  { %9487 = vst [vmem:[#allocation5_spill] sm:$0xff] %v6739_v29  ;;  %v108_v37 = vsel %vm88_vm0, %v26_v24, 0  ;;  %6098 = vmatpush3.bf16.msra.mxu0 %v6731_v25  ;;  %v9226_v38 = vand.u32 4294901760, %v6742_v30  ;;  %v9225_v39 = vand.u32 4294901760, %v6745_v31  ;;  %5671 = vmatprep.mubr.f32.mxu0 %v6742_v30  ;;  %v6767_v41 = vand.u32 4294901760, %v105_v36 }
   0xa   :  { %9488 = vst [vmem:[#allocation6_spill] sm:$0xff] %v6747_v32  ;;  %9489 = vst [vmem:[#allocation7_spill] sm:$0xff] %v6754_v34  ;;  %v6765_v40 = vsub.f32 %v96_v26, %v6747_v32  ;;  %6100 = vmatprep.subr.bf16.mxu0 %v6739_v29  ;;  %v6771_v42 = vsub.f32 %v99_v27, %v6754_v34  ;;  %v6774_v43 = vsub.f32 %v102_v28, %v6756_v35 }
   0xb   :  { %9490 = vst [vmem:[#allocation8_spill] sm:$0xff] %v6756_v35  ;;  %9491 = vst [vmem:[#allocation9_spill] sm:$0xff] %v6767_v41  ;;  %v6776_v44 = vand.u32 4294901760, %v108_v37  ;;  %v111_v45 = vsel %vm88_vm0, %v27_v33, 0  ;;  %6086 = vmatpush3.bf16.msra.mxu1 %v6714_v19  ;;  %v353_v46 = vsub.f32 %v6742_v30, %v9226_v38  ;;  %v363_v47 = vsub.f32 %v6745_v31, %v9225_v39 }
   0xc   :  { %v9224_v48 = vand.u32 4294901760, %v6765_v40  ;;  %v6788_v49 = vsub.f32 %v105_v36, %v6767_v41  ;;  %v9223_v50 = vand.u32 4294901760, %v6771_v42  ;;  %v9222_v51 = vand.u32 4294901760, %v6774_v43 }
   0xd   :  { %9492 = vst [vmem:[#allocation10_spill] sm:$0xff] %v6776_v44  ;;  %v6793_v52 = vsub.f32 %v108_v37, %v6776_v44  ;;  %v6795_v53 = vand.u32 4294901760, %v111_v45  ;;  %v354_v56 = vand.u32 4294901760, %v353_v46  ;;  %6102 = vmatpush3.bf16.msra.mxu0 %v6739_v29  ;;  %v364_v57 = vand.u32 4294901760, %v363_v47  ;;  %v34_v46 = vld [vmem:[%s9209_s1 + $0x70] sm:$0xff]  ;;  %v35_v47 = vld [vmem:[%s9209_s1 + $0x78] sm:$0xff] }
   0xe   :  { %v373_v58 = vsub.f32 %v6765_v40, %v9224_v48  ;;  %v9221_v59 = vand.u32 4294901760, %v6788_v49  ;;  %v383_v60 = vsub.f32 %v6771_v42, %v9223_v50  ;;  %v393_v61 = vsub.f32 %v6774_v43, %v9222_v51  ;;  %6104 = vmatprep.subr.bf16.mxu0 %v6706_v15 }
   0xf   :  { %9493 = vst [vmem:[#allocation11_spill] sm:$0xff] %v6795_v53  ;;  %v9218_v62 = vand.u32 4294901760, %v6793_v52  ;;  %v6816_v63 = vsub.f32 %v111_v45, %v6795_v53  ;;  %5463 = vmatprep.mubr.f32.mxu1 %v354_v56  ;;  %v114_v3 = vsel %vm88_vm0, %v28_v54, 0  ;;  %v117_v4 = vsel %vm88_vm0, %v29_v55, 0 }
  0x10   :  { %v374_v1 = vand.u32 4294901760, %v373_v58  ;;  %v403_v2 = vsub.f32 %v6788_v49, %v9221_v59  ;;  %5464 = vmatmul.mubr.f32.vlgmr.msra.gmra.mrb[0].mxu1 %v364_v57  ;;  %5672 = vmatmul.mubr.f32.vlgmr.msra.gmra.mrb[0].mxu0 %v6745_v31  ;;  %v384_v6 = vand.u32 4294901760, %v383_v60  ;;  %v394_v7 = vand.u32 4294901760, %v393_v61 }
  0x11   :  { %v413_v8 = vsub.f32 %v6793_v52, %v9218_v62  ;;  %v9217_v9 = vand.u32 4294901760, %v6816_v63  ;;  %5674 = vmatprep.mubr.f32.mxu0 %v6765_v40  ;;  %v6839_v12 = vand.u32 4294901760, %v114_v3  ;;  %v6841_v13 = vand.u32 4294901760, %v117_v4  ;;  %6106 = vmatpush3.bf16.msra.mxu0 %v6706_v15 }
  0x12   :  { %5466 = vmatprep.mubr.f32.mxu1 %v374_v1  ;;  %v404_v11 = vand.u32 4294901760, %v403_v2  ;;  %v120_v14 = vsel %vm88_vm0, %v30_v0, 0  ;;  %v123_v28 = vsel %vm88_vm0, %v31_v5, 0  ;;  %v126_v45 = vsel %vm88_vm0, %v32_v10, 0  ;;  %6108 = vmatprep.subr.bf16.mxu0 %v6714_v19 }
  0x13   :  { %9494 = vst [vmem:[#allocation12_spill] sm:$0xff] %v6839_v12  ;;  %9495 = vst [vmem:[#allocation13_spill] sm:$0xff] %v6841_v13  ;;  %v414_v24 = vand.u32 4294901760, %v413_v8  ;;  %v423_v26 = vsub.f32 %v6816_v63, %v9217_v9  ;;  %v6851_v27 = vand.u32 4294901760, %v120_v14  ;;  %v6855_v33 = vsub.f32 %v114_v3, %v6839_v12 }
  0x14   :  { %v6858_v36 = vsub.f32 %v117_v4, %v6841_v13  ;;  %v6860_v37 = vand.u32 4294901760, %v123_v28  ;;  %5467 = vmatmul.mubr.f32.gmra.mrb[2].mxu1 %v384_v6  ;;  %5675 = vmatmul.mubr.f32.gmra.mrb[2].mxu0 %v6771_v42  ;;  %v6874_v56 = vand.u32 4294901760, %v126_v45  ;;  %v129_v57 = vsel %vm88_vm0, %v33_v23, 0 }
  0x15   :  { %9496 = vst [vmem:[#allocation14_spill] sm:$0xff] %v6851_v27  ;;  %v424_v54 = vand.u32 4294901760, %v423_v26  ;;  %v6872_v55 = vsub.f32 %v120_v14, %v6851_v27  ;;  %5469 = vmatprep.mubr.f32.mxu1 %v394_v7  ;;  %5677 = vmatprep.mubr.f32.mxu0 %v6774_v43  ;;  %v9216_v58 = vand.u32 4294901760, %v6855_v33  ;;  %v6883_v0 = vand.u32 4294901760, %v129_v57 }
  0x16   :  { %9497 = vst [vmem:[#allocation15_spill] sm:$0xff] %v6860_v37  ;;  %9498 = vst [vmem:[#allocation16_spill] sm:$0xff] %v6874_v56  ;;  %v9215_v60 = vand.u32 4294901760, %v6858_v36  ;;  %v6881_v61 = vsub.f32 %v123_v28, %v6860_v37  ;;  %v6887_v2 = vsub.f32 %v126_v45, %v6874_v56  ;;  %v132_v3 = vsel %vm88_vm0, %v34_v46, 0  ;;  %6110 = vmatpush3.bf16.msra.mxu0 %v6714_v19  ;;  %v36_v28 = vld [vmem:[%s9209_s1 + $0x80] sm:$0xff] }
  0x17   :  { %9499 = vst [vmem:[#allocation17_spill] sm:$0xff] %v6883_v0  ;;  %v9214_v1 = vand.u32 4294901760, %v6872_v55  ;;  %v135_v4 = vsel %vm88_vm0, %v35_v47, 0  ;;  %v433_v5 = vsub.f32 %v6855_v33, %v9216_v58  ;;  %v6900_v8 = vsub.f32 %v129_v57, %v6883_v0  ;;  %v38_v57 = vld [vmem:[%s9209_s1 + $0x90] sm:$0xff] }
  0x18   :  { %v443_v6 = vsub.f32 %v6858_v36, %v9215_v60  ;;  %v9220_v7 = vand.u32 4294901760, %v6881_v61  ;;  %5470 = vmatmul.mubr.f32.gmra.mrb[4].mxu1 %v404_v11  ;;  %5678 = vmatmul.mubr.f32.gmra.mrb[4].mxu0 %v6788_v49  ;;  %v9219_v14 = vand.u32 4294901760, %v6887_v2  ;;  %v6907_v23 = vand.u32 4294901760, %v132_v3  ;;  %v37_v11 = vld [vmem:[%s9209_s1 + $0x88] sm:$0xff] }
  0x19   :  { %v453_v10 = vsub.f32 %v6872_v55, %v9214_v1  ;;  %v6909_v26 = vand.u32 4294901760, %v135_v4  ;;  %5472 = vmatprep.mubr.f32.mxu1 %v414_v24  ;;  %5680 = vmatprep.mubr.f32.mxu0 %v6793_v52  ;;  %v434_v45 = vand.u32 4294901760, %v433_v5  ;;  %v39_v1 = vld [vmem:[%s9209_s1 + $0x98] sm:$0xff]  ;;  %v138_v5 = vsel %vm88_vm0, %v36_v28, 0 }
  0x1a   :  { %9500 = vst [vmem:[#allocation18_spill] sm:$0xff] %v6907_v23  ;;  %v444_v46 = vand.u32 4294901760, %v443_v6  ;;  %v6919_v47 = vsub.f32 %v132_v3, %v6907_v23  ;;  %v463_v60 = vsub.f32 %v6881_v61, %v9220_v7  ;;  %v141_v3 = vsel %vm88_vm0, %v37_v11, 0 }
  0x1b   :  { %9501 = vst [vmem:[#allocation19_spill] sm:$0xff] %v6909_v26  ;;  %v6931_v24 = vsub.f32 %v135_v4, %v6909_v26  ;;  %v454_v6 = vand.u32 4294901760, %v453_v10  ;;  %v473_v58 = vsub.f32 %v6887_v2, %v9219_v14  ;;  %v9227_v9 = vand.u32 4294901760, %v6900_v8  ;;  %v40_v4 = vld [vmem:[%s9209_s1 + $0xa0] sm:$0xff]  ;;  %v41_v14 = vld [vmem:[%s9209_s1 + $0xa8] sm:$0xff] }
  0x1c   :  { %5473 = vmatmul.mubr.f32.gmra.mrb[6].mxu1 %v424_v54  ;;  %5681 = vmatmul.mubr.f32.gmra.mrb[6].mxu0 %v6816_v63  ;;  %v6940_v62 = vand.u32 4294901760, %v138_v5  ;;  %v9228_v54 = vand.u32 4294901760, %v6919_v47  ;;  %v6947_v28 = vand.u32 4294901760, %v141_v3  ;;  %v144_v10 = vsel %vm88_vm0, %v38_v57, 0 }
  0x1d   :  { %5475 = vmatprep.mubr.f32.mxu1 %v434_v45  ;;  %5683 = vmatprep.mubr.f32.mxu0 %v6855_v33  ;;  %v147_v11 = vsel %vm88_vm0, %v39_v1, 0  ;;  %v6957_v59 = vand.u32 4294901760, %v144_v10  ;;  %v464_v45 = vand.u32 4294901760, %v463_v60  ;;  %v9233_v51 = vand.u32 4294901760, %v6931_v24  ;;  %v42_v1 = vld [vmem:[%s9209_s1 + $0xb0] sm:$0xff] }
  0x1e   :  { %9502 = vst [vmem:[#allocation20_spill] sm:$0xff] %v6940_v62  ;;  %9503 = vst [vmem:[#allocation21_spill] sm:$0xff] %v6947_v28  ;;  %v6955_v7 = vsub.f32 %v138_v5, %v6940_v62  ;;  %v6961_v50 = vsub.f32 %v141_v3, %v6947_v28  ;;  %v150_v48 = vsel %vm88_vm0, %v40_v4, 0  ;;  %v483_v57 = vsub.f32 %v6900_v8, %v9227_v9  ;;  %v43_v9 = vld [vmem:[%s9209_s1 + $0xb8] sm:$0xff] }
  0x1f   :  { %9504 = vst [vmem:[#allocation22_spill] sm:$0xff] %v6957_v59  ;;  %v6972_v5 = vand.u32 4294901760, %v147_v11  ;;  %v153_v3 = vsel %vm88_vm0, %v41_v14, 0  ;;  %v474_v4 = vand.u32 4294901760, %v473_v58  ;;  %v6980_v39 = vsub.f32 %v144_v10, %v6957_v59  ;;  %v44_v10 = vld [vmem:[%s9209_s1 + $0xc0] sm:$0xff] }
  0x20   :  { %5476 = vmatmul.mubr.f32.gmra.mrb[8].mxu1 %v444_v46  ;;  %5684 = vmatmul.mubr.f32.gmra.mrb[8].mxu0 %v6858_v36  ;;  %v493_v46 = vsub.f32 %v6919_v47, %v9228_v54  ;;  %v6982_v38 = vand.u32 4294901760, %v150_v48  ;;  %v156_v60 = vsel %vm88_vm0, %v42_v1, 0  ;;  %v503_v14 = vsub.f32 %v6931_v24, %v9233_v51 }
  0x21   :  { %9505 = vst [vmem:[#allocation23_spill] sm:$0xff] %v6972_v5  ;;  %5478 = vmatprep.mubr.f32.mxu1 %v454_v6  ;;  %5686 = vmatprep.mubr.f32.mxu0 %v6872_v55  ;;  %v6992_v6 = vand.u32 4294901760, %v153_v3  ;;  %v484_v54 = vand.u32 4294901760, %v483_v57  ;;  %v9508_v19 = vand.u32 4294901760, %v6955_v7  ;;  %v7002_v59 = vsub.f32 %v147_v11, %v6972_v5 }
  0x22   :  { %9506 = vst [vmem:[#allocation24_spill] sm:$0xff] %v6982_v38  ;;  %v159_v51 = vsel %vm88_vm0, %v43_v9, 0  ;;  %v494_v58 = vand.u32 4294901760, %v493_v46  ;;  %v7010_v62 = vand.u32 4294901760, %v156_v60  ;;  %v162_v11 = vsel %vm88_vm0, %v44_v10, 0  ;;  %v46_v9 = vld [vmem:[%s9209_s1 + $0xd0] sm:$0xff] }
  0x23   :  { %9507 = vst [vmem:[#allocation25_spill] sm:$0xff] %v6992_v6  ;;  %v513_v1 = vsub.f32 %v6955_v7, %v9508_v19  ;;  %v45_v19 = vld [vmem:[%s9209_s1 + $0xc8] sm:$0xff]  ;;  %v504_v57 = vand.u32 4294901760, %v503_v14  ;;  %v7025_v28 = vand.u32 4294901760, %v159_v51  ;;  %v7029_v5 = vand.u32 4294901760, %v162_v11  ;;  %v47_v10 = vld [vmem:[%s9209_s1 + $0xd8] sm:$0xff] }
  0x24   :  { %5479 = vmatmul.mubr.f32.gmra.mrb[10].mxu1 %v464_v45  ;;  %5687 = vmatmul.mubr.f32.gmra.mrb[10].mxu0 %v6881_v61  ;;  %v7008_v45 = vsub.f32 %v150_v48, %v6982_v38  ;;  %9509 = vst [vmem:[#allocation26_spill] sm:$0xff] %v7010_v62  ;;  %v7023_v48 = vsub.f32 %v153_v3, %v6992_v6  ;;  %v165_v26 = vsel %vm88_vm0, %v45_v19, 0  ;;  %v9513_v14 = vand.u32 4294901760, %v6980_v39 }
  0x25   :  { %5481 = vmatprep.mubr.f32.mxu1 %v474_v4  ;;  %5689 = vmatprep.mubr.f32.mxu0 %v6887_v2  ;;  %v9510_v4 = vand.u32 4294901760, %v6961_v50  ;;  %9511 = vst [vmem:[#allocation27_spill] sm:$0xff] %v7025_v28  ;;  %v514_v38 = vand.u32 4294901760, %v513_v1  ;;  %9512 = vst [vmem:[#allocation28_spill] sm:$0xff] %v7029_v5  ;;  %v168_v1 = vsel %vm88_vm0, %v46_v9, 0  ;;  %v7044_v6 = vand.u32 4294901760, %v165_v26 }
  0x26   :  { %v533_v3 = vsub.f32 %v6980_v39, %v9513_v14  ;;  %v7048_v23 = vsub.f32 %v159_v51, %v7025_v28  ;;  %v48_v14 = vld [vmem:[%s9209_s1 + $0xe0] sm:$0xff]  ;;  %v171_v19 = vsel %vm88_vm0, %v47_v10, 0  ;;  %v9518_v28 = vand.u32 4294901760, %v7008_v45 }
  0x27   :  { %v523_v46 = vsub.f32 %v6961_v50, %v9510_v4  ;;  %9514 = vst [vmem:[#allocation29_spill] sm:$0xff] %v7044_v6  ;;  %v7058_v4 = vsub.f32 %v162_v11, %v7029_v5  ;;  %v7072_v11 = vsub.f32 %v165_v26, %v7044_v6  ;;  %v174_v5 = vsel %vm88_vm0, %v48_v14, 0 }
  0x28   :  { %5482 = vmatmul.mubr.f32.gmra.mrb[12].mxu1 %v484_v54  ;;  %5690 = vmatmul.mubr.f32.gmra.mrb[12].mxu0 %v6900_v8  ;;  %v7038_v54 = vsub.f32 %v156_v60, %v7010_v62  ;;  %v9515_v60 = vand.u32 4294901760, %v7002_v59  ;;  %v534_v51 = vand.u32 4294901760, %v533_v3  ;;  %v7079_v0 = vand.u32 4294901760, %v171_v19 }
  0x29   :  { %5484 = vmatprep.mubr.f32.mxu1 %v494_v58  ;;  %5692 = vmatprep.mubr.f32.mxu0 %v6919_v47  ;;  %v524_v58 = vand.u32 4294901760, %v523_v46  ;;  %9516 = vst [vmem:[#allocation30_spill] sm:$0xff] %v7058_v4  ;;  %v7060_v46 = vand.u32 4294901760, %v168_v1  ;;  %9519 = vst [vmem:[#allocation32_spill] sm:$0xff] %v7072_v11  ;;  %v7094_v37 = vand.u32 4294901760, %v174_v5  ;;  %v9528_v27 = vand.u32 4294901760, %v7058_v4 }
  0x2a   :  { %v543_v9 = vsub.f32 %v7002_v59, %v9515_v60  ;;  %v49_v60 = vld [vmem:[%s9209_s1 + $0xe8] sm:$0xff]  ;;  %9521 = vst [vmem:[#allocation33_spill] sm:$0xff] %v7079_v0  ;;  %v9523_v3 = vand.u32 4294901760, %v7038_v54 }
  0x2b   :  { %9517 = vst [vmem:[#allocation31_spill] sm:$0xff] %v7060_v46  ;;  %v7087_v14 = vsub.f32 %v168_v1, %v7060_v46  ;;  %v177_v6 = vsel %vm88_vm0, %v49_v60, 0  ;;  %9524 = vst [vmem:[#allocation35_spill] sm:$0xff] %v7094_v37  ;;  %v52_v1 = vld [vmem:[%s9209_s1 + $0x100] sm:$0xff]  ;;  %v593_v13 = vsub.f32 %v7058_v4, %v9528_v27  ;;  %v53_v27 = vld [vmem:[%s9209_s1 + $0x108] sm:$0xff] }
  0x2c   :  { %5485 = vmatmul.mubr.f32.gmra.mrb[14].mxu1 %v504_v57  ;;  %5693 = vmatmul.mubr.f32.gmra.mrb[14].mxu0 %v6931_v24  ;;  %v553_v57 = vsub.f32 %v7008_v45, %v9518_v28  ;;  %v50_v28 = vld [vmem:[%s9209_s1 + $0xf0] sm:$0xff]  ;;  %v544_v62 = vand.u32 4294901760, %v543_v9  ;;  %v573_v56 = vsub.f32 %v7038_v54, %v9523_v3  ;;  %v7108_v3 = vsub.f32 %v171_v19, %v7079_v0 }
  0x2d   :  { %5487 = vmatprep.mubr.f32.mxu1 %v514_v38  ;;  %5695 = vmatprep.mubr.f32.mxu0 %v6955_v7  ;;  %v9520_v38 = vand.u32 4294901760, %v7023_v48  ;;  %9522 = vst [vmem:[#allocation34_spill] sm:$0xff] %v7087_v14  ;;  %v7110_v46 = vand.u32 4294901760, %v177_v6  ;;  %v9531_v0 = vand.u32 4294901760, %v7072_v11  ;;  %v594_v9 = vand.u32 4294901760, %v593_v13  ;;  %v55_v13 = vld [vmem:[%s9209_s1 + $0x118] sm:$0xff] }
  0x2e   :  { %9526 = vst [vmem:[#allocation36_spill] sm:$0xff] %v7108_v3  ;;  %v574_v19 = vand.u32 4294901760, %v573_v56 }
  0x2f   :  { %v563_v10 = vsub.f32 %v7023_v48, %v9520_v38  ;;  %v554_v38 = vand.u32 4294901760, %v553_v57  ;;  %v9525_v57 = vand.u32 4294901760, %v7048_v23  ;;  %9527 = vst [vmem:[#allocation37_spill] sm:$0xff] %v7110_v46  ;;  %v603_v12 = vsub.f32 %v7072_v11, %v9531_v0 }
  0x30   :  { %5488 = vmatmul.mubr.f32.gmra.mrb[16].mxu1 %v524_v58  ;;  %5696 = vmatmul.mubr.f32.gmra.mrb[16].mxu0 %v6961_v50  ;;  %v51_v58 = vld [vmem:[%s9209_s1 + $0xf8] sm:$0xff]  ;;  %v7136_v56 = vsub.f32 %v177_v6, %v7110_v46  ;;  %v189_v46 = vsel %vm88_vm0, %v53_v27, 0 }
  0x31   :  { %5490 = vmatprep.mubr.f32.mxu1 %v534_v51  ;;  %5698 = vmatprep.mubr.f32.mxu0 %v6980_v39  ;;  %v180_v51 = vsel %vm88_vm0, %v50_v28, 0  ;;  %v564_v60 = vand.u32 4294901760, %v563_v10  ;;  %v583_v26 = vsub.f32 %v7048_v23, %v9525_v57  ;;  %v183_v10 = vsel %vm88_vm0, %v51_v58, 0 }
  0x32   :  { %v186_v28 = vsel %vm88_vm0, %v52_v1, 0  ;;  %v7121_v57 = vsub.f32 %v174_v5, %v7094_v37  ;;  %9532 = vst [vmem:[#allocation40_spill] sm:$0xff] %v7136_v56  ;;  %v7138_v5 = vand.u32 4294901760, %v183_v10  ;;  %v9535_v37 = vand.u32 4294901760, %v7087_v14 }
  0x33   :  { %v7140_v1 = vand.u32 4294901760, %v186_v28  ;;  %v584_v0 = vand.u32 4294901760, %v583_v26  ;;  %v604_v26 = vand.u32 4294901760, %v603_v12  ;;  %v7173_v12 = vand.u32 4294901760, %v189_v46 }
  0x34   :  { %5491 = vmatmul.mubr.f32.gmra.mrb[18].mxu1 %v544_v62  ;;  %5699 = vmatmul.mubr.f32.gmra.mrb[18].mxu0 %v7002_v59  ;;  %9529 = vst [vmem:[#allocation38_spill] sm:$0xff] %v7121_v57  ;;  %v7123_v62 = vand.u32 4294901760, %v180_v51  ;;  %9533 = vst [vmem:[#allocation41_spill] sm:$0xff] %v7138_v5  ;;  %v613_v53 = vsub.f32 %v7087_v14, %v9535_v37  ;;  %v56_v37 = vld [vmem:[%s9209_s1 + $0x120] sm:$0xff]  ;;  %v9543_v41 = vand.u32 4294901760, %v7136_v56 }
  0x35   :  { %5493 = vmatprep.mubr.f32.mxu1 %v554_v38  ;;  %5701 = vmatprep.mubr.f32.mxu0 %v7008_v45  ;;  %v54_v38 = vld [vmem:[%s9209_s1 + $0x110] sm:$0xff]  ;;  %9534 = vst [vmem:[#allocation42_spill] sm:$0xff] %v7140_v1  ;;  %v7167_v27 = vsub.f32 %v186_v28, %v7140_v1  ;;  %9540 = vst [vmem:[#allocation46_spill] sm:$0xff] %v7173_v12  ;;  %v9542_v28 = vand.u32 4294901760, %v7121_v57 }
  0x36   :  { %9530 = vst [vmem:[#allocation39_spill] sm:$0xff] %v7123_v62  ;;  %v7149_v6 = vsub.f32 %v180_v51, %v7123_v62  ;;  %v7164_v62 = vsub.f32 %v183_v10, %v7138_v5  ;;  %v198_v51 = vsel %vm88_vm0, %v56_v37, 0  ;;  %v614_v10 = vand.u32 4294901760, %v613_v53  ;;  %v58_v53 = vld [vmem:[%s9209_s1 + $0x130] sm:$0xff] }
  0x37   :  { %9539 = vst [vmem:[#allocation45_spill] sm:$0xff] %v7167_v27  ;;  %v633_v1 = vsub.f32 %v7121_v57, %v9542_v28  ;;  %v643_v35 = vsub.f32 %v7136_v56, %v9543_v41  ;;  %v7199_v28 = vsub.f32 %v189_v46, %v7173_v12  ;;  %v204_v46 = vsel %vm88_vm0, %v58_v53, 0 }
  0x38   :  { %5494 = vmatmul.mubr.f32.gmra.mrb[20].mxu1 %v564_v60  ;;  %5702 = vmatmul.mubr.f32.gmra.mrb[20].mxu0 %v7023_v48  ;;  %9536 = vst [vmem:[#allocation43_spill] sm:$0xff] %v7149_v6  ;;  %v192_v60 = vsel %vm88_vm0, %v54_v38, 0  ;;  %9538 = vst [vmem:[#allocation44_spill] sm:$0xff] %v7164_v62  ;;  %v57_v38 = vld [vmem:[%s9209_s1 + $0x128] sm:$0xff]  ;;  %v9550_v53 = vand.u32 4294901760, %v7167_v27 }
  0x39   :  { %5496 = vmatprep.mubr.f32.mxu1 %v574_v19  ;;  %5704 = vmatprep.mubr.f32.mxu0 %v7038_v54  ;;  %v9537_v19 = vand.u32 4294901760, %v7108_v3  ;;  %v7175_v44 = vand.u32 4294901760, %v192_v60  ;;  %v201_v5 = vsel %vm88_vm0, %v57_v38, 0  ;;  %v9548_v38 = vand.u32 4294901760, %v7164_v62 }
  0x3a   :  { %v673_v12 = vsub.f32 %v7167_v27, %v9550_v53  ;;  %v61_v53 = vld [vmem:[%s9209_s1 + $0x148] sm:$0xff] }
  0x3b   :  { %v623_v58 = vsub.f32 %v7108_v3, %v9537_v19  ;;  %9541 = vst [vmem:[#allocation47_spill] sm:$0xff] %v7175_v44  ;;  %v195_v19 = vsel %vm88_vm0, %v55_v13, 0  ;;  %v7202_v41 = vsub.f32 %v192_v60, %v7175_v44  ;;  %v634_v13 = vand.u32 4294901760, %v633_v1  ;;  %v60_v60 = vld [vmem:[%s9209_s1 + $0x140] sm:$0xff] }
  0x3c   :  { %5497 = vmatmul.mubr.f32.gmra.mrb[22].mxu1 %v584_v0  ;;  %5705 = vmatmul.mubr.f32.gmra.mrb[22].mxu0 %v7048_v23  ;;  %v9296_v0 = vand.u32 4294901760, %v7149_v6  ;;  %v7189_v34 = vand.u32 4294901760, %v195_v19  ;;  %v663_v1 = vsub.f32 %v7164_v62, %v9548_v38  ;;  %v210_v38 = vsel %vm88_vm0, %v60_v60, 0 }
  0x3d   :  { %5499 = vmatprep.mubr.f32.mxu1 %v594_v9  ;;  %5707 = vmatprep.mubr.f32.mxu0 %v7058_v4  ;;  %v7191_v9 = vand.u32 4294901760, %v198_v51  ;;  %v624_v37 = vand.u32 4294901760, %v623_v58  ;;  %9546 = vst [vmem:[#allocation50_spill] sm:$0xff] %v7202_v41  ;;  %v59_v58 = vld [vmem:[%s9209_s1 + $0x138] sm:$0xff]  ;;  %v674_v60 = vand.u32 4294901760, %v673_v12  ;;  %v213_v12 = vsel %vm88_vm0, %v61_v53, 0 }
  0x3e   :  { %9544 = vst [vmem:[#allocation48_spill] sm:$0xff] %v7189_v34  ;;  %v653_v29 = vsub.f32 %v7149_v6, %v9296_v0  ;;  %v7221_v44 = vsub.f32 %v195_v19, %v7189_v34  ;;  %v7260_v34 = vand.u32 4294901760, %v210_v38  ;;  %v9322_v4 = vand.u32 4294901760, %v6710_v17 }
  0x3f   :  { %9545 = vst [vmem:[#allocation49_spill] sm:$0xff] %v7191_v9  ;;  %v7224_v0 = vsub.f32 %v198_v51, %v7191_v9 }
  0x40   :  { %5500 = vmatmul.mubr.f32.gmra.mrb[24].mxu1 %v604_v26  ;;  %5708 = vmatmul.mubr.f32.gmra.mrb[24].mxu0 %v7072_v11  ;;  %v7208_v26 = vand.u32 4294901760, %v201_v5  ;;  %v207_v11 = vsel %vm88_vm0, %v59_v58, 0  ;;  %v654_v19 = vand.u32 4294901760, %v653_v29  ;;  %v664_v58 = vand.u32 4294901760, %v663_v1  ;;  %9556 = vst [vmem:[#allocation56_spill] sm:$0xff] %v7260_v34 }
  0x41   :  { %5502 = vmatprep.mubr.f32.mxu1 %v614_v10  ;;  %5710 = vmatprep.mubr.f32.mxu0 %v7087_v14  ;;  %v644_v10 = vand.u32 4294901760, %v643_v35  ;;  %9549 = vst [vmem:[#allocation52_spill] sm:$0xff] %v7224_v0  ;;  %v62_v35 = vld [vmem:[%s9209_s1 + $0x150] sm:$0xff]  ;;  %v7248_v14 = vand.u32 4294901760, %v207_v11  ;;  %v9555_v1 = vand.u32 4294901760, %v7202_v41 }
  0x42   :  { %9547 = vst [vmem:[#allocation51_spill] sm:$0xff] %v7208_v26  ;;  %v7235_v51 = vsub.f32 %v201_v5, %v7208_v26  ;;  %v63_v5 = vld [vmem:[%s9209_s1 + $0x158] sm:$0xff]  ;;  %v9554_v26 = vand.u32 4294901760, %v7199_v28 }
  0x43   :  { %9553 = vst [vmem:[#allocation55_spill] sm:$0xff] %v7248_v14 }
  0x44   :  { %5503 = vmatmul.mubr.f32.gmra.mrb[26].mxu1 %v624_v37  ;;  %5711 = vmatmul.mubr.f32.gmra.mrb[26].mxu0 %v7108_v3  ;;  %9551 = vst [vmem:[#allocation53_spill] sm:$0xff] %v7235_v51  ;;  %v7237_v37 = vand.u32 4294901760, %v204_v46  ;;  %v683_v9 = vsub.f32 %v7199_v28, %v9554_v26  ;;  %v219_v26 = vsel %vm88_vm0, %v63_v5, 0  ;;  %v9558_v3 = vand.u32 4294901760, %v7224_v0 }
  0x45   :  { %5505 = vmatprep.mubr.f32.mxu1 %v634_v13  ;;  %5713 = vmatprep.mubr.f32.mxu0 %v7121_v57  ;;  %v693_v13 = vsub.f32 %v7202_v41, %v9555_v1  ;;  %v9557_v57 = vand.u32 4294901760, %v7221_v44  ;;  %v7289_v5 = vand.u32 4294901760, %v213_v12 }
  0x46   :  { %9552 = vst [vmem:[#allocation54_spill] sm:$0xff] %v7237_v37  ;;  %v684_v53 = vand.u32 4294901760, %v683_v9 }
  0x47   :  { %v703_v1 = vsub.f32 %v7221_v44, %v9557_v57  ;;  %v7287_v57 = vsub.f32 %v210_v38, %v7260_v34  ;;  %9561 = vst [vmem:[#allocation59_spill] sm:$0xff] %v7289_v5  ;;  %v694_v29 = vand.u32 4294901760, %v693_v13  ;;  %v7301_v38 = vand.u32 4294901760, %v219_v26 }
  0x48   :  { %5506 = vmatmul.mubr.f32.gmra.mrb[28].mxu1 %v644_v10  ;;  %5714 = vmatmul.mubr.f32.gmra.mrb[28].mxu0 %v7136_v56  ;;  %v7265_v10 = vsub.f32 %v204_v46, %v7237_v37  ;;  %v216_v56 = vsel %vm88_vm0, %v62_v35, 0  ;;  %v64_v46 = vld [vmem:[%s9209_s1 + $0x160] sm:$0xff]  ;;  %v65_v35 = vld [vmem:[%s9209_s1 + $0x168] sm:$0xff]  ;;  %v7312_v9 = vsub.f32 %v213_v12, %v7289_v5 }
  0x49   :  { %5508 = vmatprep.mubr.f32.mxu1 %v654_v19  ;;  %5716 = vmatprep.mubr.f32.mxu0 %v7149_v6  ;;  %v713_v19 = vsub.f32 %v7224_v0, %v9558_v3  ;;  %v7277_v6 = vsub.f32 %v207_v11, %v7248_v14  ;;  %9560 = vst [vmem:[#allocation58_spill] sm:$0xff] %v7287_v57  ;;  %v7291_v3 = vand.u32 4294901760, %v216_v56  ;;  %v66_v11 = vld [vmem:[%s9209_s1 + $0x170] sm:$0xff]  ;;  %9564 = vst [vmem:[#allocation61_spill] sm:$0xff] %v7301_v38 }
  0x4a   :  { %v222_v34 = vsel %vm88_vm0, %v64_v46, 0  ;;  %v225_v37 = vsel %vm88_vm0, %v65_v35, 0  ;;  %v9566_v35 = vand.u32 4294901760, %v7265_v10 }
  0x4b   :  { %9559 = vst [vmem:[#allocation57_spill] sm:$0xff] %v7277_v6  ;;  %9562 = vst [vmem:[#allocation60_spill] sm:$0xff] %v7291_v3  ;;  %v714_v32 = vand.u32 4294901760, %v713_v19  ;;  %v9331_v13 = vand.u32 4294901760, %v7277_v6  ;;  %v7315_v46 = vsub.f32 %v216_v56, %v7291_v3  ;;  %v7331_v56 = vsub.f32 %v219_v26, %v7301_v38 }
  0x4c   :  { %5509 = vmatmul.mubr.f32.gmra.mrb[30].mxu1 %v664_v58  ;;  %5717 = vmatmul.mubr.f32.gmra.mrb[30].mxu0 %v7164_v62  ;;  %v9563_v58 = vand.u32 4294901760, %v7235_v51  ;;  %v9323_v62 = vand.u32 4294901760, %v6708_v16  ;;  %v733_v12 = vsub.f32 %v7265_v10, %v9566_v35  ;;  %v9339_v3 = vand.u32 4294901760, %v7312_v9 }
  0x4d   :  { %5511 = vmatprep.mubr.f32.mxu1 %v674_v60  ;;  %5719 = vmatprep.mubr.f32.mxu0 %v7167_v27  ;;  %v704_v60 = vand.u32 4294901760, %v703_v1  ;;  %v228_v27 = vsel %vm88_vm0, %v66_v11, 0  ;;  %9565 = vst [vmem:[#allocation62_spill] sm:$0xff] %v7315_v46  ;;  %v67_v1 = vld [vmem:[%s9209_s1 + $0x178] sm:$0xff]  ;;  %9567 = vst [vmem:[#allocation63_spill] sm:$0xff] %v7331_v56  ;;  %v7335_v11 = vand.u32 4294901760, %v225_v37  ;;  %v743_v35 = vsub.f32 %v7277_v6, %v9331_v13 }
  0x4e   :  { %v723_v14 = vsub.f32 %v7235_v51, %v9563_v58  ;;  %v7324_v19 = vpack.c.bf16 %v9322_v4, %v9323_v62  ;;  %v68_v58 = vld [vmem:[%s9209_s1 + $0x180] sm:$0xff]  ;;  %v7340_v4 = vand.u32 4294901760, %v228_v27  ;;  %v231_v26 = vsel %vm88_vm0, %v67_v1, 0 }
  0x4f   :  { %9569 = vst [vmem:[#allocation65_spill] sm:$0xff] %v7335_v11  ;;  %v9571_v62 = vand.u32 4294901760, %v7287_v57  ;;  %v7360_v1 = vsub.f32 %v225_v37, %v7335_v11  ;;  %v763_v37 = vsub.f32 %v7312_v9, %v9339_v3 }
  0x50   :  { %5512 = vmatmul.mubr.f32.gmra.mrb[32].mxu1 %v684_v53  ;;  %5720 = vmatmul.mubr.f32.gmra.mrb[32].mxu0 %v7199_v28  ;;  %v7333_v53 = vand.u32 4294901760, %v222_v34  ;;  %9570 = vst [vmem:[#allocation66_spill] sm:$0xff] %v7340_v4  ;;  %v7366_v5 = vsub.f32 %v228_v27, %v7340_v4  ;;  %v9577_v27 = vand.u32 4294901760, %v7315_v46 }
  0x51   :  { %5514 = vmatprep.mubr.f32.mxu1 %v694_v29  ;;  %5722 = vmatprep.mubr.f32.mxu0 %v7202_v41  ;;  %v724_v29 = vand.u32 4294901760, %v723_v14  ;;  %v753_v38 = vsub.f32 %v7287_v57, %v9571_v62  ;;  %v234_v41 = vsel %vm88_vm0, %v68_v58, 0  ;;  %v734_v14 = vand.u32 4294901760, %v733_v12  ;;  %9573 = vst [vmem:[#allocation68_spill] sm:$0xff] %v7360_v1  ;;  %v69_v62 = vld [vmem:[%s9209_s1 + $0x188] sm:$0xff] }
  0x52   :  { %9568 = vst [vmem:[#allocation64_spill] sm:$0xff] %v7333_v53  ;;  %6112 = vmatprep.subr.bf16.mxu0 %v7324_v19  ;;  %9574 = vst [vmem:[#allocation69_spill] sm:$0xff] %v7366_v5  ;;  %v7368_v58 = vand.u32 4294901760, %v231_v26  ;;  %v744_v12 = vand.u32 4294901760, %v743_v35  ;;  %v7373_v13 = vand.u32 4294901760, %v234_v41  ;;  %v773_v4 = vsub.f32 %v7315_v46, %v9577_v27 }
  0x53   :  { %v237_v11 = vsel %vm88_vm0, %v69_v62, 0  ;;  %v9578_v35 = vand.u32 4294901760, %v7331_v56 }
  0x54   :  { %5515 = vmatmul.mubr.f32.gmra.mrb[34].mxu1 %v704_v60  ;;  %5723 = vmatmul.mubr.f32.gmra.mrb[34].mxu0 %v7221_v44  ;;  %v7357_v60 = vsub.f32 %v222_v34, %v7333_v53  ;;  %9575 = vst [vmem:[#allocation70_spill] sm:$0xff] %v7368_v58  ;;  %9576 = vst [vmem:[#allocation71_spill] sm:$0xff] %v7373_v13  ;;  %v754_v34 = vand.u32 4294901760, %v753_v38  ;;  %v7398_v62 = vsub.f32 %v234_v41, %v7373_v13  ;;  %v73_v38 = vld [vmem:[%s9209_s1 + $0x1a8] sm:$0xff]  ;;  %v74_v41 = vld [vmem:[%s9209_s1 + $0x1b0] sm:$0xff] }
  0x55   :  { %5517 = vmatprep.mubr.f32.mxu1 %v714_v32  ;;  %5725 = vmatprep.mubr.f32.mxu0 %v7224_v0  ;;  %v70_v32 = vld [vmem:[%s9209_s1 + $0x190] sm:$0xff]  ;;  %v7392_v0 = vsub.f32 %v231_v26, %v7368_v58  ;;  %v7400_v27 = vand.u32 4294901760, %v237_v11  ;;  %v774_v3 = vand.u32 4294901760, %v773_v4  ;;  %v9584_v4 = vand.u32 4294901760, %v7360_v1 }
  0x56   :  { %9572 = vst [vmem:[#allocation67_spill] sm:$0xff] %v7357_v60  ;;  %9580 = vst [vmem:[#allocation73_spill] sm:$0xff] %v7398_v62 }
  0x57   :  { %9579 = vst [vmem:[#allocation72_spill] sm:$0xff] %v7392_v0  ;;  %9581 = vst [vmem:[#allocation74_spill] sm:$0xff] %v7400_v27 }
  0x58   :  { %5518 = vmatmul.mubr.f32.gmra.mrb[36].mxu1 %v724_v29  ;;  %5726 = vmatmul.mubr.f32.gmra.mrb[36].mxu0 %v7235_v51  ;;  %v783_v29 = vsub.f32 %v7331_v56, %v9578_v35  ;;  %v240_v51 = vsel %vm88_vm0, %v70_v32, 0  ;;  %v72_v35 = vld [vmem:[%s9209_s1 + $0x1a0] sm:$0xff]  ;;  %v764_v32 = vand.u32 4294901760, %v763_v37  ;;  %v803_v37 = vsub.f32 %v7360_v1, %v9584_v4 }
  0x59   :  { %5520 = vmatprep.mubr.f32.mxu1 %v734_v14  ;;  %5728 = vmatprep.mubr.f32.mxu0 %v7265_v10  ;;  %v71_v14 = vld [vmem:[%s9209_s1 + $0x198] sm:$0xff]  ;;  %v7406_v26 = vand.u32 4294901760, %v240_v51  ;;  %v9585_v56 = vand.u32 4294901760, %v7366_v5  ;;  %v249_v4 = vsel %vm88_vm0, %v73_v38, 0  ;;  %v9595_v1 = vand.u32 4294901760, %v6765_v40  ;;  %v77_v40 = vld [vmem:[%s9209_s1 + $0x1c8] sm:$0xff] }
  0x5a   :  { %v784_v53 = vand.u32 4294901760, %v783_v29  ;;  %v243_v58 = vsel %vm88_vm0, %v71_v14, 0  ;;  %v9586_v29 = vand.u32 4294901760, %v6708_v16  ;;  %v252_v14 = vsel %vm88_vm0, %v74_v41, 0 }
  0x5b   :  { %9582 = vst [vmem:[#allocation75_spill] sm:$0xff] %v7406_v26  ;;  %v813_v46 = vsub.f32 %v7366_v5, %v9585_v56  ;;  %v7438_v56 = vsub.f32 %v240_v51, %v7406_v26  ;;  %v75_v51 = vld [vmem:[%s9209_s1 + $0x1b8] sm:$0xff]  ;;  %v7455_v26 = vand.u32 4294901760, %v249_v4 }
  0x5c   :  { %5521 = vmatmul.mubr.f32.gmra.mrb[38].mxu1 %v744_v12  ;;  %5729 = vmatmul.mubr.f32.gmra.mrb[38].mxu0 %v7277_v6  ;;  %v9583_v12 = vand.u32 4294901760, %v7357_v60 }
  0x5d   :  { %5523 = vmatprep.mubr.f32.mxu1 %v754_v34  ;;  %5731 = vmatprep.mubr.f32.mxu0 %v7287_v57  ;;  %v246_v34 = vsel %vm88_vm0, %v72_v35, 0  ;;  %v994_v57 = vsub.f32 %v6708_v16, %v9586_v29  ;;  %9588 = vst [vmem:[#allocation77_spill] sm:$0xff] %v7438_v56  ;;  %v7440_v35 = vand.u32 4294901760, %v243_v58  ;;  %v9589_v16 = vand.u32 4294901760, %v6710_v17 }
  0x5e   :  { %v793_v13 = vsub.f32 %v7357_v60, %v9583_v12  ;;  %v7432_v60 = vsub.f32 %v237_v11, %v7400_v27  ;;  %v9590_v11 = vand.u32 4294901760, %v6742_v30  ;;  %v804_v12 = vand.u32 4294901760, %v803_v37 }
  0x5f   :  { %v995_v6 = vand.u32 4294901760, %v994_v57  ;;  %v1001_v29 = vsub.f32 %v6710_v17, %v9589_v16  ;;  %v7447_v41 = vand.u32 4294901760, %v246_v34  ;;  %v7457_v27 = vand.u32 4294901760, %v252_v14  ;;  %v76_v17 = vld [vmem:[%s9209_s1 + $0x1c0] sm:$0xff] }
  0x60   :  { %9587 = vst [vmem:[#allocation76_spill] sm:$0xff] %v7432_v60  ;;  %5524 = vmatmul.mubr.f32.gmra.mrb[40].mxu1 %v764_v32  ;;  %5732 = vmatmul.mubr.f32.gmra.mrb[40].mxu0 %v7312_v9  ;;  %v794_v38 = vand.u32 4294901760, %v793_v13  ;;  %v9591_v32 = vand.u32 4294901760, %v7392_v0  ;;  %v9592_v13 = vand.u32 4294901760, %v7398_v62  ;;  %v9363_v16 = vand.u32 4294901760, %v7432_v60 }
  0x61   :  { %5526 = vmatprep.mubr.f32.mxu1 %v774_v3  ;;  %5775 = vmatprep.mubr.f32.mxu0 %v9590_v11  ;;  %v1002_v30 = vand.u32 4294901760, %v1001_v29  ;;  %v814_v3 = vand.u32 4294901760, %v813_v46  ;;  %v1007_v11 = vand.u32 4294901760, %v6712_v18  ;;  %v7471_v5 = vsub.f32 %v243_v58, %v7440_v35 }
  0x62   :  { %v823_v57 = vsub.f32 %v7392_v0, %v9591_v32  ;;  %v833_v37 = vsub.f32 %v7398_v62, %v9592_v13  ;;  %v9593_v32 = vand.u32 4294901760, %v6745_v31  ;;  %v255_v29 = vsel %vm88_vm0, %v75_v51, 0 }
  0x63   :  { %9594 = vst [vmem:[#allocation78_spill] sm:$0xff] %v7471_v5  ;;  %v6087_v46 = vpack.c.bf16 %v1002_v30, %v995_v6  ;;  %v7477_v13 = vsub.f32 %v246_v34, %v7447_v41  ;;  %v1008_v31 = vsub.f32 %v6712_v18, %v1007_v11  ;;  %v7484_v58 = vsub.f32 %v249_v4, %v7455_v26  ;;  %v78_v18 = vld [vmem:[%s9209_s1 + $0x1d0] sm:$0xff] }
  0x64   :  { %5527 = vmatmul.mubr.f32.gmra.mrb[42].mxu1 %v784_v53  ;;  %5776 = vmatmul.mubr.f32.vlgmr.msra.gmra.mrb[0].mxu0 %v9593_v32  ;;  %v258_v53 = vsel %vm88_vm0, %v76_v17, 0  ;;  %v1014_v32 = vand.u32 4294901760, %v6716_v20  ;;  %v824_v0 = vand.u32 4294901760, %v823_v57  ;;  %v7487_v6 = vsub.f32 %v252_v14, %v7457_v27 }
  0x65   :  { %5529 = vmatprep.mubr.f32.mxu1 %v794_v38  ;;  %5778 = vmatprep.mubr.f32.mxu0 %v9595_v1  ;;  %9596 = vst [vmem:[#allocation79_spill] sm:$0xff] %v7477_v13  ;;  %9597 = vst [vmem:[#allocation80_spill] sm:$0xff] %v7484_v58  ;;  %v7492_v1 = vand.u32 4294901760, %v255_v29  ;;  %v1009_v34 = vand.u32 4294901760, %v1008_v31  ;;  %v9599_v14 = vand.u32 4294901760, %v6771_v42  ;;  %v834_v38 = vand.u32 4294901760, %v833_v37 }
  0x66   :  { %6114 = vmatpush3.bf16.msra.mxu0 %v7324_v19  ;;  %9598 = vst [vmem:[#allocation81_spill] sm:$0xff] %v7487_v6  ;;  %6088 = vmatprep.subr.bf16.mxu1 %v6087_v46  ;;  %v1015_v19 = vsub.f32 %v6716_v20, %v1014_v32  ;;  %v6115_v4 = vpack.c.bf16 %v1014_v32, %v1007_v11  ;;  %v9367_v57 = vand.u32 4294901760, %v7471_v5  ;;  %v7504_v17 = vand.u32 4294901760, %v258_v53  ;;  %v79_v31 = vld [vmem:[%s9209_s1 + $0x1d8] sm:$0xff] }
  0x67   :  { %6090 = vmatpush3.bf16.msra.mxu1 %v6087_v46  ;;  %v843_v51 = vsub.f32 %v7432_v60, %v9363_v16  ;;  %v9600_v30 = vand.u32 4294901760, %v6774_v43  ;;  %v9601_v20 = vand.u32 4294901760, %v7438_v56  ;;  %v9366_v42 = vand.u32 4294901760, %v7477_v13 }
  0x68   :  { %5530 = vmatmul.mubr.f32.gmra.mrb[44].mxu1 %v804_v12  ;;  %5779 = vmatmul.mubr.f32.gmra.mrb[2].mxu0 %v9599_v14  ;;  %v261_v37 = vsel %vm88_vm0, %v77_v40, 0  ;;  %v1016_v11 = vand.u32 4294901760, %v1015_v19  ;;  %v264_v46 = vsel %vm88_vm0, %v78_v18, 0  ;;  %v9365_v43 = vand.u32 4294901760, %v7487_v6  ;;  %v80_v14 = vld [vmem:[%s9209_s1 + $0x1e0] sm:$0xff] }
  0x69   :  { %5532 = vmatprep.mubr.f32.mxu1 %v814_v3  ;;  %5781 = vmatprep.mubr.f32.mxu0 %v9600_v30  ;;  %v853_v12 = vsub.f32 %v7438_v56, %v9601_v20  ;;  %v9364_v3 = vand.u32 4294901760, %v7484_v58  ;;  %v7520_v32 = vsub.f32 %v255_v29, %v7492_v1  ;;  %v9603_v18 = vand.u32 4294901760, %v6788_v49 }
  0x6a   :  { %6116 = vmatprep.subr.bf16.mxu0 %v6115_v4  ;;  %v6091_v40 = vpack.c.bf16 %v1016_v11, %v1009_v34  ;;  %v844_v19 = vand.u32 4294901760, %v843_v51  ;;  %v863_v30 = vsub.f32 %v7471_v5, %v9367_v57  ;;  %v7531_v20 = vsub.f32 %v258_v53, %v7504_v17  ;;  %v81_v53 = vld [vmem:[%s9209_s1 + $0x1e8] sm:$0xff] }
  0x6b   :  { %9602 = vst [vmem:[#allocation82_spill] sm:$0xff] %v7520_v32  ;;  %6118 = vmatpush3.bf16.msra.mxu0 %v6115_v4  ;;  %v7533_v29 = vand.u32 4294901760, %v261_v37  ;;  %v9605_v16 = vand.u32 4294901760, %v6793_v52  ;;  %v854_v34 = vand.u32 4294901760, %v853_v12  ;;  %v873_v49 = vsub.f32 %v7477_v13, %v9366_v42  ;;  %v82_v12 = vld [vmem:[%s9209_s1 + $0x1f0] sm:$0xff] }
  0x6c   :  { %5533 = vmatmul.mubr.f32.gmra.mrb[46].mxu1 %v824_v0  ;;  %5782 = vmatmul.mubr.f32.gmra.mrb[4].mxu0 %v9603_v18  ;;  %9604 = vst [vmem:[#allocation83_spill] sm:$0xff] %v7531_v20  ;;  %v7540_v0 = vand.u32 4294901760, %v264_v46  ;;  %v267_v4 = vsel %vm88_vm0, %v79_v31, 0  ;;  %v270_v51 = vsel %vm88_vm0, %v80_v14, 0  ;;  %v883_v52 = vsub.f32 %v7484_v58, %v9364_v3 }
  0x6d   :  { %5535 = vmatprep.mubr.f32.mxu1 %v834_v38  ;;  %5784 = vmatprep.mubr.f32.mxu0 %v9605_v16  ;;  %v893_v16 = vsub.f32 %v7487_v6, %v9365_v43  ;;  %v9376_v38 = vand.u32 4294901760, %v7520_v32  ;;  %v9606_v11 = vand.u32 4294901760, %v6816_v63  ;;  %v864_v31 = vand.u32 4294901760, %v863_v30 }
  0x6e   :  { %6092 = vmatprep.subr.bf16.mxu1 %v6091_v40  ;;  %6120 = vmatprep.subr.bf16.mxu0 %v6706_v15  ;;  %v9368_v14 = vand.u32 4294901760, %v7531_v20  ;;  %v7562_v18 = vsub.f32 %v261_v37, %v7533_v29  ;;  %v7564_v3 = vand.u32 4294901760, %v267_v4  ;;  %v9608_v43 = vand.u32 4294901760, %v6855_v33  ;;  %v83_v37 = vld [vmem:[%s9209_s1 + $0x1f8] sm:$0xff] }
  0x6f   :  { %6094 = vmatpush3.bf16.msra.mxu1 %v6091_v40  ;;  %v874_v42 = vand.u32 4294901760, %v873_v49  ;;  %v7569_v57 = vsub.f32 %v264_v46, %v7540_v0  ;;  %v7571_v40 = vand.u32 4294901760, %v270_v51  ;;  %v273_v63 = vsel %vm88_vm0, %v81_v53, 0 }
  0x70   :  { %5536 = vmatmul.mubr.f32.gmra.mrb[48].mxu1 %v844_v19  ;;  %5785 = vmatmul.mubr.f32.gmra.mrb[6].mxu0 %v9606_v11  ;;  %9607 = vst [vmem:[#allocation84_spill] sm:$0xff] %v7562_v18  ;;  %v276_v19 = vsel %vm88_vm0, %v82_v12, 0  ;;  %v884_v30 = vand.u32 4294901760, %v883_v52  ;;  %v903_v33 = vsub.f32 %v7520_v32, %v9376_v38  ;;  %v9610_v46 = vand.u32 4294901760, %v6858_v36  ;;  %v9694_v38 = vld [vmem:[#allocation69_spill] sm:$0xff] }
  0x71   :  { %5538 = vmatprep.mubr.f32.mxu1 %v854_v34  ;;  %5787 = vmatprep.mubr.f32.mxu0 %v9608_v43  ;;  %9609 = vst [vmem:[#allocation85_spill] sm:$0xff] %v7569_v57  ;;  %v894_v34 = vand.u32 4294901760, %v893_v16  ;;  %v913_v43 = vsub.f32 %v7531_v20, %v9368_v14  ;;  %v9375_v49 = vand.u32 4294901760, %v7562_v18  ;;  %v7589_v53 = vsub.f32 %v267_v4, %v7564_v3 }
  0x72   :  { %6319 = vmatprep.subr.bf16.mxu1 %v6731_v25  ;;  %v7591_v12 = vand.u32 4294901760, %v273_v63  ;;  %v9613_v52 = vand.u32 4294901760, %v6872_v55  ;;  %v9374_v16 = vand.u32 4294901760, %v7569_v57  ;;  %v7597_v36 = vsub.f32 %v270_v51, %v7571_v40 }
  0x73   :  { %9611 = vst [vmem:[#allocation86_spill] sm:$0xff] %v7589_v53  ;;  %v7599_v11 = vand.u32 4294901760, %v276_v19  ;;  %v9616_v4 = vand.u32 4294901760, %v6881_v61  ;;  %v9373_v55 = vand.u32 4294901760, %v7589_v53  ;;  %v9617_v14 = vand.u32 4294901760, %v6887_v2 }
  0x74   :  { %5539 = vmatmul.mubr.f32.gmra.mrb[50].mxu1 %v864_v31  ;;  %5788 = vmatmul.mubr.f32.gmra.mrb[8].mxu0 %v9610_v46  ;;  %9612 = vst [vmem:[#allocation87_spill] sm:$0xff] %v7591_v12  ;;  %9614 = vst [vmem:[#allocation88_spill] sm:$0xff] %v7597_v36  ;;  %v279_v31 = vsel %vm88_vm0, %v83_v37, 0  ;;  %v904_v46 = vand.u32 4294901760, %v903_v33  ;;  %v914_v37 = vand.u32 4294901760, %v913_v43  ;;  %v933_v61 = vsub.f32 %v7569_v57, %v9374_v16  ;;  %v9688_v16 = vld [vmem:[#allocation67_spill] sm:$0xff] }
  0x75   :  { %5541 = vmatprep.mubr.f32.mxu1 %v874_v42  ;;  %5790 = vmatprep.mubr.f32.mxu0 %v9613_v52  ;;  %9615 = vst [vmem:[#allocation89_spill] sm:$0xff] %v7599_v11  ;;  %v923_v42 = vsub.f32 %v7562_v18, %v9375_v49  ;;  %v7609_v52 = vsub.f32 %v273_v63, %v7591_v12  ;;  %v7611_v51 = vand.u32 4294901760, %v279_v31  ;;  %v9619_v63 = vand.u32 4294901760, %v6900_v8  ;;  %v9691_v49 = vld [vmem:[#allocation68_spill] sm:$0xff] }
  0x76   :  { %v7620_v33 = vsub.f32 %v276_v19, %v7599_v11  ;;  %v943_v2 = vsub.f32 %v7589_v53, %v9373_v55  ;;  %v9620_v43 = vand.u32 4294901760, %v6919_v47  ;;  %v934_v19 = vand.u32 4294901760, %v933_v61  ;;  %v9685_v55 = vld [vmem:[#allocation63_spill] sm:$0xff] }
  0x77   :  { %v9622_v47 = vand.u32 4294901760, %v6955_v7 }
  0x78   :  { %5542 = vmatmul.mubr.f32.gmra.mrb[52].mxu1 %v884_v30  ;;  %5791 = vmatmul.mubr.f32.gmra.mrb[10].mxu0 %v9616_v4  ;;  %v9372_v30 = vand.u32 4294901760, %v7597_v36  ;;  %9618 = vst [vmem:[#allocation90_spill] sm:$0xff] %v7620_v33  ;;  %v924_v4 = vand.u32 4294901760, %v923_v42  ;;  %v9621_v42 = vand.u32 4294901760, %v6931_v24  ;;  %v9623_v24 = vand.u32 4294901760, %v6961_v50 }
  0x79   :  { %5544 = vmatprep.mubr.f32.mxu1 %v894_v34  ;;  %5793 = vmatprep.mubr.f32.mxu0 %v9617_v14  ;;  %v9371_v14 = vand.u32 4294901760, %v7609_v52  ;;  %v7629_v34 = vsub.f32 %v279_v31, %v7611_v51  ;;  %v9627_v50 = vand.u32 4294901760, %v7023_v48  ;;  %v9634_v48 = vld [vmem:[#allocation7_spill] sm:$0xff] }
  0x7a   :  { %v953_v8 = vsub.f32 %v7597_v36, %v9372_v30  ;;  %v9682_v30 = vld [vmem:[#allocation62_spill] sm:$0xff] }
  0x7b   :  { %v963_v31 = vsub.f32 %v7609_v52, %v9371_v14  ;;  %v9677_v14 = vld [vmem:[#allocation58_spill] sm:$0xff] }
  0x7c   :  { %5545 = vmatmul.mubr.f32.gmra.mrb[54].mxu1 %v904_v46  ;;  %5794 = vmatmul.mubr.f32.gmra.mrb[12].mxu0 %v9619_v63  ;;  %v9370_v46 = vand.u32 4294901760, %v7620_v33  ;;  %v944_v63 = vand.u32 4294901760, %v943_v2  ;;  %v954_v61 = vand.u32 4294901760, %v953_v8  ;;  %v9625_v8 = vand.u32 4294901760, %v7002_v59  ;;  %v9630_v59 = vld [vmem:[#allocation6_spill] sm:$0xff] }
  0x7d   :  { %5547 = vmatprep.mubr.f32.mxu1 %v914_v37  ;;  %5796 = vmatprep.mubr.f32.mxu0 %v9620_v43  ;;  %v9369_v37 = vand.u32 4294901760, %v7629_v34 }
  0x7e   :  { %v973_v43 = vsub.f32 %v7620_v33, %v9370_v46  ;;  %v9674_v46 = vld [vmem:[#allocation57_spill] sm:$0xff] }
  0x7f   :  { %v983_v2 = vsub.f32 %v7629_v34, %v9369_v37  ;;  %v9669_v37 = vld [vmem:[#allocation53_spill] sm:$0xff] }
  0x80   :  { %5548 = vmatmul.mubr.f32.gmra.mrb[56].mxu1 %v924_v4  ;;  %5797 = vmatmul.mubr.f32.gmra.mrb[14].mxu0 %v9621_v42  ;;  %v964_v4 = vand.u32 4294901760, %v963_v31  ;;  %v974_v7 = vand.u32 4294901760, %v973_v43  ;;  %v9628_v31 = vand.u32 4294901760, %v7038_v54  ;;  %v9635_v43 = vld [vmem:[#allocation32_spill] sm:$0xff] }
  0x81   :  { %5550 = vmatprep.mubr.f32.mxu1 %v934_v19  ;;  %5799 = vmatprep.mubr.f32.mxu0 %v9622_v47  ;;  %v9624_v19 = vand.u32 4294901760, %v6980_v39  ;;  %v984_v42 = vand.u32 4294901760, %v983_v2  ;;  %v9629_v39 = vand.u32 4294901760, %v7048_v23  ;;  %v9631_v47 = vld [vmem:[#allocation30_spill] sm:$0xff]  ;;  %v9637_v54 = vld [vmem:[#allocation8_spill] sm:$0xff]  ;;  %v9640_v23 = vld [vmem:[#allocation9_spill] sm:$0xff] }
  0x84   :  { %5551 = vmatmul.mubr.f32.gmra.mrb[58].mxu1 %v944_v63  ;;  %5800 = vmatmul.mubr.f32.gmra.mrb[16].mxu0 %v9623_v24  ;;  %v9626_v63 = vand.u32 4294901760, %v7008_v45  ;;  %v9633_v45 = vld [vmem:[#allocation5_spill] sm:$0xff]  ;;  %v9636_v24 = vand.u32 4294901760, %v9635_v43  ;;  %v9653_v43 = vld [vmem:[#allocation44_spill] sm:$0xff] }
  0x85   :  { %5553 = vmatprep.mubr.f32.mxu1 %v954_v61  ;;  %5802 = vmatprep.mubr.f32.mxu0 %v9624_v19  ;;  %v9632_v61 = vand.u32 4294901760, %v9631_v47  ;;  %v9641_v19 = vld [vmem:[#allocation36_spill] sm:$0xff]  ;;  %v9650_v47 = vld [vmem:[#allocation43_spill] sm:$0xff] }
  0x88   :  { %5554 = vmatmul.mubr.f32.gmra.mrb[60].mxu1 %v964_v4  ;;  %5803 = vmatmul.mubr.f32.gmra.mrb[18].mxu0 %v9625_v8  ;;  %v9638_v4 = vld [vmem:[#allocation34_spill] sm:$0xff] }
  0x89   :  { %5556 = vmatprep.mubr.f32.mxu1 %v974_v7  ;;  %5805 = vmatprep.mubr.f32.mxu0 %v9626_v63  ;;  %v9639_v2 = vand.u32 4294901760, %v9638_v4  ;;  %v9642_v7 = vand.u32 4294901760, %v9641_v19  ;;  %v9644_v8 = vld [vmem:[#allocation38_spill] sm:$0xff]  ;;  %v9646_v63 = vld [vmem:[#allocation11_spill] sm:$0xff] }
  0x8a   :  { %v9655_v4 = vld [vmem:[#allocation14_spill] sm:$0xff] }
  0x8c   :  { %5557 = vmatmul.mubr.f32.gmra.mrb[62].mxu1 %v984_v42  ;;  %5806 = vmatmul.mubr.f32.gmra.mrb[20].mxu0 %v9627_v50  ;;  %v9645_v42 = vand.u32 4294901760, %v9644_v8  ;;  %v9647_v50 = vld [vmem:[#allocation40_spill] sm:$0xff]  ;;  %v9659_v8 = vand.u32 4294901760, %v7199_v28  ;;  %v9670_v28 = vand.u32 4294901760, %v9669_v37  ;;  %v9680_v37 = vand.u32 4294901760, %v7312_v9 }
  0x8d   :  { %5567 = vmatprep.mubr.f32.mxu1 %v6718_v21  ;;  %5808 = vmatprep.mubr.f32.mxu0 %v9628_v31  ;;  %v9648_v31 = vand.u32 4294901760, %v9647_v50  ;;  %v9661_v50 = vld [vmem:[#allocation50_spill] sm:$0xff]  ;;  %v9692_v9 = vand.u32 4294901760, %v9691_v49  ;;  %v9699_v49 = vld [vmem:[#allocation31_spill] sm:$0xff] }
  0x90   :  { %5568 = vmatmul.mubr.f32.vlgmr.msra.gmra.mrb[0].mxu1 %v6720_v22  ;;  %5809 = vmatmul.mubr.f32.gmra.mrb[22].mxu0 %v9629_v39  ;;  %v9649_v39 = vld [vmem:[#allocation12_spill] sm:$0xff] }
  0x91   :  { %5570 = vmatprep.mubr.f32.mxu1 %v9630_v59  ;;  %5811 = vmatprep.mubr.f32.mxu0 %v9632_v61  ;;  %v9651_v61 = vand.u32 4294901760, %v9650_v47  ;;  %v9663_v47 = vld [vmem:[#allocation17_spill] sm:$0xff] }
  0x92   :  { %6321 = vmatpush3.bf16.msra.mxu1 %v6731_v25  ;;  %v9643_v25 = vld [vmem:[#allocation10_spill] sm:$0xff] }
  0x93   :  { %6320 = vmatprep.subr.bf16.mxu1 %v9633_v45 }
  0x94   :  { %5571 = vmatmul.mubr.f32.gmra.mrb[2].mxu1 %v9634_v48  ;;  %5812 = vmatmul.mubr.f32.gmra.mrb[24].mxu0 %v9636_v24  ;;  %v9654_v24 = vand.u32 4294901760, %v9653_v43  ;;  %v9665_v43 = vld [vmem:[#allocation18_spill] sm:$0xff] }
  0x95   :  { %5573 = vmatprep.mubr.f32.mxu1 %v9637_v54  ;;  %5814 = vmatprep.mubr.f32.mxu0 %v9639_v2  ;;  %v9656_v2 = vld [vmem:[#allocation45_spill] sm:$0xff] }
  0x96   :  { %6322 = vmatpush3.bf16.msra.mxu1 %v9633_v45  ;;  %v9652_v45 = vld [vmem:[#allocation13_spill] sm:$0xff]  ;;  %v9657_v19 = vand.u32 4294901760, %v9656_v2 }
  0x98   :  { %5574 = vmatmul.mubr.f32.gmra.mrb[4].mxu1 %v9640_v23  ;;  %5815 = vmatmul.mubr.f32.gmra.mrb[26].mxu0 %v9642_v7  ;;  %v9658_v7 = vld [vmem:[#allocation15_spill] sm:$0xff] }
  0x99   :  { %5576 = vmatprep.mubr.f32.mxu1 %v9643_v25  ;;  %5817 = vmatprep.mubr.f32.mxu0 %v9645_v42  ;;  %v9660_v42 = vld [vmem:[#allocation16_spill] sm:$0xff] }
  0x9c   :  { %5577 = vmatmul.mubr.f32.gmra.mrb[6].mxu1 %v9646_v63  ;;  %5818 = vmatmul.mubr.f32.gmra.mrb[28].mxu0 %v9648_v31  ;;  %v9662_v31 = vand.u32 4294901760, %v9661_v50  ;;  %v9672_v50 = vand.u32 4294901760, %v7265_v10  ;;  %v9683_v10 = vand.u32 4294901760, %v9682_v30  ;;  %v9695_v30 = vand.u32 4294901760, %v9694_v38  ;;  %v3492_v38 = vld [vmem:[%s9210_s2 + $0x88] sm:$0xff] }
  0x9d   :  { %5579 = vmatprep.mubr.f32.mxu1 %v9649_v39  ;;  %5820 = vmatprep.mubr.f32.mxu0 %v9651_v61  ;;  %v9664_v61 = vand.u32 4294901760, %v7221_v44  ;;  %v9675_v44 = vand.u32 4294901760, %v9674_v46  ;;  %v9686_v46 = vand.u32 4294901760, %v9685_v55 }
  0xa0   :  { %5580 = vmatmul.mubr.f32.gmra.mrb[8].mxu1 %v9652_v45  ;;  %5821 = vmatmul.mubr.f32.gmra.mrb[30].mxu0 %v9654_v24  ;;  %v9666_v24 = vld [vmem:[#allocation52_spill] sm:$0xff] }
  0xa1   :  { %5582 = vmatprep.mubr.f32.mxu1 %v9655_v4  ;;  %5823 = vmatprep.mubr.f32.mxu0 %v9657_v19  ;;  %v9667_v2 = vand.u32 4294901760, %v9666_v24  ;;  %v9668_v19 = vld [vmem:[#allocation19_spill] sm:$0xff]  ;;  %v9678_v24 = vand.u32 4294901760, %v9677_v14  ;;  %v9689_v14 = vand.u32 4294901760, %v9688_v16  ;;  %v9696_v16 = vld [vmem:[#allocation29_spill] sm:$0xff] }
  0xa4   :  { %5583 = vmatmul.mubr.f32.gmra.mrb[10].mxu1 %v9658_v7  ;;  %5824 = vmatmul.mubr.f32.gmra.mrb[32].mxu0 %v9659_v8  ;;  %v9671_v8 = vld [vmem:[#allocation20_spill] sm:$0xff] }
  0xa5   :  { %5585 = vmatprep.mubr.f32.mxu1 %v9660_v42  ;;  %5826 = vmatprep.mubr.f32.mxu0 %v9662_v31  ;;  %v9673_v31 = vld [vmem:[#allocation21_spill] sm:$0xff] }
  0xa8   :  { %5586 = vmatmul.mubr.f32.gmra.mrb[12].mxu1 %v9663_v47  ;;  %5827 = vmatmul.mubr.f32.gmra.mrb[34].mxu0 %v9664_v61  ;;  %v9676_v61 = vld [vmem:[#allocation22_spill] sm:$0xff] }
  0xa9   :  { %5588 = vmatprep.mubr.f32.mxu1 %v9665_v43  ;;  %5829 = vmatprep.mubr.f32.mxu0 %v9667_v2  ;;  %v9679_v2 = vld [vmem:[#allocation23_spill] sm:$0xff] }
  0xac   :  { %5589 = vmatmul.mubr.f32.gmra.mrb[14].mxu1 %v9668_v19  ;;  %5830 = vmatmul.mubr.f32.gmra.mrb[36].mxu0 %v9670_v28  ;;  %v9681_v28 = vld [vmem:[#allocation24_spill] sm:$0xff] }
  0xad   :  { %5591 = vmatprep.mubr.f32.mxu1 %v9671_v8  ;;  %5832 = vmatprep.mubr.f32.mxu0 %v9672_v50  ;;  %v9684_v50 = vld [vmem:[#allocation25_spill] sm:$0xff] }
  0xb0   :  { %5592 = vmatmul.mubr.f32.gmra.mrb[16].mxu1 %v9673_v31  ;;  %5833 = vmatmul.mubr.f32.gmra.mrb[38].mxu0 %v9675_v44  ;;  %v9687_v44 = vld [vmem:[#allocation26_spill] sm:$0xff] }
  0xb1   :  { %5594 = vmatprep.mubr.f32.mxu1 %v9676_v61  ;;  %5835 = vmatprep.mubr.f32.mxu0 %v9678_v24  ;;  %v9690_v24 = vld [vmem:[#allocation27_spill] sm:$0xff] }
  0xb4   :  { %5595 = vmatmul.mubr.f32.gmra.mrb[18].mxu1 %v9679_v2  ;;  %5836 = vmatmul.mubr.f32.gmra.mrb[40].mxu0 %v9680_v37  ;;  %v9693_v37 = vld [vmem:[#allocation28_spill] sm:$0xff] }
  0xb5   :  { %5597 = vmatprep.mubr.f32.mxu1 %v9681_v28  ;;  %5838 = vmatprep.mubr.f32.mxu0 %v9683_v10  ;;  %v3491_v10 = vld [vmem:[%s9210_s2 + $0x80] sm:$0xff] }
  0xb8   :  { %5598 = vmatmul.mubr.f32.gmra.mrb[20].mxu1 %v9684_v50  ;;  %5839 = vmatmul.mubr.f32.gmra.mrb[42].mxu0 %v9686_v46  ;;  %v6646_v46 = vmov 0  }
  0xb9   :  { %5600 = vmatprep.mubr.f32.mxu1 %v9687_v44  ;;  %5841 = vmatprep.mubr.f32.mxu0 %v9689_v14  ;;  %v9697_v14 = vld [vmem:[#allocation72_spill] sm:$0xff] }
  0xba   :  { %6644 = vset.pattern.permute.xlu0 %v6646_v46  ;;  %6645 = vset.pattern.permute.xlu1 %v6646_v46  ;;  %v9702_v46 = vand.u32 4294901760, %v7432_v60  ;;  %v3507_v60 = vld [vmem:[%s9210_s2 + $0x100] sm:$0xff] }
  0xbb   :  { %3621 = vperm.xlu0 %6644, %v3491_v10   ;;  %v9701_v10 = vld [vmem:[#allocation33_spill] sm:$0xff] }
  0xbc   :  { %5601 = vmatmul.mubr.f32.gmra.mrb[22].mxu1 %v9690_v24  ;;  %5842 = vmatmul.mubr.f32.gmra.mrb[44].mxu0 %v9692_v9  ;;  %v9698_v24 = vand.u32 4294901760, %v9697_v14  ;;  %v9700_v9 = vand.u32 4294901760, %v7398_v62  ;;  %v9704_v62 = vand.u32 4294901760, %v7438_v56  ;;  %v3475_v14 = vld [vmem:[%s9210_s2] sm:$0xff]  ;;  %v9708_v56 = vand.u32 4294901760, %v7477_v13 }
  0xbd   :  { %5603 = vmatprep.mubr.f32.mxu1 %v9693_v37  ;;  %5844 = vmatprep.mubr.f32.mxu0 %v9695_v30  ;;  %v3523_v30 = vld [vmem:[%s9210_s2 + $0x180] sm:$0xff]  ;;  %v9712_v13 = vand.u32 4294901760, %v7487_v6  ;;  %v9716_v6 = vand.u32 4294901760, %v7531_v20  ;;  %v9720_v20 = vand.u32 4294901760, %v7569_v57  ;;  %v9724_v57 = vand.u32 4294901760, %v7597_v36 }
  0xbe   :  { %3781 = vperm.xlu1 %6645, %v3523_v30   ;;  %v9706_v30 = vand.u32 4294901760, %v7471_v5  ;;  %v3493_v5 = vld [vmem:[%s9210_s2 + $0x90] sm:$0xff]  ;;  %v9728_v36 = vand.u32 4294901760, %v7620_v33  ;;  %v3527_v33 = vld [vmem:[%s9210_s2 + $0x1a0] sm:$0xff] }
  0xbf   :  { %3626 = vperm.xlu0 %6644, %v3492_v38   ;;  %v9705_v38 = vld [vmem:[#allocation37_spill] sm:$0xff] }
  0xc0   :  { %5604 = vmatmul.mubr.f32.gmra.mrb[24].mxu1 %v9696_v16  ;;  %5845 = vmatmul.mubr.f32.gmra.mrb[46].mxu0 %v9698_v24  ;;  %v9703_v24 = vld [vmem:[#allocation35_spill] sm:$0xff] }
  0xc1   :  { %5606 = vmatprep.mubr.f32.mxu1 %v9699_v49  ;;  %5847 = vmatprep.mubr.f32.mxu0 %v9700_v9  ;;  %v3524_v9 = vld [vmem:[%s9210_s2 + $0x188] sm:$0xff] }
  0xc2   :  { %3786 = vperm.xlu1 %6645, %v3524_v9   ;;  %v9710_v9 = vand.u32 4294901760, %v7484_v58  ;;  %v3525_v58 = vld [vmem:[%s9210_s2 + $0x190] sm:$0xff] }
  0xc3   :  { %3541 = vperm.xlu0 %6644, %v3475_v14   ;;  %v9709_v14 = vld [vmem:[#allocation41_spill] sm:$0xff] }
  0xc4   :  { %5607 = vmatmul.mubr.f32.gmra.mrb[26].mxu1 %v9701_v10  ;;  %5848 = vmatmul.mubr.f32.gmra.mrb[48].mxu0 %v9702_v46  ;;  %v9707_v46 = vld [vmem:[#allocation39_spill] sm:$0xff] }
  0xc5   :  { %5609 = vmatprep.mubr.f32.mxu1 %v9703_v24  ;;  %5850 = vmatprep.mubr.f32.mxu0 %v9704_v62  ;;  %v3476_v62 = vld [vmem:[%s9210_s2 + $0x8] sm:$0xff] }
  0xc6   :  { %3546 = vperm.xlu1 %6645, %v3476_v62   ;;  %v9714_v62 = vand.u32 4294901760, %v7520_v32  ;;  %v3477_v32 = vld [vmem:[%s9210_s2 + $0x10] sm:$0xff] }
  0xc7   :  { %3701 = vperm.xlu0 %6644, %v3507_v60   ;;  %v9713_v60 = vld [vmem:[#allocation46_spill] sm:$0xff] }
  0xc8   :  { %5610 = vmatmul.mubr.f32.gmra.mrb[28].mxu1 %v9705_v38  ;;  %5851 = vmatmul.mubr.f32.gmra.mrb[50].mxu0 %v9706_v30  ;;  %v9711_v30 = vld [vmem:[#allocation42_spill] sm:$0xff] }
  0xc9   :  { %5612 = vmatprep.mubr.f32.mxu1 %v9707_v46  ;;  %5853 = vmatprep.mubr.f32.mxu0 %v9708_v56  ;;  %v3508_v56 = vld [vmem:[%s9210_s2 + $0x108] sm:$0xff] }
  0xca   :  { %3706 = vperm.xlu1 %6645, %v3508_v56   ;;  %v9718_v56 = vand.u32 4294901760, %v7562_v18  ;;  %v3509_v18 = vld [vmem:[%s9210_s2 + $0x110] sm:$0xff] }
  0xcb   :  { %3631 = vperm.xlu0 %6644, %v3493_v5   ;;  %v9717_v5 = vld [vmem:[#allocation48_spill] sm:$0xff] }
  0xcc   :  { %5613 = vmatmul.mubr.f32.gmra.mrb[30].mxu1 %v9709_v14  ;;  %5854 = vmatmul.mubr.f32.gmra.mrb[52].mxu0 %v9710_v9  ;;  %v9715_v9 = vld [vmem:[#allocation47_spill] sm:$0xff] }
  0xcd   :  { %5615 = vmatprep.mubr.f32.mxu1 %v9711_v30  ;;  %5856 = vmatprep.mubr.f32.mxu0 %v9712_v13  ;;  %v3494_v13 = vld [vmem:[%s9210_s2 + $0x98] sm:$0xff] }
  0xce   :  { %3636 = vperm.xlu1 %6645, %v3494_v13   ;;  %v9722_v13 = vand.u32 4294901760, %v7589_v53  ;;  %v3495_v53 = vld [vmem:[%s9210_s2 + $0xa0] sm:$0xff] }
  0xcf   :  { %3791 = vperm.xlu0 %6644, %v3525_v58   ;;  %v9721_v58 = vld [vmem:[#allocation51_spill] sm:$0xff] }
  0xd0   :  { %5616 = vmatmul.mubr.f32.gmra.mrb[32].mxu1 %v9713_v60  ;;  %5857 = vmatmul.mubr.f32.gmra.mrb[54].mxu0 %v9714_v62  ;;  %v9719_v62 = vld [vmem:[#allocation49_spill] sm:$0xff] }
  0xd1   :  { %5618 = vmatprep.mubr.f32.mxu1 %v9715_v9  ;;  %5859 = vmatprep.mubr.f32.mxu0 %v9716_v6  ;;  %v3526_v6 = vld [vmem:[%s9210_s2 + $0x198] sm:$0xff] }
  0xd2   :  { %3796 = vperm.xlu1 %6645, %v3526_v6   ;;  %v9726_v6 = vand.u32 4294901760, %v7609_v52 }
  0xd3   :  { %3551 = vperm.xlu0 %6644, %v3477_v32   ;;  %v9725_v32 = vld [vmem:[#allocation55_spill] sm:$0xff] }
  0xd4   :  { %5619 = vmatmul.mubr.f32.gmra.mrb[34].mxu1 %v9717_v5  ;;  %5860 = vmatmul.mubr.f32.gmra.mrb[56].mxu0 %v9718_v56  ;;  %v9723_v56 = vld [vmem:[#allocation54_spill] sm:$0xff] }
  0xd5   :  { %5621 = vmatprep.mubr.f32.mxu1 %v9719_v62  ;;  %5862 = vmatprep.mubr.f32.mxu0 %v9720_v20  ;;  %v3478_v20 = vld [vmem:[%s9210_s2 + $0x18] sm:$0xff] }
  0xd6   :  { %3556 = vperm.xlu1 %6645, %v3478_v20   ;;  %v9730_v20 = vand.u32 4294901760, %v7629_v34 }
  0xd7   :  { %3711 = vperm.xlu0 %6644, %v3509_v18   ;;  %v9729_v18 = vld [vmem:[#allocation59_spill] sm:$0xff] }
  0xd8   :  { %5622 = vmatmul.mubr.f32.gmra.mrb[36].mxu1 %v9721_v58  ;;  %5863 = vmatmul.mubr.f32.gmra.mrb[58].mxu0 %v9722_v13  ;;  %v9727_v13 = vld [vmem:[#allocation56_spill] sm:$0xff] }
  0xd9   :  { %5624 = vmatprep.mubr.f32.mxu1 %v9723_v56  ;;  %5865 = vmatprep.mubr.f32.mxu0 %v9724_v57  ;;  %v3510_v57 = vld [vmem:[%s9210_s2 + $0x118] sm:$0xff] }
  0xda   :  { %3716 = vperm.xlu1 %6645, %v3510_v57   ;;  %v9733_v57 = vld [vmem:[#allocation64_spill] sm:$0xff] }
  0xdb   :  { %3641 = vperm.xlu0 %6644, %v3495_v53   ;;  %v9732_v53 = vld [vmem:[#allocation61_spill] sm:$0xff] }
  0xdc   :  { %5625 = vmatmul.mubr.f32.gmra.mrb[38].mxu1 %v9725_v32  ;;  %5866 = vmatmul.mubr.f32.gmra.mrb[60].mxu0 %v9726_v6  ;;  %v9731_v6 = vld [vmem:[#allocation60_spill] sm:$0xff] }
  0xdd   :  { %5627 = vmatprep.mubr.f32.mxu1 %v9727_v13  ;;  %5868 = vmatprep.mubr.f32.mxu0 %v9728_v36  ;;  %v3496_v36 = vld [vmem:[%s9210_s2 + $0xa8] sm:$0xff] }
  0xde   :  { %3646 = vperm.xlu1 %6645, %v3496_v36   ;;  %v9735_v36 = vld [vmem:[#allocation65_spill] sm:$0xff] }
  0xdf   :  { %3801 = vperm.xlu0 %6644, %v3527_v33   ;;  %v9734_v33 = vld [vmem:[#allocation2_spill] sm:$0xff] }
  0xe0   :  { %5628 = vmatmul.mubr.f32.gmra.mrb[40].mxu1 %v9729_v18  ;;  %5869 = vmatmul.mubr.f32.gmra.mrb[62].mxu0 %v9730_v20  ;;  %v3528_v20 = vld [vmem:[%s9210_s2 + $0x1a8] sm:$0xff] }
  0xe1   :  { %5630 = vmatprep.mubr.f32.mxu1 %v9731_v6  ;;  %5879 = vmatprep.mubr.f32.mxu0 %v6718_v21  ;;  %v3479_v21 = vld [vmem:[%s9210_s2 + $0x20] sm:$0xff] }
  0xe2   :  { %3806 = vperm.xlu1 %6645, %v3528_v20   ;;  %v9738_v20 = vld [vmem:[#allocation71_spill] sm:$0xff] }
  0xe3   :  { %3561 = vperm.xlu0 %6644, %v3479_v21   ;;  %v9737_v21 = vld [vmem:[#allocation70_spill] sm:$0xff] }
  0xe4   :  { %5631 = vmatmul.mubr.f32.gmra.mrb[42].mxu1 %v9732_v53  ;;  %5880 = vmatmul.mubr.f32.vlgmr.msra.gmra.mrb[0].mxu0 %v6720_v22  ;;  %v9736_v22 = vld [vmem:[#allocation66_spill] sm:$0xff] }
  0xe5   :  { %5633 = vmatprep.mubr.f32.mxu1 %v9733_v57  ;;  %5882 = vmatprep.mubr.f32.mxu0 %v9630_v59  ;;  %v3480_v59 = vld [vmem:[%s9210_s2 + $0x28] sm:$0xff] }
  0xe6   :  { %6122 = vmatpush3.bf16.msra.mxu0 %v6706_v15  ;;  %v3511_v15 = vld [vmem:[%s9210_s2 + $0x120] sm:$0xff]  ;;  %3566 = vperm.xlu1 %6645, %v3480_v59  }
  0xe7   :  { %6124 = vmatprep.subr.bf16.mxu0 %v9734_v33  ;;  %3721 = vperm.xlu0 %6644, %v3511_v15   ;;  %v9739_v59 = vld [vmem:[#allocation74_spill] sm:$0xff]  ;;  %v3498_v15 = vld [vmem:[%s9210_s2 + $0xb8] sm:$0xff] }
  0xe8   :  { %5634 = vmatmul.mubr.f32.gmra.mrb[44].mxu1 %v9735_v36  ;;  %5883 = vmatmul.mubr.f32.gmra.mrb[2].mxu0 %v9634_v48  ;;  %v3497_v48 = vld [vmem:[%s9210_s2 + $0xb0] sm:$0xff] }
  0xe9   :  { %5636 = vmatprep.mubr.f32.mxu1 %v9736_v22  ;;  %5885 = vmatprep.mubr.f32.mxu0 %v9637_v54  ;;  %v3512_v54 = vld [vmem:[%s9210_s2 + $0x128] sm:$0xff] }
  0xea   :  { %6126 = vmatpush3.bf16.msra.mxu0 %v9734_v33  ;;  %3726 = vperm.xlu1 %6645, %v3512_v54   ;;  %v9740_v33 = vld [vmem:[#allocation75_spill] sm:$0xff]  ;;  %v3481_v54 = vld [vmem:[%s9210_s2 + $0x30] sm:$0xff] }
  0xeb   :  { %3651 = vperm.xlu0 %6644, %v3497_v48   ;;  %v3530_v48 = vld [vmem:[%s9210_s2 + $0x1b8] sm:$0xff] }
  0xec   :  { %5637 = vmatmul.mubr.f32.gmra.mrb[46].mxu1 %v9737_v21  ;;  %5886 = vmatmul.mubr.f32.gmra.mrb[4].mxu0 %v9640_v23 }
  0xed   :  { %5639 = vmatprep.mubr.f32.mxu1 %v9738_v20  ;;  %5888 = vmatprep.mubr.f32.mxu0 %v9643_v25  ;;  %v3529_v25 = vld [vmem:[%s9210_s2 + $0x1b0] sm:$0xff] }
  0xee   :  { %3656 = vperm.xlu1 %6645, %v3498_v15   ;;  %v3513_v15 = vld [vmem:[%s9210_s2 + $0x130] sm:$0xff] }
  0xef   :  { %3811 = vperm.xlu0 %6644, %v3529_v25   ;;  %v3482_v25 = vld [vmem:[%s9210_s2 + $0x38] sm:$0xff] }
  0xf0   :  { %5640 = vmatmul.mubr.f32.gmra.mrb[48].mxu1 %v9739_v59  ;;  %5889 = vmatmul.mubr.f32.gmra.mrb[6].mxu0 %v9646_v63 }
  0xf1   :  { %5642 = vmatprep.mubr.f32.mxu1 %v9740_v33  ;;  %5891 = vmatprep.mubr.f32.mxu0 %v9649_v39 }
  0xf2   :  { %3816 = vperm.xlu1 %6645, %v3530_v48   ;;  %v3514_v48 = vld [vmem:[%s9210_s2 + $0x138] sm:$0xff] }
  0xf3   :  { %3571 = vperm.xlu0 %6644, %v3481_v54   ;;  %v3499_v54 = vld [vmem:[%s9210_s2 + $0xc0] sm:$0xff] }
  0xf4   :  { %5643 = vmatmul.mubr.f32.gmra.mrb[50].mxu1 %v7440_v35  ;;  %5892 = vmatmul.mubr.f32.gmra.mrb[8].mxu0 %v9652_v45 }
  0xf5   :  { %5645 = vmatprep.mubr.f32.mxu1 %v7447_v41  ;;  %5894 = vmatprep.mubr.f32.mxu0 %v9655_v4 }
  0xf6   :  { %3576 = vperm.xlu1 %6645, %v3482_v25   ;;  %v3500_v25 = vld [vmem:[%s9210_s2 + $0xc8] sm:$0xff] }
  0xf7   :  { %3731 = vperm.xlu0 %6644, %v3513_v15   ;;  %v3531_v15 = vld [vmem:[%s9210_s2 + $0x1c0] sm:$0xff] }
  0xf8   :  { %5646 = vmatmul.mubr.f32.gmra.mrb[52].mxu1 %v7455_v26  ;;  %5895 = vmatmul.mubr.f32.gmra.mrb[10].mxu0 %v9658_v7 }
  0xf9   :  { %5648 = vmatprep.mubr.f32.mxu1 %v7457_v27  ;;  %5897 = vmatprep.mubr.f32.mxu0 %v9660_v42 }
  0xfa   :  { %3736 = vperm.xlu1 %6645, %v3514_v48   ;;  %v3532_v48 = vld [vmem:[%s9210_s2 + $0x1c8] sm:$0xff] }
  0xfb   :  { %3661 = vperm.xlu0 %6644, %v3499_v54   ;;  %v3483_v54 = vld [vmem:[%s9210_s2 + $0x40] sm:$0xff] }
  0xfc   :  { %5649 = vmatmul.mubr.f32.gmra.mrb[54].mxu1 %v7492_v1  ;;  %5898 = vmatmul.mubr.f32.gmra.mrb[12].mxu0 %v9663_v47 }
  0xfd   :  { %5651 = vmatprep.mubr.f32.mxu1 %v7504_v17  ;;  %5900 = vmatprep.mubr.f32.mxu0 %v9665_v43 }
  0xfe   :  { %3666 = vperm.xlu1 %6645, %v3500_v25   ;;  %v3484_v25 = vld [vmem:[%s9210_s2 + $0x48] sm:$0xff] }
  0xff   :  { %3821 = vperm.xlu0 %6644, %v3531_v15   ;;  %v3515_v15 = vld [vmem:[%s9210_s2 + $0x140] sm:$0xff] }
 0x100   :  { %5652 = vmatmul.mubr.f32.gmra.mrb[56].mxu1 %v7533_v29  ;;  %5901 = vmatmul.mubr.f32.gmra.mrb[14].mxu0 %v9668_v19 }
 0x101   :  { %5654 = vmatprep.mubr.f32.mxu1 %v7540_v0  ;;  %5903 = vmatprep.mubr.f32.mxu0 %v9671_v8 }
 0x102   :  { %3826 = vperm.xlu1 %6645, %v3532_v48   ;;  %v9741_v48 = vld [vmem:[#allocation62_spill] sm:$0xff] }
 0x103   :  { %3581 = vperm.xlu0 %6644, %v3483_v54   ;;  %v3516_v54 = vld [vmem:[%s9210_s2 + $0x148] sm:$0xff] }
 0x104   :  { %5655 = vmatmul.mubr.f32.gmra.mrb[58].mxu1 %v7564_v3  ;;  %5904 = vmatmul.mubr.f32.gmra.mrb[16].mxu0 %v9673_v31 }
 0x105   :  { %5657 = vmatprep.mubr.f32.mxu1 %v7571_v40  ;;  %5906 = vmatprep.mubr.f32.mxu0 %v9676_v61 }
 0x106   :  { %3586 = vperm.xlu1 %6645, %v3484_v25   ;;  %v9742_v25 = vld [vmem:[#allocation27_spill] sm:$0xff] }
 0x107   :  { %3741 = vperm.xlu0 %6644, %v3515_v15   ;;  %v9743_v15 = vld [vmem:[#allocation67_spill] sm:$0xff] }
 0x108   :  { %5658 = vmatmul.mubr.f32.gmra.mrb[60].mxu1 %v7591_v12  ;;  %5907 = vmatmul.mubr.f32.gmra.mrb[18].mxu0 %v9679_v2 }
 0x109   :  { %5660 = vmatprep.mubr.f32.mxu1 %v7599_v11  ;;  %5909 = vmatprep.mubr.f32.mxu0 %v9681_v28  ;;  %v3501_v28 = vld [vmem:[%s9210_s2 + $0xd0] sm:$0xff] }
 0x10a   :  { %3746 = vperm.xlu1 %6645, %v3516_v54   ;;  %v9744_v54 = vld [vmem:[#allocation68_spill] sm:$0xff] }
 0x10b   :  { %3671 = vperm.xlu0 %6644, %v3501_v28   ;;  %v3534_v28 = vld [vmem:[%s9210_s2 + $0x1d8] sm:$0xff] }
 0x10c   :  { %5661 = vmatmul.mubr.f32.gmra.mrb[62].mxu1 %v7611_v51  ;;  %5910 = vmatmul.mubr.f32.gmra.mrb[20].mxu0 %v9684_v50 }
 0x10d   :  { %5734 = vmatprep.mubr.f32.mxu1 %v9741_v48  ;;  %5912 = vmatprep.mubr.f32.mxu0 %v9687_v44  ;;  %v3502_v48 = vld [vmem:[%s9210_s2 + $0xd8] sm:$0xff]  ;;  %v3533_v44 = vld [vmem:[%s9210_s2 + $0x1d0] sm:$0xff] }
 0x10e   :  { %3676 = vperm.xlu1 %6645, %v3502_v48   ;;  %v9746_v48 = vld [vmem:[#allocation72_spill] sm:$0xff] }
 0x10f   :  { %3831 = vperm.xlu0 %6644, %v3533_v44   ;;  %v9747_v44 = vld [vmem:[#allocation73_spill] sm:$0xff] }
 0x110   :  { %5735 = vmatmul.mubr.f32.vlgmr.msra.gmra.mrb[42].mxu1 %v9685_v55  ;;  %5913 = vmatmul.mubr.f32.gmra.mrb[22].mxu0 %v9742_v25  ;;  %v9745_v55 = vld [vmem:[#allocation69_spill] sm:$0xff] }
 0x111   :  { %5737 = vmatprep.mubr.f32.mxu1 %v9743_v15  ;;  %5915 = vmatprep.mubr.f32.mxu0 %v9693_v37  ;;  %v3485_v15 = vld [vmem:[%s9210_s2 + $0x50] sm:$0xff] }
 0x112   :  { %3836 = vperm.xlu1 %6645, %v3534_v28   ;;  %v9748_v28 = vld [vmem:[#allocation76_spill] sm:$0xff] }
 0x113   :  { %3591 = vperm.xlu0 %6644, %v3485_v15   ;;  %v9749_v15 = vld [vmem:[#allocation77_spill] sm:$0xff] }
 0x114   :  { %5738 = vmatmul.mubr.f32.gmra.mrb[44].mxu1 %v9744_v54  ;;  %5916 = vmatmul.mubr.f32.gmra.mrb[24].mxu0 %v9696_v16  ;;  %v3486_v54 = vld [vmem:[%s9210_s2 + $0x58] sm:$0xff] }
 0x115   :  { %5740 = vmatprep.mubr.f32.mxu1 %v9745_v55  ;;  %5918 = vmatprep.mubr.f32.mxu0 %v9699_v49  ;;  %v3517_v55 = vld [vmem:[%s9210_s2 + $0x150] sm:$0xff] }
 0x116   :  { %3596 = vperm.xlu1 %6645, %v3486_v54   ;;  %v9750_v54 = vld [vmem:[#allocation78_spill] sm:$0xff] }
 0x117   :  { %3751 = vperm.xlu0 %6644, %v3517_v55   ;;  %v9751_v55 = vld [vmem:[#allocation79_spill] sm:$0xff] }
 0x118   :  { %5741 = vmatmul.mubr.f32.gmra.mrb[46].mxu1 %v9746_v48  ;;  %5919 = vmatmul.mubr.f32.gmra.mrb[26].mxu0 %v9701_v10  ;;  %v3518_v48 = vld [vmem:[%s9210_s2 + $0x158] sm:$0xff] }
 0x119   :  { %5743 = vmatprep.mubr.f32.mxu1 %v9747_v44  ;;  %5921 = vmatprep.mubr.f32.mxu0 %v9703_v24  ;;  %v3503_v44 = vld [vmem:[%s9210_s2 + $0xe0] sm:$0xff] }
 0x11a   :  { %3756 = vperm.xlu1 %6645, %v3518_v48   ;;  %v9752_v48 = vld [vmem:[#allocation80_spill] sm:$0xff] }
 0x11b   :  { %3681 = vperm.xlu0 %6644, %v3503_v44   ;;  %v9753_v44 = vld [vmem:[#allocation81_spill] sm:$0xff] }
 0x11c   :  { %5744 = vmatmul.mubr.f32.gmra.mrb[48].mxu1 %v9748_v28  ;;  %5922 = vmatmul.mubr.f32.gmra.mrb[28].mxu0 %v9705_v38  ;;  %v3504_v28 = vld [vmem:[%s9210_s2 + $0xe8] sm:$0xff] }
 0x11d   :  { %5746 = vmatprep.mubr.f32.mxu1 %v9749_v15  ;;  %5924 = vmatprep.mubr.f32.mxu0 %v9707_v46  ;;  %v3535_v15 = vld [vmem:[%s9210_s2 + $0x1e0] sm:$0xff] }
 0x11e   :  { %3686 = vperm.xlu1 %6645, %v3504_v28   ;;  %v9754_v28 = vld [vmem:[#allocation82_spill] sm:$0xff] }
 0x11f   :  { %3841 = vperm.xlu0 %6644, %v3535_v15   ;;  %v9755_v15 = vld [vmem:[#allocation83_spill] sm:$0xff] }
 0x120   :  { %5747 = vmatmul.mubr.f32.gmra.mrb[50].mxu1 %v9750_v54  ;;  %5925 = vmatmul.mubr.f32.gmra.mrb[30].mxu0 %v9709_v14  ;;  %v3536_v54 = vld [vmem:[%s9210_s2 + $0x1e8] sm:$0xff] }
 0x121   :  { %5749 = vmatprep.mubr.f32.mxu1 %v9751_v55  ;;  %5927 = vmatprep.mubr.f32.mxu0 %v9711_v30  ;;  %v3487_v55 = vld [vmem:[%s9210_s2 + $0x60] sm:$0xff] }
 0x122   :  { %3846 = vperm.xlu1 %6645, %v3536_v54   ;;  %v9756_v54 = vld [vmem:[#allocation84_spill] sm:$0xff] }
 0x123   :  { %3601 = vperm.xlu0 %6644, %v3487_v55   ;;  %v9757_v55 = vld [vmem:[#allocation85_spill] sm:$0xff] }
 0x124   :  { %5750 = vmatmul.mubr.f32.gmra.mrb[52].mxu1 %v9752_v48  ;;  %5928 = vmatmul.mubr.f32.gmra.mrb[32].mxu0 %v9713_v60  ;;  %v3488_v48 = vld [vmem:[%s9210_s2 + $0x68] sm:$0xff] }
 0x125   :  { %5752 = vmatprep.mubr.f32.mxu1 %v9753_v44  ;;  %5930 = vmatprep.mubr.f32.mxu0 %v9715_v9  ;;  %v3519_v44 = vld [vmem:[%s9210_s2 + $0x160] sm:$0xff] }
 0x126   :  { %3606 = vperm.xlu1 %6645, %v3488_v48   ;;  %v9758_v48 = vld [vmem:[#allocation86_spill] sm:$0xff] }
 0x127   :  { %3761 = vperm.xlu0 %6644, %v3519_v44   ;;  %v9759_v44 = vld [vmem:[#allocation88_spill] sm:$0xff] }
 0x128   :  { %5753 = vmatmul.mubr.f32.gmra.mrb[54].mxu1 %v9754_v28  ;;  %5931 = vmatmul.mubr.f32.gmra.mrb[34].mxu0 %v9717_v5  ;;  %v3520_v28 = vld [vmem:[%s9210_s2 + $0x168] sm:$0xff] }
 0x129   :  { %5755 = vmatprep.mubr.f32.mxu1 %v9755_v15  ;;  %5933 = vmatprep.mubr.f32.mxu0 %v9719_v62  ;;  %v3505_v15 = vld [vmem:[%s9210_s2 + $0xf0] sm:$0xff] }
 0x12a   :  { %3766 = vperm.xlu1 %6645, %v3520_v28   ;;  %v9760_v28 = vld [vmem:[#allocation90_spill] sm:$0xff] }
 0x12b   :  { %3691 = vperm.xlu0 %6644, %v3505_v15   ;;  %v3538_v15 = vld [vmem:[%s9210_s2 + $0x1f8] sm:$0xff] }
 0x12c   :  { %5756 = vmatmul.mubr.f32.gmra.mrb[56].mxu1 %v9756_v54  ;;  %5934 = vmatmul.mubr.f32.gmra.mrb[36].mxu0 %v9721_v58  ;;  %v3506_v54 = vld [vmem:[%s9210_s2 + $0xf8] sm:$0xff] }
 0x12d   :  { %5758 = vmatprep.mubr.f32.mxu1 %v9757_v55  ;;  %5936 = vmatprep.mubr.f32.mxu0 %v9723_v56  ;;  %v3537_v55 = vld [vmem:[%s9210_s2 + $0x1f0] sm:$0xff] }
 0x12e   :  { %3696 = vperm.xlu1 %6645, %v3506_v54   ;;  %v3957_v54 = vld [vmem:[%s9211_s4] sm:$0xff] }
 0x12f   :  { %3851 = vperm.xlu0 %6644, %v3537_v55   ;;  %v9761_v55 = vld [vmem:[#allocation3_spill] sm:$0xff] }
 0x130   :  { %5759 = vmatmul.mubr.f32.gmra.mrb[58].mxu1 %v9758_v48  ;;  %5937 = vmatmul.mubr.f32.gmra.mrb[38].mxu0 %v9725_v32  ;;  %v3489_v48 = vld [vmem:[%s9210_s2 + $0x70] sm:$0xff] }
 0x131   :  { %5761 = vmatprep.mubr.f32.mxu1 %v9759_v44  ;;  %5939 = vmatprep.mubr.f32.mxu0 %v9727_v13  ;;  %v3521_v44 = vld [vmem:[%s9210_s2 + $0x170] sm:$0xff] }
 0x132   :  { %3856 = vperm.xlu1 %6645, %v3538_v15   ;;  %v9763_v15 = vld [vmem:[#allocation4_spill] sm:$0xff] }
 0x133   :  { %3611 = vperm.xlu0 %6644, %v3489_v48  }
 0x134   :  { %5762 = vmatmul.mubr.f32.gmra.mrb[60].mxu1 %v7609_v52  ;;  %5940 = vmatmul.mubr.f32.gmra.mrb[40].mxu0 %v9729_v18  ;;  %v3490_v52 = vld [vmem:[%s9210_s2 + $0x78] sm:$0xff] }
 0x135   :  { %5764 = vmatprep.mubr.f32.mxu1 %v9760_v28  ;;  %5942 = vmatprep.mubr.f32.mxu0 %v9731_v6 }
 0x136   :  { %3616 = vperm.xlu1 %6645, %v3490_v52   ;;  %v9764_v52 = vld [vmem:[#allocation6_spill] sm:$0xff] }
 0x137   :  { %3771 = vperm.xlu0 %6644, %v3521_v44  }
 0x138   :  { %5765 = vmatmul.mubr.f32.gmra.mrb[62].mxu1 %v7629_v34  ;;  %5943 = vmatmul.mubr.f32.gmra.mrb[42].mxu0 %v9732_v53  ;;  %v3522_v34 = vld [vmem:[%s9210_s2 + $0x178] sm:$0xff] }
 0x139   :  { %5945 = vmatprep.mubr.f32.mxu0 %v9733_v57 }
 0x13a   :  { %3776 = vperm.xlu1 %6645, %v3522_v34   ;;  %v9765_v34 = vld [vmem:[#allocation7_spill] sm:$0xff] }
 0x13b   :  { %3960 = vperm.xlu0 %6644, %v3957_v54  }
 0x13c   :  { %5946 = vmatmul.mubr.f32.gmra.mrb[44].mxu0 %v9735_v36 }
 0x13d   :  { %5948 = vmatprep.mubr.f32.mxu0 %v9736_v22 }
 0x140   :  { %5949 = vmatmul.mubr.f32.gmra.mrb[46].mxu0 %v9737_v21 }
 0x141   :  { %5951 = vmatprep.mubr.f32.mxu0 %v9738_v20 }
 0x144   :  { %5952 = vmatmul.mubr.f32.gmra.mrb[48].mxu0 %v9739_v59 }
 0x145   :  { %5954 = vmatprep.mubr.f32.mxu0 %v9740_v33 }
 0x148   :  { %5955 = vmatmul.mubr.f32.gmra.mrb[50].mxu0 %v7440_v35 }
 0x149   :  { %5957 = vmatprep.mubr.f32.mxu0 %v7447_v41 }
 0x14c   :  { %5958 = vmatmul.mubr.f32.gmra.mrb[52].mxu0 %v7455_v26 }
 0x14d   :  { %5960 = vmatprep.mubr.f32.mxu0 %v7457_v27 }
 0x150   :  { %5961 = vmatmul.mubr.f32.gmra.mrb[54].mxu0 %v7492_v1 }
 0x151   :  { %5963 = vmatprep.mubr.f32.mxu0 %v7504_v17 }
 0x154   :  { %5964 = vmatmul.mubr.f32.gmra.mrb[56].mxu0 %v7533_v29 }
 0x155   :  { %5966 = vmatprep.mubr.f32.mxu0 %v7540_v0 }
 0x158   :  { %5967 = vmatmul.mubr.f32.gmra.mrb[58].mxu0 %v7564_v3 }
 0x159   :  { %5969 = vmatprep.mubr.f32.mxu0 %v7571_v40 }
 0x15c   :  { %5970 = vmatmul.mubr.f32.gmra.mrb[60].mxu0 %v7591_v12  ;;  %v9766_v12 = vld [vmem:[#allocation8_spill] sm:$0xff] }
 0x15d   :  { %5972 = vmatprep.mubr.f32.mxu0 %v7599_v11 }
 0x160   :  { %5973 = vmatmul.mubr.f32.gmra.mrb[62].mxu0 %v7611_v51 }
 0x161   :  { %5983 = vmatprep.mubr.f32.mxu0 %v9761_v55 }
 0x163   :  { %v8097_v28 = vpop.f32.mrb[0].mxu1 }
 0x164   :  { %9762 = vst [vmem:[#allocation30_spill] sm:$0xff] %v8097_v28  ;;  %5984 = vmatmul.mubr.f32.vlgmr.msra.gmra.mrb[0].mxu0 %v9763_v15  ;;  %v8100_v48 = vpop.f32.mrb[1].mxu1  ;;  %v9767_v28 = vld [vmem:[#allocation10_spill] sm:$0xff] }
 0x165   :  { %5986 = vmatprep.mubr.f32.mxu0 %v9764_v52 }
 0x167   :  { %v8103_v44 = vpop.f32.mrb[2].mxu1 }
 0x168   :  { %5987 = vmatmul.mubr.f32.gmra.mrb[2].mxu0 %v9765_v34  ;;  %v8106_v54 = vpop.f32.mrb[3].mxu1 }
 0x169   :  { %5989 = vmatprep.mubr.f32.mxu0 %v9766_v12 }
 0x16b   :  { %v8109_v11 = vpop.f32.mrb[4].mxu1 }
 0x16c   :  { %5990 = vmatmul.mubr.f32.gmra.mrb[4].mxu0 %v9640_v23  ;;  %v8112_v55 = vpop.f32.mrb[5].mxu1 }
 0x16d   :  { %5992 = vmatprep.mubr.f32.mxu0 %v9767_v28 }
 0x16f   :  { %v8115_v15 = vpop.f32.mrb[6].mxu1 }
 0x170   :  { %5993 = vmatmul.mubr.f32.gmra.mrb[6].mxu0 %v9646_v63  ;;  %v8118_v52 = vpop.f32.mrb[7].mxu1 }
 0x171   :  { %5995 = vmatprep.mubr.f32.mxu0 %v9649_v39 }
 0x173   :  { %v8121_v34 = vpop.f32.mrb[8].mxu1 }
 0x174   :  { %5996 = vmatmul.mubr.f32.gmra.mrb[8].mxu0 %v9652_v45  ;;  %v8124_v12 = vpop.f32.mrb[9].mxu1 }
 0x175   :  { %5998 = vmatprep.mubr.f32.mxu0 %v9655_v4 }
 0x177   :  { %v8127_v23 = vpop.f32.mrb[10].mxu1 }
 0x178   :  { %5999 = vmatmul.mubr.f32.gmra.mrb[10].mxu0 %v9658_v7  ;;  %v8130_v28 = vpop.f32.mrb[11].mxu1 }
 0x179   :  { %6001 = vmatprep.mubr.f32.mxu0 %v9660_v42 }
 0x17b   :  { %v8133_v63 = vpop.f32.mrb[12].mxu1 }
 0x17c   :  { %6002 = vmatmul.mubr.f32.gmra.mrb[12].mxu0 %v9663_v47  ;;  %v8136_v39 = vpop.f32.mrb[13].mxu1 }
 0x17d   :  { %6004 = vmatprep.mubr.f32.mxu0 %v9665_v43 }
 0x17f   :  { %v8139_v45 = vpop.f32.mrb[14].mxu1 }
 0x180   :  { %9768 = vst [vmem:[#allocation5_spill] sm:$0xff] %v8139_v45  ;;  %6005 = vmatmul.mubr.f32.gmra.mrb[14].mxu0 %v9668_v19  ;;  %v8142_v4 = vpop.f32.mrb[15].mxu1  ;;  %v9770_v45 = vld [vmem:[#allocation24_spill] sm:$0xff] }
 0x181   :  { %6007 = vmatprep.mubr.f32.mxu0 %v9671_v8 }
 0x183   :  { %v8145_v7 = vpop.f32.mrb[16].mxu1 }
 0x184   :  { %9769 = vst [vmem:[#allocation32_spill] sm:$0xff] %v8145_v7  ;;  %6008 = vmatmul.mubr.f32.gmra.mrb[16].mxu0 %v9673_v31  ;;  %v8148_v42 = vpop.f32.mrb[17].mxu1  ;;  %v9771_v7 = vld [vmem:[#allocation26_spill] sm:$0xff] }
 0x185   :  { %6010 = vmatprep.mubr.f32.mxu0 %v9676_v61 }
 0x187   :  { %v8151_v47 = vpop.f32.mrb[18].mxu1 }
 0x188   :  { %6011 = vmatmul.mubr.f32.gmra.mrb[18].mxu0 %v9679_v2  ;;  %v8154_v43 = vpop.f32.mrb[19].mxu1 }
 0x189   :  { %6013 = vmatprep.mubr.f32.mxu0 %v9770_v45 }
 0x18b   :  { %v8157_v19 = vpop.f32.mrb[20].mxu1 }
 0x18c   :  { %6014 = vmatmul.mubr.f32.gmra.mrb[20].mxu0 %v9684_v50  ;;  %v8160_v8 = vpop.f32.mrb[21].mxu1 }
 0x18d   :  { %6016 = vmatprep.mubr.f32.mxu0 %v9771_v7 }
 0x18f   :  { %v8163_v31 = vpop.f32.mrb[22].mxu1 }
 0x190   :  { %6017 = vmatmul.mubr.f32.gmra.mrb[22].mxu0 %v9742_v25  ;;  %v8166_v61 = vpop.f32.mrb[23].mxu1 }
 0x191   :  { %6019 = vmatprep.mubr.f32.mxu0 %v9693_v37 }
 0x193   :  { %v8169_v2 = vpop.f32.mrb[24].mxu1 }
 0x194   :  { %6020 = vmatmul.mubr.f32.gmra.mrb[24].mxu0 %v9696_v16  ;;  %v8172_v45 = vpop.f32.mrb[25].mxu1 }
 0x195   :  { %6022 = vmatprep.mubr.f32.mxu0 %v9699_v49 }
 0x197   :  { %v8175_v50 = vpop.f32.mrb[26].mxu1 }
 0x198   :  { %6023 = vmatmul.mubr.f32.gmra.mrb[26].mxu0 %v9701_v10  ;;  %v8178_v7 = vpop.f32.mrb[27].mxu1 }
 0x199   :  { %6025 = vmatprep.mubr.f32.mxu0 %v9703_v24 }
 0x19b   :  { %v8181_v25 = vpop.f32.mrb[28].mxu1 }
 0x19c   :  { %6026 = vmatmul.mubr.f32.gmra.mrb[28].mxu0 %v9705_v38  ;;  %v8184_v37 = vpop.f32.mrb[29].mxu1 }
 0x19d   :  { %6028 = vmatprep.mubr.f32.mxu0 %v9707_v46 }
 0x19f   :  { %v8187_v16 = vpop.f32.mrb[30].mxu1 }
 0x1a0   :  { %6029 = vmatmul.mubr.f32.gmra.mrb[30].mxu0 %v9709_v14  ;;  %v8190_v49 = vpop.f32.mrb[31].mxu1 }
 0x1a1   :  { %6031 = vmatprep.mubr.f32.mxu0 %v9711_v30 }
 0x1a3   :  { %v8193_v10 = vpop.f32.mrb[32].mxu1 }
 0x1a4   :  { %6032 = vmatmul.mubr.f32.gmra.mrb[32].mxu0 %v9713_v60  ;;  %v8196_v24 = vpop.f32.mrb[33].mxu1 }
 0x1a5   :  { %6034 = vmatprep.mubr.f32.mxu0 %v9715_v9 }
 0x1a7   :  { %v8199_v38 = vpop.f32.mrb[34].mxu1 }
 0x1a8   :  { %9772 = vst [vmem:[#allocation34_spill] sm:$0xff] %v8199_v38  ;;  %6035 = vmatmul.mubr.f32.gmra.mrb[34].mxu0 %v9717_v5  ;;  %v8202_v46 = vpop.f32.mrb[35].mxu1 }
 0x1a9   :  { %9773 = vst [vmem:[#allocation9_spill] sm:$0xff] %v8202_v46  ;;  %6037 = vmatprep.mubr.f32.mxu0 %v9719_v62 }
 0x1ab   :  { %v8205_v14 = vpop.f32.mrb[36].mxu1 }
 0x1ac   :  { %9774 = vst [vmem:[#allocation36_spill] sm:$0xff] %v8205_v14  ;;  %6038 = vmatmul.mubr.f32.gmra.mrb[36].mxu0 %v9721_v58  ;;  %v8208_v30 = vpop.f32.mrb[37].mxu1  ;;  %v8229_v58 = vpop.permute.xlu0 %3621 }
 0x1ad   :  { %9775 = vst [vmem:[#allocation38_spill] sm:$0xff] %v8208_v30  ;;  %6040 = vmatprep.mubr.f32.mxu0 %v9723_v56  ;;  %v8232_v56 = vpop.permute.xlu1 %3781 }
 0x1ae   :  { %9780 = vst [vmem:[#allocation13_spill] sm:$0xff] %v8232_v56 }
 0x1af   :  { %v8211_v60 = vpop.f32.mrb[38].mxu1 }
 0x1b0   :  { %9776 = vst [vmem:[#allocation11_spill] sm:$0xff] %v8211_v60  ;;  %6041 = vmatmul.mubr.f32.gmra.mrb[38].mxu0 %v9725_v32  ;;  %v8214_v9 = vpop.f32.mrb[39].mxu1  ;;  %v8236_v32 = vpop.permute.xlu0 %3626 }
 0x1b1   :  { %9777 = vst [vmem:[#allocation40_spill] sm:$0xff] %v8214_v9  ;;  %6043 = vmatprep.mubr.f32.mxu0 %v9727_v13  ;;  %v8239_v13 = vpop.permute.xlu1 %3786 }
 0x1b2   :  { %9781 = vst [vmem:[#allocation44_spill] sm:$0xff] %v8239_v13 }
 0x1b3   :  { %v8217_v5 = vpop.f32.mrb[40].mxu1 }
 0x1b4   :  { %9778 = vst [vmem:[#allocation12_spill] sm:$0xff] %v8217_v5  ;;  %6044 = vmatmul.mubr.f32.gmra.mrb[40].mxu0 %v9729_v18  ;;  %v8220_v62 = vpop.f32.mrb[41].mxu1 }
 0x1b5   :  { %9779 = vst [vmem:[#allocation43_spill] sm:$0xff] %v8220_v62  ;;  %6046 = vmatprep.mubr.f32.mxu0 %v9731_v6  ;;  %v8246_v18 = vpop.permute.xlu1 %3546  ;;  %v9783_v6 = vld [vmem:[#allocation89_spill] sm:$0xff] }
 0x1b8   :  { %6047 = vmatmul.mubr.f32.gmra.mrb[42].mxu0 %v9732_v53 }
 0x1b9   :  { %6049 = vmatprep.mubr.f32.mxu0 %v9733_v57 }
 0x1bc   :  { %6050 = vmatmul.mubr.f32.gmra.mrb[44].mxu0 %v9735_v36 }
 0x1bd   :  { %6052 = vmatprep.mubr.f32.mxu0 %v9736_v22  ;;  %v8243_v22 = vpop.permute.xlu0 %3541 }
 0x1c0   :  { %6053 = vmatmul.mubr.f32.gmra.mrb[46].mxu0 %v9737_v21 }
 0x1c1   :  { %6055 = vmatprep.mubr.f32.mxu0 %v9738_v20 }
 0x1c4   :  { %6056 = vmatmul.mubr.f32.gmra.mrb[48].mxu0 %v9739_v59 }
 0x1c5   :  { %6058 = vmatprep.mubr.f32.mxu0 %v9740_v33 }
 0x1c8   :  { %6059 = vmatmul.mubr.f32.gmra.mrb[50].mxu0 %v7440_v35  ;;  %v8250_v35 = vpop.permute.xlu0 %3701 }
 0x1c9   :  { %6061 = vmatprep.mubr.f32.mxu0 %v7447_v41  ;;  %v8253_v41 = vpop.permute.xlu1 %3706 }
 0x1cc   :  { %6062 = vmatmul.mubr.f32.gmra.mrb[52].mxu0 %v7455_v26 }
 0x1cd   :  { %6064 = vmatprep.mubr.f32.mxu0 %v7457_v27  ;;  %v8257_v27 = vpop.permute.xlu0 %3631  ;;  %v8259_v26 = vpop.permute.xlu1 %3636 }
 0x1d0   :  { %6065 = vmatmul.mubr.f32.gmra.mrb[54].mxu0 %v7492_v1  ;;  %v9782_v1 = vld [vmem:[#allocation87_spill] sm:$0xff] }
 0x1d1   :  { %6067 = vmatprep.mubr.f32.mxu0 %v7504_v17  ;;  %v8264_v17 = vpop.permute.xlu0 %3791 }
 0x1d2   :  { %9784 = vst [vmem:[#allocation14_spill] sm:$0xff] %v8264_v17 }
 0x1d4   :  { %6068 = vmatmul.mubr.f32.gmra.mrb[56].mxu0 %v7533_v29  ;;  %v8266_v29 = vpop.permute.xlu1 %3796 }
 0x1d5   :  { %6070 = vmatprep.mubr.f32.mxu0 %v7540_v0  ;;  %9785 = vst [vmem:[#allocation45_spill] sm:$0xff] %v8266_v29 }
 0x1d8   :  { %6071 = vmatmul.mubr.f32.gmra.mrb[58].mxu0 %v7564_v3  ;;  %v8272_v3 = vpop.permute.xlu0 %3551  ;;  %v8276_v57 = vpop.permute.xlu1 %3556 }
 0x1d9   :  { %6073 = vmatprep.mubr.f32.mxu0 %v7571_v40 }
 0x1dc   :  { %6074 = vmatmul.mubr.f32.gmra.mrb[60].mxu0 %v9782_v1  ;;  %v8286_v59 = vpop.permute.xlu1 %3716 }
 0x1dd   :  { %6076 = vmatprep.mubr.f32.mxu0 %v9783_v6  ;;  %9793 = vst [vmem:[#allocation53_spill] sm:$0xff] %v8286_v59 }
 0x1e0   :  { %6077 = vmatmul.mubr.f32.gmra.mrb[62].mxu0 %v7611_v51  ;;  %v8284_v51 = vpop.permute.xlu0 %3711  ;;  %v8296_v29 = vpop.permute.xlu1 %3646 }
 0x1e1   :  { %9792 = vst [vmem:[#allocation19_spill] sm:$0xff] %v8284_v51  ;;  %9798 = vst [vmem:[#allocation58_spill] sm:$0xff] %v8296_v29 }
 0x1e3   :  { %v8268_v0 = vpop.f32.mrb[42].mxu1 }
 0x1e4   :  { %9786 = vst [vmem:[#allocation15_spill] sm:$0xff] %v8268_v0  ;;  %v8270_v53 = vpop.f32.mrb[43].mxu1  ;;  %v8292_v6 = vpop.permute.xlu0 %3641 }
 0x1e5   :  { %9787 = vst [vmem:[#allocation16_spill] sm:$0xff] %v8270_v53  ;;  %9796 = vst [vmem:[#allocation57_spill] sm:$0xff] %v8292_v6  ;;  %v9869_v6 = vld [vmem:[#allocation9_spill] sm:$0xff] }
 0x1e7   :  { %v8274_v40 = vpop.f32.mrb[44].mxu1 }
 0x1e8   :  { %9788 = vst [vmem:[#allocation50_spill] sm:$0xff] %v8274_v40  ;;  %v8278_v36 = vpop.f32.mrb[45].mxu1  ;;  %v9875_v29 = vld [vmem:[#allocation19_spill] sm:$0xff] }
 0x1e9   :  { %9789 = vst [vmem:[#allocation17_spill] sm:$0xff] %v8278_v36  ;;  %v8306_v36 = vpop.permute.xlu1 %3806 }
 0x1ea   :  { %9803 = vst [vmem:[#allocation29_spill] sm:$0xff] %v8306_v36 }
 0x1eb   :  { %v8280_v21 = vpop.f32.mrb[46].mxu1 }
 0x1ec   :  { %9790 = vst [vmem:[#allocation18_spill] sm:$0xff] %v8280_v21  ;;  %v8282_v20 = vpop.f32.mrb[47].mxu1 }
 0x1ed   :  { %9791 = vst [vmem:[#allocation52_spill] sm:$0xff] %v8282_v20  ;;  %v8304_v20 = vpop.permute.xlu0 %3801 }
 0x1ee   :  { %9802 = vst [vmem:[#allocation28_spill] sm:$0xff] %v8304_v20 }
 0x1ef   :  { %v8288_v33 = vpop.f32.mrb[48].mxu1 }
 0x1f0   :  { %9794 = vst [vmem:[#allocation20_spill] sm:$0xff] %v8288_v33  ;;  %v8290_v1 = vpop.f32.mrb[49].mxu1 }
 0x1f1   :  { %9795 = vst [vmem:[#allocation21_spill] sm:$0xff] %v8290_v1  ;;  %v8312_v1 = vpop.permute.xlu0 %3561 }
 0x1f2   :  { %9806 = vst [vmem:[#allocation35_spill] sm:$0xff] %v8312_v1  ;;  %v9843_v1 = vld [vmem:[#allocation5_spill] sm:$0xff] }
 0x1f3   :  { %v8294_v17 = vpop.f32.mrb[50].mxu1 }
 0x1f4   :  { %9797 = vst [vmem:[#allocation22_spill] sm:$0xff] %v8294_v17  ;;  %v8298_v56 = vpop.f32.mrb[51].mxu1  ;;  %v8316_v17 = vpop.permute.xlu1 %3566 }
 0x1f5   :  { %9799 = vst [vmem:[#allocation23_spill] sm:$0xff] %v8298_v56  ;;  %9808 = vst [vmem:[#allocation39_spill] sm:$0xff] %v8316_v17 }
 0x1f7   :  { %v8300_v13 = vpop.f32.mrb[52].mxu1 }
 0x1f8   :  { %9800 = vst [vmem:[#allocation25_spill] sm:$0xff] %v8300_v13  ;;  %v8302_v21 = vpop.f32.mrb[53].mxu1  ;;  %v8326_v20 = vpop.permute.xlu1 %3726 }
 0x1f9   :  { %9801 = vst [vmem:[#allocation63_spill] sm:$0xff] %v8302_v21  ;;  %v8324_v21 = vpop.permute.xlu0 %3721  ;;  %9813 = vst [vmem:[#allocation48_spill] sm:$0xff] %v8326_v20 }
 0x1fa   :  { %9812 = vst [vmem:[#allocation47_spill] sm:$0xff] %v8324_v21 }
 0x1fb   :  { %v8308_v40 = vpop.f32.mrb[54].mxu1 }
 0x1fc   :  { %9804 = vst [vmem:[#allocation31_spill] sm:$0xff] %v8308_v40  ;;  %v8310_v33 = vpop.f32.mrb[55].mxu1 }
 0x1fd   :  { %9805 = vst [vmem:[#allocation33_spill] sm:$0xff] %v8310_v33  ;;  %v8332_v33 = vpop.permute.xlu0 %3651 }
 0x1fe   :  { %9816 = vst [vmem:[#allocation54_spill] sm:$0xff] %v8332_v33 }
 0x1ff   :  { %v8314_v53 = vpop.f32.mrb[56].mxu1 }
 0x200   :  { %9807 = vst [vmem:[#allocation37_spill] sm:$0xff] %v8314_v53  ;;  %v8318_v0 = vpop.f32.mrb[57].mxu1  ;;  %v8336_v53 = vpop.permute.xlu1 %3656 }
 0x201   :  { %9809 = vst [vmem:[#allocation41_spill] sm:$0xff] %v8318_v0  ;;  %9818 = vst [vmem:[#allocation56_spill] sm:$0xff] %v8336_v53  ;;  %v8340_v0 = vpop.permute.xlu0 %3811 }
 0x202   :  { %9820 = vst [vmem:[#allocation60_spill] sm:$0xff] %v8340_v0 }
 0x203   :  { %v8320_v56 = vpop.f32.mrb[58].mxu1 }
 0x204   :  { %9810 = vst [vmem:[#allocation42_spill] sm:$0xff] %v8320_v56  ;;  %v8322_v13 = vpop.f32.mrb[59].mxu1  ;;  %v8342_v56 = vpop.permute.xlu1 %3816 }
 0x205   :  { %9811 = vst [vmem:[#allocation46_spill] sm:$0xff] %v8322_v13  ;;  %9821 = vst [vmem:[#allocation61_spill] sm:$0xff] %v8342_v56  ;;  %v8344_v13 = vpop.permute.xlu0 %3571 }
 0x207   :  { %v8328_v36 = vpop.f32.mrb[60].mxu1 }
 0x208   :  { %9814 = vst [vmem:[#allocation49_spill] sm:$0xff] %v8328_v36  ;;  %v8330_v40 = vpop.f32.mrb[61].mxu1  ;;  %v8346_v9 = vpop.permute.xlu1 %3576 }
 0x209   :  { %9815 = vst [vmem:[#allocation51_spill] sm:$0xff] %v8330_v40  ;;  %v8348_v60 = vpop.permute.xlu0 %3731 }
 0x20a   :  { %9822 = vst [vmem:[#allocation64_spill] sm:$0xff] %v8348_v60  ;;  %v9830_v60 = vld [vmem:[#allocation30_spill] sm:$0xff] }
 0x20b   :  { %v8334_v62 = vpop.f32.mrb[62].mxu1 }
 0x20c   :  { %9817 = vst [vmem:[#allocation55_spill] sm:$0xff] %v8334_v62  ;;  %v8338_v5 = vpop.f32.mrb[63].mxu1  ;;  %v8350_v36 = vpop.permute.xlu1 %3736 }
 0x20d   :  { %9819 = vst [vmem:[#allocation59_spill] sm:$0xff] %v8338_v5  ;;  %9823 = vst [vmem:[#allocation2_spill] sm:$0xff] %v8350_v36  ;;  %v8352_v40 = vpop.permute.xlu0 %3661 }
 0x20e   :  { %9824 = vst [vmem:[#allocation65_spill] sm:$0xff] %v8352_v40 }
 0x210   :  { %v8354_v21 = vpop.permute.xlu1 %3666 }
 0x211   :  { %9825 = vst [vmem:[#allocation66_spill] sm:$0xff] %v8354_v21  ;;  %v8356_v62 = vpop.permute.xlu0 %3821 }
 0x212   :  { %9826 = vst [vmem:[#allocation70_spill] sm:$0xff] %v8356_v62  ;;  %v3956_v62 = vld [vmem:[%s9212_s3 + $0x8] sm:$0xff] }
 0x214   :  { %v8358_v20 = vpop.permute.xlu1 %3826 }
 0x215   :  { %9827 = vst [vmem:[#allocation71_spill] sm:$0xff] %v8358_v20  ;;  %v8360_v5 = vpop.permute.xlu0 %3581  ;;  %v8377_v20 = vand.u32 4294901760, %v3956_v62 }
 0x217   :  { %9831 = vst [vmem:[#allocation62_spill] sm:$0xff] %v8377_v20 }
 0x218   :  { %v8362_v0 = vpop.permute.xlu1 %3586 }
 0x219   :  { %v8364_v56 = vpop.permute.xlu0 %3741 }
 0x21a   :  { %9828 = vst [vmem:[#allocation74_spill] sm:$0xff] %v8364_v56 }
 0x21c   :  { %v8366_v30 = vpop.permute.xlu1 %3746 }
 0x21d   :  { %9829 = vst [vmem:[#allocation75_spill] sm:$0xff] %v8366_v30  ;;  %v8379_v46 = vpop.permute.xlu0 %3671 }
 0x21e   :  { %9832 = vst [vmem:[#allocation27_spill] sm:$0xff] %v8379_v46 }
 0x220   :  { %v8381_v56 = vpop.permute.xlu1 %3676 }
 0x221   :  { %9833 = vst [vmem:[#allocation67_spill] sm:$0xff] %v8381_v56 }
 0x237   :  { %v5985_v14 = vpop.f32.mrb[0].mxu0 }
 0x238   :  { %v8369_v51 = vadd.f32 %v5985_v14, %v9830_v60  ;;  %v3093_v36 = vpop.f32.mrb[1].mxu0  ;;  %v8387_v60 = vsub.f32 %v3956_v62, %v8377_v20  ;;  %v8404_v62 = vpop.permute.xlu1 %3836 }
 0x239   :  { %v8372_v59 = vadd.f32 %v3093_v36, %v8100_v48  ;;  %9838 = vst [vmem:[#allocation76_spill] sm:$0xff] %v8404_v62 }
 0x23a   :  { %9834 = vst [vmem:[#allocation68_spill] sm:$0xff] %v8387_v60  ;;  %v9408_v36 = vand.u32 4294901760, %v8387_v60 }
 0x23b   :  { %v5988_v40 = vpop.f32.mrb[2].mxu0 }
 0x23c   :  { %v8384_v30 = vadd.f32 %v5988_v40, %v8103_v44  ;;  %v3105_v14 = vpop.f32.mrb[3].mxu0  ;;  %v4062_v56 = vsub.f32 %v8387_v60, %v9408_v36  ;;  %v8399_v44 = vpop.permute.xlu0 %3831 }
 0x23d   :  { %v8390_v48 = vadd.f32 %v3105_v14, %v8106_v54  ;;  %9836 = vst [vmem:[#allocation72_spill] sm:$0xff] %v8399_v44  ;;  %v8418_v60 = vpop.permute.xlu1 %3596 }
 0x23e   :  { %v4063_v14 = vand.u32 4294901760, %v4062_v56 }
 0x23f   :  { %v5991_v21 = vpop.f32.mrb[4].mxu0 }
 0x240   :  { %v8394_v38 = vadd.f32 %v5991_v21, %v8109_v11  ;;  %v3117_v46 = vpop.f32.mrb[5].mxu0  ;;  %4064 = vmatprep.mubr.f32.mxu1 %v4063_v14 }
 0x241   :  { %v8402_v40 = vadd.f32 %v3117_v46, %v8112_v55  ;;  %v8416_v55 = vpop.permute.xlu0 %3591 }
 0x242   :  { %9835 = vst [vmem:[#allocation69_spill] sm:$0xff] %v8394_v38 }
 0x243   :  { %9837 = vst [vmem:[#allocation73_spill] sm:$0xff] %v8402_v40  ;;  %v5994_v21 = vpop.f32.mrb[6].mxu0  ;;  %v9844_v40 = vld [vmem:[#allocation32_spill] sm:$0xff] }
 0x244   :  { %v8411_v20 = vadd.f32 %v5994_v21, %v8115_v15  ;;  %v3129_v33 = vpop.f32.mrb[7].mxu0 }
 0x245   :  { %v8414_v36 = vadd.f32 %v3129_v33, %v8118_v52  ;;  %v8429_v21 = vpop.permute.xlu0 %3751  ;;  %v8434_v33 = vpop.permute.xlu1 %3756 }
 0x246   :  { %9839 = vst [vmem:[#allocation77_spill] sm:$0xff] %v8429_v21  ;;  %9840 = vst [vmem:[#allocation78_spill] sm:$0xff] %v8434_v33 }
 0x247   :  { %v5997_v46 = vpop.f32.mrb[8].mxu0 }
 0x248   :  { %v8421_v54 = vadd.f32 %v5997_v46, %v8121_v34  ;;  %v3141_v56 = vpop.f32.mrb[9].mxu0 }
 0x249   :  { %v8424_v11 = vadd.f32 %v3141_v56, %v8124_v12  ;;  %v8442_v56 = vpop.permute.xlu0 %3681 }
 0x24a   :  { %9841 = vst [vmem:[#allocation79_spill] sm:$0xff] %v8442_v56 }
 0x24b   :  { %v6000_v44 = vpop.f32.mrb[10].mxu0 }
 0x24c   :  { %v8427_v15 = vadd.f32 %v6000_v44, %v8127_v23  ;;  %v3153_v14 = vpop.f32.mrb[11].mxu0  ;;  %v8444_v44 = vpop.permute.xlu1 %3686 }
 0x24d   :  { %v8432_v52 = vadd.f32 %v3153_v14, %v8130_v28  ;;  %9842 = vst [vmem:[#allocation80_spill] sm:$0xff] %v8444_v44  ;;  %v8455_v17 = vpop.permute.xlu0 %3841 }
 0x24e   :  { %9845 = vst [vmem:[#allocation81_spill] sm:$0xff] %v8455_v17 }
 0x24f   :  { %v6003_v62 = vpop.f32.mrb[12].mxu0 }
 0x250   :  { %v8437_v34 = vadd.f32 %v6003_v62, %v8133_v63  ;;  %v3165_v46 = vpop.f32.mrb[13].mxu0 }
 0x251   :  { %v8440_v12 = vadd.f32 %v3165_v46, %v8136_v39  ;;  %v8460_v46 = vpop.permute.xlu1 %3846 }
 0x252   :  { %9846 = vst [vmem:[#allocation82_spill] sm:$0xff] %v8460_v46 }
 0x253   :  { %v6006_v23 = vpop.f32.mrb[14].mxu0 }
 0x254   :  { %v8447_v21 = vadd.f32 %v6006_v23, %v9843_v1  ;;  %v3177_v28 = vpop.f32.mrb[15].mxu0 }
 0x255   :  { %v8450_v14 = vadd.f32 %v3177_v28, %v8142_v4  ;;  %v8468_v28 = vpop.permute.xlu0 %3601 }
 0x257   :  { %v6009_v33 = vpop.f32.mrb[16].mxu0 }
 0x258   :  { %v8453_v63 = vadd.f32 %v6009_v33, %v9844_v40  ;;  %v3189_v62 = vpop.f32.mrb[17].mxu0  ;;  %v8470_v33 = vpop.permute.xlu1 %3606 }
 0x259   :  { %v8458_v39 = vadd.f32 %v3189_v62, %v8148_v42 }
 0x25b   :  { %v6012_v38 = vpop.f32.mrb[18].mxu0 }
 0x25c   :  { %v8463_v1 = vadd.f32 %v6012_v38, %v8151_v47  ;;  %v3201_v23 = vpop.f32.mrb[19].mxu0  ;;  %v3955_v47 = vld [vmem:[%s9212_s3] sm:$0xff] }
 0x25d   :  { %v8466_v4 = vadd.f32 %v3201_v23, %v8154_v43  ;;  %v8484_v23 = vpop.permute.xlu0 %3761 }
 0x25e   :  { %9848 = vst [vmem:[#allocation84_spill] sm:$0xff] %v8484_v23 }
 0x25f   :  { %v6015_v40 = vpop.f32.mrb[20].mxu0 }
 0x260   :  { %v8473_v17 = vadd.f32 %v6015_v40, %v8157_v19  ;;  %v3213_v42 = vpop.f32.mrb[21].mxu0  ;;  %v8489_v19 = vpop.permute.xlu1 %3766  ;;  %v8491_v40 = vand.u32 4294901760, %v3955_v47 }
 0x261   :  { %v8476_v62 = vadd.f32 %v3213_v42, %v8160_v8  ;;  %9850 = vst [vmem:[#allocation86_spill] sm:$0xff] %v8489_v19 }
 0x262   :  { %9851 = vst [vmem:[#allocation88_spill] sm:$0xff] %v8491_v40 }
 0x263   :  { %9847 = vst [vmem:[#allocation83_spill] sm:$0xff] %v8476_v62  ;;  %v6018_v46 = vpop.f32.mrb[22].mxu0 }
 0x264   :  { %v8482_v43 = vadd.f32 %v6018_v46, %v8163_v31  ;;  %v3225_v38 = vpop.f32.mrb[23].mxu0  ;;  %v8500_v31 = vsub.f32 %v3955_v47, %v8491_v40  ;;  %v8502_v46 = vpop.permute.xlu0 %3691 }
 0x265   :  { %v8487_v56 = vadd.f32 %v3225_v38, %v8166_v61  ;;  %9853 = vst [vmem:[#allocation3_spill] sm:$0xff] %v8502_v46  ;;  %v8504_v61 = vpop.permute.xlu1 %3696 }
 0x266   :  { %9852 = vst [vmem:[#allocation90_spill] sm:$0xff] %v8500_v31  ;;  %9854 = vst [vmem:[#allocation4_spill] sm:$0xff] %v8504_v61 }
 0x267   :  { %9849 = vst [vmem:[#allocation85_spill] sm:$0xff] %v8487_v56  ;;  %v6021_v8 = vpop.f32.mrb[24].mxu0 }
 0x268   :  { %v8494_v42 = vadd.f32 %v6021_v8, %v8169_v2  ;;  %v3237_v44 = vpop.f32.mrb[25].mxu0  ;;  %v9422_v2 = vand.u32 4294901760, %v8500_v31  ;;  %v8516_v47 = vpop.permute.xlu0 %3851 }
 0x269   :  { %v8497_v53 = vadd.f32 %v3237_v44, %v8172_v45  ;;  %9857 = vst [vmem:[#allocation8_spill] sm:$0xff] %v8516_v47  ;;  %v8521_v46 = vpop.permute.xlu1 %3856 }
 0x26a   :  { %9859 = vst [vmem:[#allocation24_spill] sm:$0xff] %v8521_v46 }
 0x26b   :  { %v6024_v23 = vpop.f32.mrb[26].mxu0 }
 0x26c   :  { %v8507_v38 = vadd.f32 %v6024_v23, %v8175_v50  ;;  %v3249_v19 = vpop.f32.mrb[27].mxu0  ;;  %v8526_v50 = vsub.f32 %v8500_v31, %v9422_v2  ;;  %v3861_v2 = vsub.f32 %v8390_v48, %v8272_v3 }
 0x26d   :  { %v8510_v56 = vadd.f32 %v3249_v19, %v8178_v7 }
 0x26e   :  { %9860 = vst [vmem:[#allocation26_spill] sm:$0xff] %v8526_v50 }
 0x26f   :  { %9855 = vst [vmem:[#allocation6_spill] sm:$0xff] %v8510_v56  ;;  %v6027_v8 = vpop.f32.mrb[28].mxu0 }
 0x270   :  { %v8514_v45 = vadd.f32 %v6027_v8, %v8181_v25  ;;  %v3261_v44 = vpop.f32.mrb[29].mxu0  ;;  %v3860_v25 = vsub.f32 %v8369_v51, %v8246_v18  ;;  %v9877_v18 = vld [vmem:[#allocation36_spill] sm:$0xff] }
 0x271   :  { %v8519_v40 = vadd.f32 %v3261_v44, %v8184_v37  ;;  %v3859_v37 = vsub.f32 %v8372_v59, %v8243_v22  ;;  %v3862_v44 = vsub.f32 %v8384_v30, %v8276_v57  ;;  %v8553_v57 = vpop.permute.xlu1 %3616  ;;  %v9868_v22 = vld [vmem:[#allocation65_spill] sm:$0xff] }
 0x272   :  { %9856 = vst [vmem:[#allocation7_spill] sm:$0xff] %v8514_v45 }
 0x273   :  { %9858 = vst [vmem:[#allocation10_spill] sm:$0xff] %v8519_v40  ;;  %v6030_v7 = vpop.f32.mrb[30].mxu0 }
 0x274   :  { %v8529_v23 = vadd.f32 %v6030_v7, %v8187_v16  ;;  %v3273_v19 = vpop.f32.mrb[31].mxu0  ;;  %v8543_v16 = vpop.permute.xlu0 %3611  ;;  %v9865_v7 = vld [vmem:[#allocation85_spill] sm:$0xff] }
 0x275   :  { %v8534_v8 = vadd.f32 %v3273_v19, %v8190_v49 }
 0x276   :  { %9861 = vst [vmem:[#allocation87_spill] sm:$0xff] %v8529_v23 }
 0x277   :  { %9862 = vst [vmem:[#allocation89_spill] sm:$0xff] %v8534_v8  ;;  %v6033_v30 = vpop.f32.mrb[32].mxu0 }
 0x278   :  { %v6355_v48 = vadd.f32 %v6033_v30, %v8193_v10  ;;  %v3285_v19 = vpop.f32.mrb[33].mxu0 }
 0x279   :  { %v6356_v3 = vadd.f32 %v3285_v19, %v8196_v24 }
 0x27a   :  { %v3892_v30 = vsub.f32 %v6355_v48, %v8253_v41  ;;  %v9866_v41 = vld [vmem:[#allocation34_spill] sm:$0xff] }
 0x27b   :  { %v3891_v19 = vsub.f32 %v6356_v3, %v8250_v35  ;;  %v6036_v51 = vpop.f32.mrb[34].mxu0  ;;  %v9870_v3 = vld [vmem:[#allocation67_spill] sm:$0xff] }
 0x27c   :  { %v3924_v50 = vmul.f32 %v3892_v30, %v3860_v25  ;;  %v6357_v48 = vadd.f32 %v6036_v51, %v9866_v41  ;;  %v3297_v47 = vpop.f32.mrb[35].mxu0  ;;  %v9872_v25 = vld [vmem:[#allocation53_spill] sm:$0xff]  ;;  %v9879_v41 = vld [vmem:[#allocation38_spill] sm:$0xff] }
 0x27d   :  { %v3923_v24 = vmul.f32 %v3891_v19, %v3859_v37  ;;  %v6358_v35 = vadd.f32 %v3297_v47, %v9869_v6  ;;  %v9882_v6 = vld [vmem:[#allocation48_spill] sm:$0xff] }
 0x27e   :  { %v3967_v10 = vand.u32 4294901760, %v3924_v50  ;;  %v3894_v30 = vsub.f32 %v6357_v48, %v9872_v25 }
 0x27f   :  { %v3964_v31 = vand.u32 4294901760, %v3923_v24  ;;  %v3893_v37 = vsub.f32 %v6358_v35, %v9875_v29  ;;  %v6039_v19 = vpop.f32.mrb[36].mxu0  ;;  %v9888_v29 = vld [vmem:[#allocation11_spill] sm:$0xff] }
 0x280   :  { %v8605_v47 = vsub.f32 %v3924_v50, %v3967_v10  ;;  %v3926_v62 = vmul.f32 %v3894_v30, %v3862_v44  ;;  %v6359_v59 = vadd.f32 %v6039_v19, %v9877_v18  ;;  %v3309_v56 = vpop.f32.mrb[37].mxu0  ;;  %v9883_v18 = vld [vmem:[#allocation47_spill] sm:$0xff] }
 0x281   :  { %v8608_v48 = vsub.f32 %v3923_v24, %v3964_v31  ;;  %v3925_v25 = vmul.f32 %v3893_v37, %v3861_v2  ;;  %v6360_v51 = vadd.f32 %v3309_v56, %v9879_v41  ;;  %v8611_v45 = vpack.c.bf16 %v3967_v10, %v3964_v31  ;;  %v9885_v31 = vld [vmem:[#allocation69_spill] sm:$0xff]  ;;  %v9886_v10 = vld [vmem:[#allocation39_spill] sm:$0xff]  ;;  %v9893_v2 = vld [vmem:[#allocation40_spill] sm:$0xff] }
 0x282   :  { %9876 = vst [vmem:[#allocation30_spill] sm:$0xff] %v8605_v47  ;;  %v3973_v49 = vand.u32 4294901760, %v3926_v62  ;;  %v3896_v50 = vsub.f32 %v6359_v59, %v9882_v6  ;;  %v9887_v41 = vsub.f32 %v9885_v31, %v9886_v10  ;;  %v9889_v59 = vand.u32 4294901760, %v8605_v47  ;;  %v9895_v10 = vld [vmem:[#allocation2_spill] sm:$0xff] }
 0x283   :  { %9878 = vst [vmem:[#allocation5_spill] sm:$0xff] %v8608_v48  ;;  %9880 = vst [vmem:[#allocation32_spill] sm:$0xff] %v8611_v45  ;;  %v3970_v30 = vand.u32 4294901760, %v3925_v25  ;;  %v3895_v19 = vsub.f32 %v6360_v51, %v9883_v18  ;;  %v6042_v24 = vpop.f32.mrb[38].mxu0  ;;  %v9890_v51 = vld [vmem:[#allocation73_spill] sm:$0xff]  ;;  %v9891_v18 = vld [vmem:[#allocation35_spill] sm:$0xff] }
 0x284   :  { %v8621_v56 = vsub.f32 %v3926_v62, %v3973_v49  ;;  %v3928_v37 = vmul.f32 %v3896_v50, %v9887_v41  ;;  %v6361_v35 = vadd.f32 %v6042_v24, %v9888_v29  ;;  %v3321_v46 = vpop.f32.mrb[39].mxu0  ;;  %v4086_v6 = vsub.f32 %v8605_v47, %v9889_v59  ;;  %v9897_v47 = vld [vmem:[#allocation64_spill] sm:$0xff] }
 0x285   :  { %v8630_v44 = vsub.f32 %v3925_v25, %v3970_v30  ;;  %v9892_v8 = vsub.f32 %v9890_v51, %v9891_v18  ;;  %v6362_v62 = vadd.f32 %v3321_v46, %v9893_v2  ;;  %v8636_v23 = vpack.c.bf16 %v3973_v49, %v3970_v30  ;;  %v9899_v30 = vld [vmem:[#allocation12_spill] sm:$0xff]  ;;  %v9901_v25 = vld [vmem:[#allocation43_spill] sm:$0xff] }
 0x286   :  { %9884 = vst [vmem:[#allocation85_spill] sm:$0xff] %v8621_v56  ;;  %v3979_v50 = vand.u32 4294901760, %v3928_v37  ;;  %v3898_v29 = vsub.f32 %v6361_v35, %v9895_v10  ;;  %v9896_v24 = vand.u32 4294901760, %v8608_v48  ;;  %v9898_v46 = vsub.f32 %v8411_v20, %v8346_v9 }
 0x287   :  { %v3927_v61 = vmul.f32 %v3895_v19, %v9892_v8  ;;  %9894 = vst [vmem:[#allocation34_spill] sm:$0xff] %v8636_v23  ;;  %v3897_v40 = vsub.f32 %v6362_v62, %v9897_v47  ;;  %v6045_v51 = vpop.f32.mrb[40].mxu0  ;;  %v4087_v8 = vand.u32 4294901760, %v4086_v6 }
 0x288   :  { %v4079_v41 = vsub.f32 %v8608_v48, %v9896_v24  ;;  %v8645_v19 = vsub.f32 %v3928_v37, %v3979_v50  ;;  %v3930_v49 = vmul.f32 %v3898_v29, %v9898_v46  ;;  %v6363_v2 = vadd.f32 %v6045_v51, %v9899_v30  ;;  %v3333_v35 = vpop.f32.mrb[41].mxu0  ;;  %v9903_v48 = vld [vmem:[#allocation75_spill] sm:$0xff] }
 0x289   :  { %v3976_v59 = vand.u32 4294901760, %v3927_v61  ;;  %v9900_v24 = vsub.f32 %v8414_v36, %v8344_v13  ;;  %v6364_v47 = vadd.f32 %v3333_v35, %v9901_v25  ;;  %v9905_v13 = vand.u32 4294901760, %v8630_v44 }
 0x28a   :  { %v4080_v18 = vand.u32 4294901760, %v4079_v41  ;;  %v3985_v6 = vand.u32 4294901760, %v3930_v49  ;;  %v3900_v9 = vsub.f32 %v6363_v2, %v9903_v48  ;;  %v9908_v30 = vand.u32 4294901760, %v8621_v56 }
 0x28b   :  { %v8651_v10 = vsub.f32 %v3927_v61, %v3976_v59  ;;  %v3929_v31 = vmul.f32 %v3897_v40, %v9900_v24  ;;  %v8657_v62 = vpack.c.bf16 %v3979_v50, %v3976_v59  ;;  %v9904_v61 = vld [vmem:[#allocation74_spill] sm:$0xff]  ;;  %v6048_v46 = vpop.f32.mrb[42].mxu0  ;;  %v4093_v36 = vsub.f32 %v8630_v44, %v9905_v13  ;;  %v9907_v59 = vld [vmem:[#allocation15_spill] sm:$0xff] }
 0x28c   :  { %v8661_v20 = vpack.c.bf16 %v4087_v8, %v4080_v18  ;;  %v3899_v51 = vsub.f32 %v6364_v47, %v9904_v61  ;;  %v8668_v40 = vsub.f32 %v3930_v49, %v3985_v6  ;;  %v9906_v50 = vsub.f32 %v8421_v54, %v8362_v0  ;;  %v3345_v8 = vpop.f32.mrb[43].mxu0  ;;  %v9910_v47 = vld [vmem:[#allocation16_spill] sm:$0xff] }
 0x28d   :  { %9902 = vst [vmem:[#allocation65_spill] sm:$0xff] %v8657_v62  ;;  %v3982_v41 = vand.u32 4294901760, %v3929_v31  ;;  %v6365_v48 = vadd.f32 %v6048_v46, %v9907_v59  ;;  %v4100_v2 = vsub.f32 %v8621_v56, %v9908_v30  ;;  %v9909_v18 = vsub.f32 %v8424_v11, %v8360_v5  ;;  %v9913_v30 = vld [vmem:[#allocation77_spill] sm:$0xff] }
 0x28e   :  { %v3932_v25 = vmul.f32 %v3900_v9, %v9906_v50  ;;  %v6366_v49 = vadd.f32 %v3345_v8, %v9910_v47  ;;  %v9912_v9 = vld [vmem:[#allocation78_spill] sm:$0xff]  ;;  %v4094_v13 = vand.u32 4294901760, %v4093_v36  ;;  %v9914_v5 = vsub.f32 %v8427_v15, %v8418_v60 }
 0x28f   :  { %v8677_v35 = vsub.f32 %v3929_v31, %v3982_v41  ;;  %v3931_v24 = vmul.f32 %v3899_v51, %v9909_v18  ;;  %v8683_v61 = vpack.c.bf16 %v3985_v6, %v3982_v41  ;;  %v3902_v46 = vsub.f32 %v6365_v48, %v9912_v9  ;;  %v6051_v37 = vpop.f32.mrb[44].mxu0  ;;  %v9915_v6 = vld [vmem:[#allocation50_spill] sm:$0xff] }
 0x290   :  { %v3991_v54 = vand.u32 4294901760, %v3932_v25  ;;  %v3901_v31 = vsub.f32 %v6366_v49, %v9913_v30  ;;  %v4101_v29 = vand.u32 4294901760, %v4100_v2  ;;  %v6367_v41 = vadd.f32 %v6051_v37, %v9915_v6  ;;  %v3357_v51 = vpop.f32.mrb[45].mxu0  ;;  %v9918_v2 = vld [vmem:[#allocation17_spill] sm:$0xff]  ;;  %v9920_v9 = vld [vmem:[#allocation86_spill] sm:$0xff] }
 0x291   :  { %9911 = vst [vmem:[#allocation9_spill] sm:$0xff] %v8683_v61  ;;  %v9441_v50 = vand.u32 4294901760, %v8677_v35  ;;  %v3988_v59 = vand.u32 4294901760, %v3931_v24  ;;  %v3934_v11 = vmul.f32 %v3902_v46, %v9914_v5  ;;  %v9916_v8 = vand.u32 4294901760, %v8651_v10 }
 0x292   :  { %v8689_v56 = vsub.f32 %v3932_v25, %v3991_v54  ;;  %v9917_v18 = vsub.f32 %v8432_v52, %v8416_v55  ;;  %v6368_v25 = vadd.f32 %v3357_v51, %v9918_v2  ;;  %v3904_v37 = vsub.f32 %v6367_v41, %v9920_v9 }
 0x293   :  { %v4107_v36 = vsub.f32 %v8651_v10, %v9916_v8  ;;  %v8698_v48 = vsub.f32 %v3931_v24, %v3988_v59  ;;  %v8704_v49 = vpack.c.bf16 %v3991_v54, %v3988_v59  ;;  %v3997_v15 = vand.u32 4294901760, %v3934_v11  ;;  %v9921_v24 = vld [vmem:[#allocation84_spill] sm:$0xff]  ;;  %v6054_v8 = vpop.f32.mrb[46].mxu0  ;;  %v9923_v59 = vld [vmem:[#allocation18_spill] sm:$0xff] }
 0x294   :  { %v3933_v47 = vmul.f32 %v3901_v31, %v9917_v18  ;;  %v9444_v60 = vand.u32 4294901760, %v8689_v56  ;;  %v8708_v46 = vpack.c.bf16 %v4101_v29, %v4094_v13  ;;  %v3903_v6 = vsub.f32 %v6368_v25, %v9921_v24  ;;  %v3369_v51 = vpop.f32.mrb[47].mxu0  ;;  %v3777_v13 = vpop.permute.xlu1 %3776 }
 0x295   :  { %9919 = vst [vmem:[#allocation67_spill] sm:$0xff] %v8704_v49  ;;  %v9442_v30 = vand.u32 4294901760, %v8698_v48  ;;  %v4108_v0 = vand.u32 4294901760, %v4107_v36  ;;  %v8712_v55 = vsub.f32 %v3934_v11, %v3997_v15  ;;  %v9922_v52 = vsub.f32 %v8437_v34, %v8470_v33  ;;  %v9926_v11 = vld [vmem:[#allocation52_spill] sm:$0xff]  ;;  %v3772_v34 = vpop.permute.xlu0 %3771 }
 0x296   :  { %v3994_v5 = vand.u32 4294901760, %v3933_v47  ;;  %v6369_v31 = vadd.f32 %v6054_v8, %v9923_v59  ;;  %v9924_v41 = vand.u32 4294901760, %v8645_v19  ;;  %v9925_v2 = vsub.f32 %v8440_v12, %v8468_v28 }
 0x297   :  { %v3936_v54 = vmul.f32 %v3904_v37, %v9922_v52  ;;  %v6370_v25 = vadd.f32 %v3369_v51, %v9926_v11  ;;  %v4121_v12 = vsub.f32 %v8677_v35, %v9441_v50 }
 0x298   :  { %v4114_v29 = vsub.f32 %v8645_v19, %v9924_v41  ;;  %v8721_v18 = vsub.f32 %v3933_v47, %v3994_v5  ;;  %v3935_v36 = vmul.f32 %v3903_v6, %v9925_v2  ;;  %v8727_v9 = vpack.c.bf16 %v3997_v15, %v3994_v5  ;;  %v6057_v47 = vpop.f32.mrb[48].mxu0  ;;  %v9929_v6 = vld [vmem:[#allocation20_spill] sm:$0xff] }
 0x299   :  { %v4003_v37 = vand.u32 4294901760, %v3936_v54  ;;  %v3906_v24 = vsub.f32 %v6369_v31, %v3777_v13  ;;  %v3905_v41 = vsub.f32 %v6370_v25, %v3772_v34  ;;  %v9928_v15 = vsub.f32 %v8447_v21, %v8553_v57  ;;  %v3381_v2 = vpop.f32.mrb[49].mxu0  ;;  %v9931_v25 = vld [vmem:[#allocation21_spill] sm:$0xff]  ;;  %v9933_v21 = vld [vmem:[#allocation44_spill] sm:$0xff] }
 0x29a   :  { %9927 = vst [vmem:[#allocation53_spill] sm:$0xff] %v8727_v9  ;;  %v4115_v8 = vand.u32 4294901760, %v4114_v29  ;;  %v9443_v52 = vand.u32 4294901760, %v8721_v18  ;;  %v4000_v59 = vand.u32 4294901760, %v3935_v36  ;;  %v6371_v51 = vadd.f32 %v6057_v47, %v9929_v6 }
 0x29b   :  { %v8734_v28 = vsub.f32 %v3936_v54, %v4003_v37  ;;  %v3938_v5 = vmul.f32 %v3906_v24, %v9928_v15  ;;  %v9930_v13 = vsub.f32 %v8450_v14, %v8543_v16  ;;  %v6372_v34 = vadd.f32 %v3381_v2, %v9931_v25  ;;  %v6060_v15 = vpop.f32.mrb[50].mxu0 }
 0x29c   :  { %v8740_v31 = vpack.c.bf16 %v4115_v8, %v4108_v0  ;;  %v8742_v29 = vsub.f32 %v3935_v36, %v4000_v59  ;;  %v8748_v50 = vpack.c.bf16 %v4003_v37, %v4000_v59  ;;  %v3908_v57 = vsub.f32 %v6371_v51, %v9933_v21  ;;  %v9934_v8 = vld [vmem:[#allocation13_spill] sm:$0xff]  ;;  %v3393_v51 = vpop.f32.mrb[51].mxu0 }
 0x29d   :  { %v3937_v11 = vmul.f32 %v3905_v41, %v9930_v13  ;;  %v4009_v33 = vand.u32 4294901760, %v3938_v5  ;;  %v4122_v24 = vand.u32 4294901760, %v4121_v12  ;;  %v3907_v36 = vsub.f32 %v6372_v34, %v9934_v8  ;;  %v9937_v41 = vld [vmem:[#allocation22_spill] sm:$0xff] }
 0x29e   :  { %9932 = vst [vmem:[#allocation19_spill] sm:$0xff] %v8748_v50  ;;  %v9935_v6 = vand.u32 4294901760, %v8668_v40  ;;  %v9936_v37 = vsub.f32 %v8453_v63, %v8236_v32  ;;  %v6373_v2 = vadd.f32 %v6060_v15, %v9937_v41  ;;  %v8766_v12 = vsub.f32 %v8698_v48, %v9442_v30  ;;  %v9941_v63 = vld [vmem:[#allocation45_spill] sm:$0xff]  ;;  %v9942_v41 = vld [vmem:[#allocation14_spill] sm:$0xff] }
 0x29f   :  { %v4006_v0 = vand.u32 4294901760, %v3937_v11  ;;  %v8757_v16 = vsub.f32 %v3938_v5, %v4009_v33  ;;  %v9938_v25 = vsub.f32 %v8458_v39, %v8229_v58  ;;  %v9939_v5 = vld [vmem:[#allocation23_spill] sm:$0xff]  ;;  %v9943_v58 = vsub.f32 %v8463_v1, %v8259_v26  ;;  %v9949_v32 = vld [vmem:[#allocation29_spill] sm:$0xff] }
 0x2a0   :  { %v4128_v14 = vsub.f32 %v8668_v40, %v9935_v6  ;;  %v3940_v59 = vmul.f32 %v3908_v57, %v9936_v37  ;;  %v6374_v21 = vadd.f32 %v3393_v51, %v9939_v5  ;;  %v3910_v57 = vsub.f32 %v6373_v2, %v9941_v63  ;;  %v9947_v5 = vld [vmem:[#allocation63_spill] sm:$0xff] }
 0x2a1   :  { %v8768_v13 = vsub.f32 %v3937_v11, %v4006_v0  ;;  %v3939_v34 = vmul.f32 %v3907_v36, %v9938_v25  ;;  %v8774_v8 = vpack.c.bf16 %v4009_v33, %v4006_v0  ;;  %v6063_v11 = vpop.f32.mrb[52].mxu0  ;;  %v9944_v33 = vld [vmem:[#allocation25_spill] sm:$0xff] }
 0x2a2   :  { %v4015_v15 = vand.u32 4294901760, %v3940_v59  ;;  %v4129_v6 = vand.u32 4294901760, %v4128_v14  ;;  %v3909_v30 = vsub.f32 %v6374_v21, %v9942_v41  ;;  %v3942_v39 = vmul.f32 %v3910_v57, %v9943_v58  ;;  %v3405_v36 = vpop.f32.mrb[53].mxu0 }
 0x2a3   :  { %9940 = vst [vmem:[#allocation36_spill] sm:$0xff] %v8774_v8  ;;  %v4012_v54 = vand.u32 4294901760, %v3939_v34  ;;  %v6375_v0 = vadd.f32 %v6063_v11, %v9944_v33  ;;  %v9946_v14 = vsub.f32 %v8466_v4, %v8257_v27  ;;  %v6376_v21 = vadd.f32 %v3405_v36, %v9947_v5  ;;  %v6066_v27 = vpop.f32.mrb[54].mxu0  ;;  %v9953_v11 = vld [vmem:[#allocation31_spill] sm:$0xff]  ;;  %v9955_v5 = vld [vmem:[#allocation57_spill] sm:$0xff] }
 0x2a4   :  { %v8785_v51 = vsub.f32 %v3940_v59, %v4015_v15  ;;  %v8787_v2 = vpack.c.bf16 %v4129_v6, %v4122_v24  ;;  %v4021_v1 = vand.u32 4294901760, %v3942_v39  ;;  %v8802_v24 = vsub.f32 %v8689_v56, %v9444_v60  ;;  %v9950_v59 = vld [vmem:[#allocation28_spill] sm:$0xff]  ;;  %v3417_v33 = vpop.f32.mrb[55].mxu0 }
 0x2a5   :  { %v3941_v25 = vmul.f32 %v3909_v30, %v9946_v14  ;;  %v8793_v63 = vpack.c.bf16 %v4015_v15, %v4012_v54  ;;  %v8795_v41 = vsub.f32 %v3939_v34, %v4012_v54  ;;  %v3912_v26 = vsub.f32 %v6375_v0, %v9949_v32  ;;  %v9951_v34 = vld [vmem:[#allocation58_spill] sm:$0xff]  ;;  %v9954_v14 = vld [vmem:[#allocation83_spill] sm:$0xff] }
 0x2a6   :  { %9945 = vst [vmem:[#allocation38_spill] sm:$0xff] %v8787_v2  ;;  %v9445_v57 = vand.u32 4294901760, %v8785_v51  ;;  %v3911_v6 = vsub.f32 %v6376_v21, %v9950_v59  ;;  %v8810_v54 = vsub.f32 %v8721_v18, %v9443_v52  ;;  %v9952_v32 = vsub.f32 %v8473_v17, %v9951_v34  ;;  %v9957_v52 = vld [vmem:[#allocation33_spill] sm:$0xff] }
 0x2a7   :  { %9948 = vst [vmem:[#allocation48_spill] sm:$0xff] %v8793_v63  ;;  %6128 = vmatprep.subr.bf16.mxu1 %v8793_v63  ;;  %v4018_v4 = vand.u32 4294901760, %v3941_v25  ;;  %v9446_v30 = vand.u32 4294901760, %v8795_v41  ;;  %v6377_v58 = vadd.f32 %v6066_v27, %v9953_v11  ;;  %v8817_v0 = vsub.f32 %v3942_v39, %v4021_v1  ;;  %v9960_v11 = vld [vmem:[#allocation60_spill] sm:$0xff]  ;;  %v6069_v47 = vpop.f32.mrb[56].mxu0 }
 0x2a8   :  { %v3944_v15 = vmul.f32 %v3912_v26, %v9952_v32  ;;  %6130 = vmatpush3.bf16.msra.mxu1 %v8611_v45  ;;  %v4198_v36 = vsub.f32 %v8785_v51, %v9445_v57  ;;  %v9956_v21 = vsub.f32 %v9954_v14, %v9955_v5  ;;  %v6378_v60 = vadd.f32 %v3417_v33, %v9957_v52  ;;  %v9959_v26 = vld [vmem:[#allocation61_spill] sm:$0xff]  ;;  %v3429_v5 = vpop.f32.mrb[57].mxu0 }
 0x2a9   :  { %v8826_v37 = vpack.c.bf16 %v4021_v1, %v4018_v4  ;;  %v8828_v17 = vsub.f32 %v3941_v25, %v4018_v4  ;;  %v3914_v27 = vsub.f32 %v6377_v58, %v9959_v26  ;;  %v4191_v39 = vsub.f32 %v8795_v41, %v9446_v30  ;;  %v9961_v25 = vld [vmem:[#allocation56_spill] sm:$0xff]  ;;  %v9963_v33 = vld [vmem:[#allocation37_spill] sm:$0xff] }
 0x2aa   :  { %v3943_v59 = vmul.f32 %v3911_v6, %v9956_v21  ;;  %v4027_v34 = vand.u32 4294901760, %v3944_v15  ;;  %v4199_v32 = vand.u32 4294901760, %v4198_v36  ;;  %v3913_v57 = vsub.f32 %v6378_v60, %v9960_v11  ;;  %v9964_v21 = vld [vmem:[#allocation54_spill] sm:$0xff]  ;;  %v9966_v30 = vld [vmem:[#allocation41_spill] sm:$0xff] }
 0x2ab   :  { %9958 = vst [vmem:[#allocation47_spill] sm:$0xff] %v8826_v37  ;;  %6132 = vmatprep.subr.bf16.mxu1 %v8826_v37  ;;  %v9962_v4 = vsub.f32 %v8482_v43, %v9961_v25  ;;  %v6379_v14 = vadd.f32 %v6069_v47, %v9963_v33  ;;  %v4192_v60 = vand.u32 4294901760, %v4191_v39  ;;  %v9965_v26 = vsub.f32 %v9865_v7, %v9964_v21  ;;  %v9968_v43 = vld [vmem:[#allocation71_spill] sm:$0xff]  ;;  %v9970_v39 = vld [vmem:[#allocation70_spill] sm:$0xff] }
 0x2ac   :  { %v4024_v6 = vand.u32 4294901760, %v3943_v59  ;;  %6134 = vmatpush3.bf16.msra.mxu1 %v8636_v23  ;;  %v8843_v36 = vsub.f32 %v3944_v15, %v4027_v34  ;;  %v6380_v52 = vadd.f32 %v3429_v5, %v9966_v30  ;;  %v6072_v23 = vpop.f32.mrb[58].mxu0  ;;  %v10028_v63 = vand.u32 4294901760, %v8817_v0 }
 0x2ad   :  { %v3946_v58 = vmul.f32 %v3914_v27, %v9962_v4  ;;  %v3945_v11 = vmul.f32 %v3913_v57, %v9965_v26  ;;  %v3916_v27 = vsub.f32 %v6379_v14, %v9968_v43  ;;  %v8854_v47 = vpack.c.bf16 %v4199_v32, %v4192_v60  ;;  %v9974_v14 = vld [vmem:[#allocation42_spill] sm:$0xff]  ;;  %v3441_v60 = vpop.f32.mrb[59].mxu0 }
 0x2ae   :  { %v8849_v37 = vpack.c.bf16 %v4027_v34, %v4024_v6  ;;  %v8851_v1 = vsub.f32 %v3943_v59, %v4024_v6  ;;  %v9969_v4 = vand.u32 4294901760, %v8828_v17  ;;  %v3915_v33 = vsub.f32 %v6380_v52, %v9970_v39  ;;  %v9972_v34 = vld [vmem:[#allocation66_spill] sm:$0xff] }
 0x2af   :  { %v4033_v25 = vand.u32 4294901760, %v3946_v58  ;;  %v4030_v7 = vand.u32 4294901760, %v3945_v11  ;;  %v9971_v57 = vand.u32 4294901760, %v8817_v0  ;;  %v9973_v32 = vsub.f32 %v8494_v42, %v9972_v34  ;;  %v9978_v42 = vld [vmem:[#allocation76_spill] sm:$0xff] }
 0x2b0   :  { %9967 = vst [vmem:[#allocation69_spill] sm:$0xff] %v8849_v37  ;;  %v4205_v15 = vsub.f32 %v8828_v17, %v9969_v4  ;;  %6136 = vmatprep.subr.bf16.mxu1 %v8849_v37  ;;  %v6381_v5 = vadd.f32 %v6072_v23, %v9974_v14  ;;  %v9975_v26 = vsub.f32 %v8497_v53, %v9868_v22  ;;  %v9976_v4 = vld [vmem:[#allocation46_spill] sm:$0xff]  ;;  %v9980_v14 = vld [vmem:[#allocation72_spill] sm:$0xff]  ;;  %v9999_v37 = vld [vmem:[#allocation59_spill] sm:$0xff] }
 0x2b1   :  { %v4212_v30 = vsub.f32 %v8817_v0, %v9971_v57  ;;  %v3948_v6 = vmul.f32 %v3916_v27, %v9973_v32  ;;  %6138 = vmatpush3.bf16.msra.mxu1 %v8657_v62  ;;  %v8870_v52 = vsub.f32 %v3946_v58, %v4033_v25  ;;  %v6382_v39 = vadd.f32 %v3441_v60, %v9976_v4  ;;  %v6075_v62 = vpop.f32.mrb[60].mxu0  ;;  %v9983_v4 = vld [vmem:[#allocation6_spill] sm:$0xff] }
 0x2b2   :  { %v4206_v21 = vand.u32 4294901760, %v4205_v15  ;;  %v3947_v43 = vmul.f32 %v3915_v33, %v9975_v26  ;;  %v8876_v57 = vpack.c.bf16 %v4033_v25, %v4030_v7  ;;  %v8878_v59 = vsub.f32 %v3945_v11, %v4030_v7  ;;  %v9982_v7 = vld [vmem:[#allocation49_spill] sm:$0xff] }
 0x2b3   :  { %v3918_v27 = vsub.f32 %v6381_v5, %v9978_v42  ;;  %v4039_v34 = vand.u32 4294901760, %v3948_v6  ;;  %v4213_v23 = vand.u32 4294901760, %v4212_v30  ;;  %v9979_v32 = vand.u32 4294901760, %v8851_v1  ;;  %v3453_v5 = vpop.f32.mrb[61].mxu0 }
 0x2b4   :  { %9977 = vst [vmem:[#allocation39_spill] sm:$0xff] %v8876_v57  ;;  %v3917_v15 = vsub.f32 %v6382_v39, %v9980_v14  ;;  %6140 = vmatprep.subr.bf16.mxu1 %v8876_v57  ;;  %v4036_v53 = vand.u32 4294901760, %v3947_v43  ;;  %v9981_v11 = vsub.f32 %v8507_v38, %v9870_v3  ;;  %v6383_v30 = vadd.f32 %v6075_v62, %v9982_v7  ;;  %v9984_v39 = vld [vmem:[#allocation27_spill] sm:$0xff]  ;;  %v9988_v38 = vld [vmem:[#allocation82_spill] sm:$0xff]  ;;  %v6078_v7 = vpop.f32.mrb[62].mxu0 }
 0x2b5   :  { %v4219_v58 = vsub.f32 %v8851_v1, %v9979_v32  ;;  %6142 = vmatpush3.bf16.msra.mxu1 %v8683_v61  ;;  %v8893_v60 = vsub.f32 %v3948_v6, %v4039_v34  ;;  %v8895_v26 = vpack.c.bf16 %v4213_v23, %v4206_v21  ;;  %v9985_v42 = vsub.f32 %v9983_v4, %v9984_v39  ;;  %v9986_v14 = vld [vmem:[#allocation51_spill] sm:$0xff]  ;;  %v9990_v21 = vld [vmem:[#allocation81_spill] sm:$0xff] }
 0x2b6   :  { %v3950_v33 = vmul.f32 %v3918_v27, %v9981_v11  ;;  %v6384_v22 = vadd.f32 %v3453_v5, %v9986_v14  ;;  %v8901_v25 = vpack.c.bf16 %v4039_v34, %v4036_v53  ;;  %v8903_v57 = vsub.f32 %v3947_v43, %v4036_v53  ;;  %v9992_v53 = vld [vmem:[#allocation7_spill] sm:$0xff]  ;;  %v3465_v14 = vpop.f32.mrb[63].mxu0 }
 0x2b7   :  { %v3949_v32 = vmul.f32 %v3917_v15, %v9985_v42  ;;  %v3920_v3 = vsub.f32 %v6383_v30, %v9988_v38  ;;  %v4220_v27 = vand.u32 4294901760, %v4219_v58  ;;  %v9989_v11 = vand.u32 4294901760, %v8843_v36  ;;  %v9993_v30 = vld [vmem:[#allocation80_spill] sm:$0xff]  ;;  %v9995_v39 = vld [vmem:[#allocation55_spill] sm:$0xff] }
 0x2b8   :  { %9987 = vst [vmem:[#allocation11_spill] sm:$0xff] %v8901_v25  ;;  %v4045_v62 = vand.u32 4294901760, %v3950_v33  ;;  %v3919_v23 = vsub.f32 %v6384_v22, %v9990_v21  ;;  %6144 = vmatprep.subr.bf16.mxu1 %v8901_v25  ;;  %v9991_v5 = vand.u32 4294901760, %v8878_v59  ;;  %v9994_v4 = vsub.f32 %v9992_v53, %v9993_v30  ;;  %v9997_v21 = vld [vmem:[#allocation79_spill] sm:$0xff]  ;;  %v10001_v53 = vld [vmem:[#allocation24_spill] sm:$0xff] }
 0x2b9   :  { %v4226_v6 = vsub.f32 %v8843_v36, %v9989_v11  ;;  %v4042_v15 = vand.u32 4294901760, %v3949_v32  ;;  %v6385_v42 = vadd.f32 %v6078_v7, %v9995_v39  ;;  %6146 = vmatpush3.bf16.msra.mxu1 %v8704_v49  ;;  %v9996_v11 = vld [vmem:[#allocation10_spill] sm:$0xff]  ;;  %v10002_v39 = vld [vmem:[#allocation8_spill] sm:$0xff]  ;;  %v10027_v49 = vand.u32 4294901760, %v8828_v17 }
 0x2ba   :  { %v4233_v34 = vsub.f32 %v8878_v59, %v9991_v5  ;;  %v3952_v58 = vmul.f32 %v3920_v3, %v9994_v4  ;;  %v8920_v22 = vsub.f32 %v3950_v33, %v4045_v62  ;;  %v9998_v25 = vsub.f32 %v9996_v11, %v9997_v21 }
 0x2bb   :  { %v4227_v38 = vand.u32 4294901760, %v4226_v6  ;;  %v6386_v5 = vadd.f32 %v3465_v14, %v9999_v37  ;;  %v8926_v45 = vpack.c.bf16 %v4045_v62, %v4042_v15  ;;  %v8928_v43 = vsub.f32 %v3949_v32, %v4042_v15  ;;  %v10004_v62 = vld [vmem:[#allocation87_spill] sm:$0xff]  ;;  %v10005_v32 = vld [vmem:[#allocation4_spill] sm:$0xff]  ;;  %v10007_v14 = vld [vmem:[#allocation89_spill] sm:$0xff] }
 0x2bc   :  { %v3951_v61 = vmul.f32 %v3919_v23, %v9998_v25  ;;  %v3922_v3 = vsub.f32 %v6385_v42, %v10001_v53  ;;  %v4051_v30 = vand.u32 4294901760, %v3952_v58  ;;  %v4234_v4 = vand.u32 4294901760, %v4233_v34 }
 0x2bd   :  { %10000 = vst [vmem:[#allocation73_spill] sm:$0xff] %v8926_v45  ;;  %v8931_v7 = vpack.c.bf16 %v4227_v38, %v4220_v27  ;;  %v3921_v33 = vsub.f32 %v6386_v5, %v10002_v39  ;;  %6148 = vmatprep.subr.bf16.mxu1 %v8926_v45  ;;  %v10003_v11 = vand.u32 4294901760, %v8870_v52  ;;  %v10006_v23 = vsub.f32 %v10004_v62, %v10005_v32  ;;  %v10008_v38 = vld [vmem:[#allocation3_spill] sm:$0xff] }
 0x2be   :  { %v4048_v6 = vand.u32 4294901760, %v3951_v61  ;;  %6150 = vmatpush3.bf16.msra.mxu1 %v8727_v9  ;;  %v8943_v27 = vsub.f32 %v3952_v58, %v4051_v30  ;;  %v9465_v34 = vand.u32 4294901760, %v8893_v60  ;;  %v4143_v42 = vand.u32 4294901760, %v8802_v24 }
 0x2bf   :  { %v4240_v25 = vsub.f32 %v8870_v52, %v10003_v11  ;;  %v3954_v15 = vmul.f32 %v3922_v3, %v10006_v23  ;;  %v10009_v21 = vsub.f32 %v10007_v14, %v10008_v38  ;;  %v10011_v3 = vand.u32 4294901760, %v8903_v57 }
 0x2c0   :  { %v8950_v53 = vpack.c.bf16 %v4051_v30, %v4048_v6  ;;  %v8952_v39 = vsub.f32 %v3951_v61, %v4048_v6  ;;  %v4254_v58 = vsub.f32 %v8893_v60, %v9465_v34  ;;  %v10012_v24 = vand.u32 4294901760, %v8766_v12 }
 0x2c1   :  { %v3953_v5 = vmul.f32 %v3921_v33, %v10009_v21  ;;  %v4241_v11 = vand.u32 4294901760, %v4240_v25  ;;  %v4057_v37 = vand.u32 4294901760, %v3954_v15  ;;  %v4247_v62 = vsub.f32 %v8903_v57, %v10011_v3 }
 0x2c2   :  { %10010 = vst [vmem:[#allocation35_spill] sm:$0xff] %v8950_v53  ;;  %v8962_v32 = vpack.c.bf16 %v4143_v42, %v10012_v24  ;;  %6152 = vmatprep.subr.bf16.mxu1 %v8950_v53  ;;  %v9464_v61 = vand.u32 4294901760, %v8928_v43  ;;  %v9463_v6 = vand.u32 4294901760, %v8920_v22  ;;  %v4255_v14 = vand.u32 4294901760, %v4254_v58 }
 0x2c3   :  { %v4054_v30 = vand.u32 4294901760, %v3953_v5  ;;  %v8965_v33 = vpack.c.bf16 %v4241_v11, %v4234_v4  ;;  %6154 = vmatpush3.bf16.msra.mxu1 %v8748_v50  ;;  %v8970_v25 = vsub.f32 %v3954_v15, %v4057_v37  ;;  %v4248_v23 = vand.u32 4294901760, %v4247_v62  ;;  %v10019_v50 = vld [vmem:[#allocation26_spill] sm:$0xff] }
 0x2c4   :  { %10013 = vst [vmem:[#allocation40_spill] sm:$0xff] %v8962_v32  ;;  %v4150_v38 = vand.u32 4294901760, %v8810_v54  ;;  %v4261_v4 = vsub.f32 %v8928_v43, %v9464_v61  ;;  %v4268_v21 = vsub.f32 %v8920_v22, %v9463_v6  ;;  %v10016_v15 = vand.u32 4294901760, %v8712_v55 }
 0x2c5   :  { %v8973_v12 = vpack.c.bf16 %v4057_v37, %v4054_v30  ;;  %v8975_v42 = vsub.f32 %v3953_v5, %v4054_v30  ;;  %v8983_v11 = vpack.c.bf16 %v4255_v14, %v4248_v23  ;;  %v9472_v54 = vand.u32 4294901760, %v8952_v39 }
 0x2c6   :  { %v4156_v3 = vsub.f32 %v8712_v55, %v10016_v15  ;;  %v9475_v37 = vand.u32 4294901760, %v8943_v27  ;;  %v4262_v5 = vand.u32 4294901760, %v4261_v4  ;;  %v4269_v62 = vand.u32 4294901760, %v4268_v21 }
 0x2c7   :  { %10014 = vst [vmem:[#allocation2_spill] sm:$0xff] %v8973_v12  ;;  %10015 = vst [vmem:[#allocation64_spill] sm:$0xff] %v8983_v11  ;;  %6156 = vmatprep.subr.bf16.mxu1 %v8973_v12  ;;  %v10017_v58 = vand.u32 4294901760, %v8742_v29  ;;  %v10018_v30 = vand.u32 4294901760, %v8734_v28  ;;  %v4275_v15 = vsub.f32 %v8952_v39, %v9472_v54  ;;  %v4288_v21 = vand.u32 4294901760, %v8975_v42 }
 0x2c8   :  { %6158 = vmatpush3.bf16.msra.mxu1 %v8774_v8  ;;  %v4157_v14 = vand.u32 4294901760, %v4156_v3  ;;  %v4282_v4 = vsub.f32 %v8943_v27, %v9475_v37  ;;  %v10020_v54 = vand.u32 4294901760, %v10019_v50  ;;  %v10021_v9 = vand.u32 4294901760, %v8768_v13  ;;  %v10023_v50 = vld [vmem:[#allocation62_spill] sm:$0xff] }
 0x2c9   :  { %v4163_v24 = vsub.f32 %v8742_v29, %v10017_v58  ;;  %v4170_v23 = vsub.f32 %v8734_v28, %v10018_v30  ;;  %6160 = vmatprep.subr.bf16.mxu1 %v8854_v47  ;;  %v6179_v58 = vpack.c.bf16 %v4269_v62, %v4262_v5  ;;  %v4295_v30 = vand.u32 4294901760, %v8970_v25 }
 0x2ca   :  { %v6181_v34 = vpack.c.bf16 %v4157_v14, %v4150_v38  ;;  %v4276_v8 = vand.u32 4294901760, %v4275_v15  ;;  %v4283_v3 = vand.u32 4294901760, %v4282_v4  ;;  %v4289_v12 = vsub.f32 %v8975_v42, %v4288_v21  ;;  %v10024_v14 = vld [vmem:[#allocation85_spill] sm:$0xff] }
 0x2cb   :  { %v4164_v6 = vand.u32 4294901760, %v4163_v24  ;;  %v4171_v61 = vand.u32 4294901760, %v4170_v23  ;;  %4070 = vmatmul.mubr.f32.vlgmr.msra.gmra.mrb[64].mxu1 %v10020_v54  ;;  %v4296_v37 = vsub.f32 %v8970_v25, %v4295_v30  ;;  %v4177_v47 = vsub.f32 %v8768_v13, %v10021_v9 }
 0x2cc   :  { %v10022_v5 = vand.u32 4294901760, %v8757_v16  ;;  %6162 = vmatpush3.bf16.msra.mxu1 %v8661_v20  ;;  %v6183_v38 = vpack.c.bf16 %v4283_v3, %v4276_v8  ;;  %v4290_v24 = vand.u32 4294901760, %v4289_v12  ;;  %v6191_v23 = vpack.c.bf16 %v8785_v51, %v8795_v41  ;;  %4300 = vmatprep.mubr.f32.mxu1 %v10023_v50 }
 0x2cd   :  { %v6185_v53 = vpack.c.bf16 %v4171_v61, %v4164_v6  ;;  %v6195_v61 = vpack.c.bf16 %v8817_v0, %v8828_v17  ;;  %6164 = vmatprep.subr.bf16.mxu1 %v8895_v26  ;;  %v4297_v6 = vand.u32 4294901760, %v4296_v37  ;;  %v4178_v9 = vand.u32 4294901760, %v4177_v47 }
 0x2ce   :  { %v4184_v62 = vsub.f32 %v8757_v16, %v10022_v5  ;;  %v6197_v15 = vpack.c.bf16 %v10024_v14, %v8630_v44  ;;  %v6199_v20 = vpack.c.bf16 %v8843_v36, %v8851_v1  ;;  %v6201_v8 = vpack.c.bf16 %v8645_v19, %v8651_v10 }
 0x2cf   :  { %v6203_v12 = vpack.c.bf16 %v8870_v52, %v8878_v59  ;;  %v6205_v4 = vpack.c.bf16 %v8668_v40, %v8677_v35  ;;  %v6187_v3 = vpack.c.bf16 %v4297_v6, %v4290_v24  ;;  %v6207_v37 = vpack.c.bf16 %v8893_v60, %v8903_v57 }
 0x2d0   :  { %v4185_v54 = vand.u32 4294901760, %v4184_v62  ;;  %v6209_v47 = vpack.c.bf16 %v8689_v56, %v8698_v48  ;;  %6166 = vmatpush3.bf16.msra.mxu1 %v8708_v46  ;;  %v6211_v5 = vpack.c.bf16 %v8920_v22, %v8928_v43  ;;  %v6213_v62 = vpack.c.bf16 %v8712_v55, %v8721_v18 }
 0x2d1   :  { %v6215_v50 = vpack.c.bf16 %v8943_v27, %v8952_v39  ;;  %v6217_v24 = vpack.c.bf16 %v8734_v28, %v8742_v29  ;;  %6168 = vmatprep.subr.bf16.mxu1 %v8931_v7  ;;  %v6219_v6 = vpack.c.bf16 %v8970_v25, %v8975_v42  ;;  %v6221_v46 = vpack.c.bf16 %v8757_v16, %v8768_v13 }
 0x2d2   :  { %v6189_v26 = vpack.c.bf16 %v4185_v54, %v4178_v9  ;;  %v10025_v9 = vand.u32 4294901760, %v8795_v41  ;;  %v10026_v54 = vand.u32 4294901760, %v8785_v51  ;;  %v9060_v32 = vpack.c.bf16 %v10028_v63, %v10027_v49 }
 0x2d3   :  { %v10029_v11 = vand.u32 4294901760, %v8630_v44  ;;  %v10030_v7 = vand.u32 4294901760, %v10024_v14  ;;  %v10031_v25 = vand.u32 4294901760, %v8851_v1  ;;  %v10032_v42 = vand.u32 4294901760, %v8843_v36 }
 0x2d4   :  { %v6255_v45 = vpack.c.bf16 %v10026_v54, %v10025_v9  ;;  %v10033_v51 = vand.u32 4294901760, %v8651_v10  ;;  %v10034_v17 = vand.u32 4294901760, %v8645_v19  ;;  %v10035_v49 = vand.u32 4294901760, %v8878_v59  ;;  %6170 = vmatpush3.bf16.msra.mxu1 %v8740_v31 }
 0x2d5   :  { %v9066_v2 = vpack.c.bf16 %v10030_v7, %v10029_v11  ;;  %v9072_v41 = vpack.c.bf16 %v10032_v42, %v10031_v25  ;;  %v10036_v44 = vand.u32 4294901760, %v8870_v52  ;;  %v10037_v0 = vand.u32 4294901760, %v8677_v35  ;;  %6172 = vmatprep.subr.bf16.mxu1 %v8965_v33  ;;  %v10060_v33 = vld [vmem:[#allocation68_spill] sm:$0xff] }
 0x2d6   :  { %v9078_v9 = vpack.c.bf16 %v10034_v17, %v10033_v51  ;;  %v10038_v1 = vand.u32 4294901760, %v8668_v40  ;;  %v10039_v36 = vand.u32 4294901760, %v8903_v57  ;;  %v10040_v10 = vand.u32 4294901760, %v8893_v60  ;;  %v10055_v17 = vld [vmem:[#allocation40_spill] sm:$0xff] }
 0x2d7   :  { %v9084_v63 = vpack.c.bf16 %v10036_v44, %v10035_v49  ;;  %v10041_v19 = vand.u32 4294901760, %v8698_v48  ;;  %v10042_v59 = vand.u32 4294901760, %v8689_v56  ;;  %v10043_v35 = vand.u32 4294901760, %v8928_v43 }
 0x2d8   :  { %v9090_v11 = vpack.c.bf16 %v10038_v1, %v10037_v0  ;;  %v9096_v14 = vpack.c.bf16 %v10040_v10, %v10039_v36  ;;  %v10044_v40 = vand.u32 4294901760, %v8920_v22  ;;  %v10045_v57 = vand.u32 4294901760, %v8721_v18 }
 0x2d9   :  { %v9102_v54 = vpack.c.bf16 %v10042_v59, %v10041_v19  ;;  %v10046_v60 = vand.u32 4294901760, %v8712_v55  ;;  %v10047_v48 = vand.u32 4294901760, %v8952_v39  ;;  %v10048_v56 = vand.u32 4294901760, %v8943_v27  ;;  %v10053_v39 = vld [vmem:[#allocation38_spill] sm:$0xff]  ;;  %v10054_v27 = vld [vmem:[#allocation64_spill] sm:$0xff] }
 0x2da   :  { %v9109_v52 = vpack.c.bf16 %v10044_v40, %v10043_v35  ;;  %v10049_v31 = vand.u32 4294901760, %v8742_v29  ;;  %v10050_v43 = vand.u32 4294901760, %v8734_v28  ;;  %v9130_v22 = vpack.c.bf16 %v4295_v30, %v4288_v21  ;;  %6174 = vmatpush3.bf16.msra.mxu1 %v10053_v39  ;;  %v10056_v28 = vld [vmem:[#allocation88_spill] sm:$0xff]  ;;  %v10057_v29 = vld [vmem:[#allocation30_spill] sm:$0xff]  ;;  %v10065_v30 = vld [vmem:[#allocation47_spill] sm:$0xff] }
 0x2db   :  { %v9115_v7 = vpack.c.bf16 %v10046_v60, %v10045_v57  ;;  %v9121_v25 = vpack.c.bf16 %v10048_v56, %v10047_v48  ;;  %v10051_v55 = vand.u32 4294901760, %v8768_v13  ;;  %v10052_v18 = vand.u32 4294901760, %v8757_v16  ;;  %6176 = vmatprep.subr.bf16.mxu1 %v10054_v27  ;;  %v10058_v13 = vld [vmem:[#allocation5_spill] sm:$0xff]  ;;  %v10063_v21 = vld [vmem:[#allocation32_spill] sm:$0xff] }
 0x2dc   :  { %v9127_v42 = vpack.c.bf16 %v10050_v43, %v10049_v31  ;;  %v10059_v16 = vpack.c.bf16 %v10057_v29, %v10058_v13 }
 0x2dd   :  { %v9136_v51 = vpack.c.bf16 %v10052_v18, %v10051_v55 }
 0x2de   :  { %6178 = vmatpush3.bf16.msra.mxu1 %v10055_v17 }
 0x2df   :  { %6180 = vmatprep.subr.bf16.mxu1 %v6179_v58  ;;  %v10064_v58 = vand.u32 4294901760, %v10060_v33 }
 0x2e2   :  { %6182 = vmatpush3.bf16.msra.mxu1 %v6181_v34  ;;  %v10061_v34 = vld [vmem:[#allocation48_spill] sm:$0xff] }
 0x2e3   :  { %6184 = vmatprep.subr.bf16.mxu1 %v6183_v38  ;;  %v10066_v38 = vld [vmem:[#allocation34_spill] sm:$0xff] }
 0x2e6   :  { %6186 = vmatpush3.bf16.msra.mxu1 %v6185_v53  ;;  %v10062_v53 = vld [vmem:[#allocation90_spill] sm:$0xff] }
 0x2e7   :  { %6188 = vmatprep.subr.bf16.mxu1 %v6187_v3  ;;  %v10075_v3 = vld [vmem:[#allocation35_spill] sm:$0xff] }
 0x2ea   :  { %6190 = vmatpush3.bf16.msra.mxu1 %v6189_v26  ;;  %v10076_v26 = vld [vmem:[#allocation19_spill] sm:$0xff] }
 0x2eb   :  { %6192 = vmatprep.subr.bf16.mxu1 %v6191_v23  ;;  %v10067_v23 = vld [vmem:[#allocation69_spill] sm:$0xff] }
 0x2ed   :  { %4302 = vmatmul.mubr.f32.vlgmr.msra.gmra.mrb[66].mxu1 %v10056_v28 }
 0x2ee   :  { %6194 = vmatpush3.bf16.msra.mxu1 %v10059_v16  ;;  %4437 = vmatprep.mubr.f32.mxu1 %v10060_v33 }
 0x2ef   :  { %6196 = vmatprep.subr.bf16.mxu1 %v6195_v61  ;;  %v10068_v61 = vld [vmem:[#allocation65_spill] sm:$0xff] }
 0x2f2   :  { %6198 = vmatpush3.bf16.msra.mxu1 %v6197_v15  ;;  %v10070_v15 = vld [vmem:[#allocation9_spill] sm:$0xff] }
 0x2f3   :  { %6200 = vmatprep.subr.bf16.mxu1 %v6199_v20  ;;  %v10071_v20 = vld [vmem:[#allocation11_spill] sm:$0xff] }
 0x2f6   :  { %6202 = vmatpush3.bf16.msra.mxu1 %v6201_v8  ;;  %v10072_v8 = vld [vmem:[#allocation67_spill] sm:$0xff] }
 0x2f7   :  { %6204 = vmatprep.subr.bf16.mxu1 %v6203_v12  ;;  %v10073_v12 = vld [vmem:[#allocation73_spill] sm:$0xff] }
 0x2fa   :  { %6206 = vmatpush3.bf16.msra.mxu1 %v6205_v4  ;;  %v10074_v4 = vld [vmem:[#allocation53_spill] sm:$0xff] }
 0x2fb   :  { %6208 = vmatprep.subr.bf16.mxu1 %v6207_v37  ;;  %v10077_v37 = vld [vmem:[#allocation2_spill] sm:$0xff] }
 0x2fe   :  { %6210 = vmatpush3.bf16.msra.mxu1 %v6209_v47  ;;  %v10078_v47 = vld [vmem:[#allocation36_spill] sm:$0xff] }
 0x2ff   :  { %6212 = vmatprep.subr.bf16.mxu1 %v6211_v5  ;;  %v10079_v5 = vand.u32 4294901760, %v10058_v13 }
 0x302   :  { %6214 = vmatpush3.bf16.msra.mxu1 %v6213_v62  ;;  %v10080_v62 = vand.u32 4294901760, %v10057_v29 }
 0x303   :  { %6216 = vmatprep.subr.bf16.mxu1 %v6215_v50  ;;  %v10069_v50 = vld [vmem:[#allocation39_spill] sm:$0xff] }
 0x306   :  { %6218 = vmatpush3.bf16.msra.mxu1 %v6217_v24  ;;  %v6257_v24 = vpack.c.bf16 %v10080_v62, %v10079_v5 }
 0x307   :  { %6220 = vmatprep.subr.bf16.mxu1 %v6219_v6  ;;  %v10081_v6 = vand.u32 4294901760, %v10062_v53 }
 0x30a   :  { %6222 = vmatpush3.bf16.msra.mxu1 %v6221_v46  ;;  %v10082_v46 = vld [vmem:[#allocation62_spill] sm:$0xff] }
 0x30b   :  { %6224 = vmatprep.subr.bf16.mxu1 %v10061_v34 }
 0x30d   :  { %4440 = vmatmul.mubr.f32.vlgmr.msra.gmra.mrb[68].mxu1 %v10062_v53 }
 0x30e   :  { %6226 = vmatpush3.bf16.msra.mxu1 %v10063_v21  ;;  %4544 = vmatprep.mubr.f32.mxu1 %v10064_v58 }
 0x30f   :  { %6228 = vmatprep.subr.bf16.mxu1 %v10065_v30 }
 0x312   :  { %6230 = vmatpush3.bf16.msra.mxu1 %v10066_v38 }
 0x313   :  { %6232 = vmatprep.subr.bf16.mxu1 %v10067_v23 }
 0x316   :  { %6234 = vmatpush3.bf16.msra.mxu1 %v10068_v61 }
 0x317   :  { %6236 = vmatprep.subr.bf16.mxu1 %v10069_v50 }
 0x31a   :  { %6238 = vmatpush3.bf16.msra.mxu1 %v10070_v15 }
 0x31b   :  { %6240 = vmatprep.subr.bf16.mxu1 %v10071_v20 }
 0x31e   :  { %6242 = vmatpush3.bf16.msra.mxu1 %v10072_v8 }
 0x31f   :  { %6244 = vmatprep.subr.bf16.mxu1 %v10073_v12 }
 0x322   :  { %6246 = vmatpush3.bf16.msra.mxu1 %v10074_v4 }
 0x323   :  { %6248 = vmatprep.subr.bf16.mxu1 %v10075_v3 }
 0x326   :  { %6250 = vmatpush3.bf16.msra.mxu1 %v10076_v26 }
 0x327   :  { %6252 = vmatprep.subr.bf16.mxu1 %v10077_v37 }
 0x32a   :  { %6254 = vmatpush3.bf16.msra.mxu1 %v10078_v47 }
 0x32b   :  { %6256 = vmatprep.subr.bf16.mxu1 %v6255_v45 }
 0x32d   :  { %4548 = vmatmul.mubr.f32.vlgmr.msra.gmra.mrb[70].mxu1 %v10081_v6 }
 0x32e   :  { %6258 = vmatpush3.bf16.msra.mxu1 %v6257_v24  ;;  %4714 = vmatprep.mubr.f32.mxu1 %v10082_v46 }
 0x32f   :  { %6260 = vmatprep.subr.bf16.mxu1 %v9060_v32 }
 0x332   :  { %6262 = vmatpush3.bf16.msra.mxu1 %v9066_v2 }
 0x333   :  { %6264 = vmatprep.subr.bf16.mxu1 %v9072_v41 }
 0x336   :  { %6266 = vmatpush3.bf16.msra.mxu1 %v9078_v9  ;;  %v3961_v9 = vpop.permute.xlu0 %3960 }
 0x337   :  { %6268 = vmatprep.subr.bf16.mxu1 %v9084_v63 }
 0x33a   :  { %6270 = vmatpush3.bf16.msra.mxu1 %v9090_v11 }
 0x33b   :  { %6272 = vmatprep.subr.bf16.mxu1 %v9096_v14 }
 0x33e   :  { %6274 = vmatpush3.bf16.msra.mxu1 %v9102_v54 }
 0x33f   :  { %6276 = vmatprep.subr.bf16.mxu1 %v9109_v52 }
 0x342   :  { %6278 = vmatpush3.bf16.msra.mxu1 %v9115_v7 }
 0x343   :  { %6280 = vmatprep.subr.bf16.mxu1 %v9121_v25 }
 0x346   :  { %6282 = vmatpush3.bf16.msra.mxu1 %v9127_v42 }
 0x347   :  { %6284 = vmatprep.subr.bf16.mxu1 %v9130_v22 }
 0x34a   :  { %6286 = vmatpush3.bf16.msra.mxu1 %v9136_v51 }
 0x34b   :  { %6288 = vmatprep.subr.bf16.mxu1 %v10061_v34 }
 0x34d   :  { %4716 = vmatmul.mubr.f32.vlgmr.msra.gmra.mrb[72].mxu1 %v10056_v28 }
 0x34e   :  { %6290 = vmatpush3.bf16.msra.mxu1 %v10063_v21  ;;  %4818 = vmatprep.mubr.f32.mxu1 %v10082_v46 }
 0x34f   :  { %6292 = vmatprep.subr.bf16.mxu1 %v10065_v30 }
 0x352   :  { %6294 = vmatpush3.bf16.msra.mxu1 %v10066_v38 }
 0x353   :  { %6296 = vmatprep.subr.bf16.mxu1 %v10067_v23 }
 0x356   :  { %6298 = vmatpush3.bf16.msra.mxu1 %v10068_v61 }
 0x357   :  { %6300 = vmatprep.subr.bf16.mxu1 %v10069_v50 }
 0x35a   :  { %6302 = vmatpush3.bf16.msra.mxu1 %v10070_v15 }
 0x35b   :  { %6304 = vmatprep.subr.bf16.mxu1 %v10071_v20 }
 0x35e   :  { %6306 = vmatpush3.bf16.msra.mxu1 %v10072_v8 }
 0x35f   :  { %6308 = vmatprep.subr.bf16.mxu1 %v10073_v12 }
 0x362   :  { %6310 = vmatpush3.bf16.msra.mxu1 %v10074_v4 }
 0x363   :  { %6312 = vmatprep.subr.bf16.mxu1 %v10075_v3 }
 0x366   :  { %6314 = vmatpush3.bf16.msra.mxu1 %v10076_v26 }
 0x367   :  { %6316 = vmatprep.subr.bf16.mxu1 %v10077_v37 }
 0x36a   :  { %6318 = vmatpush3.bf16.msra.mxu1 %v10078_v47 }
 0x36d   :  { %4820 = vmatmul.mubr.f32.vlgmr.msra.gmra.mrb[74].mxu1 %v10056_v28 }
 0x39e   :  { %v5277_v45 = vpop.f32.mrb[64].mxu1 }
 0x39f   :  { %v5278_v2 = vpop.f32.mrb[65].mxu1 }
 0x3a0   :  { %v5279_v32 = vadd.f32 %v5278_v2, %v5277_v45 }
 0x3a2   :  { %v4072_v44 = vadd.f32 %v5279_v32, %v3961_v9 }
 0x3c0   :  { %v5312_v41 = vpop.f32.mrb[66].mxu1 }
 0x3c1   :  { %v5313_v49 = vpop.f32.mrb[67].mxu1 }
 0x3c2   :  { %v5314_v63 = vadd.f32 %v5313_v49, %v5312_v41 }
 0x3c4   :  { %v4304_v0 = vadd.f32 %v5314_v63, %v4072_v44 }
 0x3e0   :  { %v5347_v1 = vpop.f32.mrb[68].mxu1 }
 0x3e1   :  { %v5348_v11 = vpop.f32.mrb[69].mxu1 }
 0x3e2   :  { %v5349_v36 = vadd.f32 %v5348_v11, %v5347_v1 }
 0x3e4   :  { %v4442_v10 = vadd.f32 %v5349_v36, %v4304_v0 }
 0x400   :  { %v5382_v14 = vpop.f32.mrb[70].mxu1 }
 0x401   :  { %v5383_v19 = vpop.f32.mrb[71].mxu1 }
 0x402   :  { %v5384_v59 = vadd.f32 %v5383_v19, %v5382_v14 }
 0x404   :  { %v4550_v54 = vadd.f32 %v5384_v59, %v4442_v10 }
 0x420   :  { %v5417_v35 = vpop.f32.mrb[72].mxu1 }
 0x421   :  { %v5418_v40 = vpop.f32.mrb[73].mxu1 }
 0x422   :  { %v5419_v52 = vadd.f32 %v5418_v40, %v5417_v35 }
 0x424   :  { %v4718_v57 = vadd.f32 %v5419_v52, %v4550_v54 }
 0x440   :  { %v5452_v60 = vpop.f32.mrb[74].mxu1 }
 0x441   :  { %v5453_v7 = vpop.f32.mrb[75].mxu1 }
 0x442   :  { %v5454_v48 = vadd.f32 %v5453_v7, %v5452_v60 }
 0x444   :  { %v4822_v56 = vadd.f32 %v5454_v48, %v4718_v57 }
 0x446   :  { %v4825_v25 = vrot.slane %v4822_v56, 4 }
 0x448   :  { %v4826_v31 = vmax.f32 %v4822_v56, %v4825_v25 }
 0x44a   :  { %v4827_v43 = vrot.slane %v4826_v31, 2 }
 0x44c   :  { %v4828_v42 = vmax.f32 %v4826_v31, %v4827_v43 }
 0x44e   :  { %v4829_v22 = vrot.slane %v4828_v42, 1 }
 0x450   :  { %v4830_v55 = vmax.f32 %v4828_v42, %v4829_v22 }
 0x452   :  { %v4831_v18 = vsub.f32 0.0, %v4830_v55 }
 0x454   :  { %4832 = vst [vmem:[%s9213_s5] sm:$0x1] %v4831_v18 }

</bundles_post_ra>
